<compile_context>
chip_gen: v5e
topology: v5e:2x2
jax: 0.10.0
libtpu: 0.0.40
codegen_flags: <defaults>
</compile_context>

<pallas_src>
import math
import functools

import jax
import jax.numpy as jnp
from jax import lax
from jax.experimental import pallas as pl
from jax.experimental.pallas import tpu as pltpu


# ----------------------------- in-kernel helpers -----------------------------

def _layer_norm(x, gamma, beta, eps):
    mean = jnp.mean(x, axis=-1, keepdims=True)
    var = jnp.mean(jnp.square(x - mean), axis=-1, keepdims=True)
    return (x - mean) * lax.rsqrt(var + eps) * gamma + beta


def _mha(q16, k16, v16, w_o, b_o, bias, attn_ref, *, B, Lq, Lk, H):
    """Multi-head attention + single output-projection GEMM.

    q16:  (B*Lq, D) bf16 (1/sqrt(dh) already folded into the Q projection)
    k16, v16: (B*Lk, D) bf16
    w_o:  (D, D) bf16,  b_o: (1, D) f32
    bias: (B, Lq, Lk) f32 additive mask (0 keep / -1e9 masked), precomputed
    attn_ref: (1, B*Lq, H*Lk) output block — one lane-dense slab per layer
    returns (B*Lq, D) f32 attention output.
    """
    D = q16.shape[-1]
    dh = D // H
    q3 = q16.reshape(B, Lq, D)
    k3 = k16.reshape(B, Lk, D)
    v3 = v16.reshape(B, Lk, D)

    attn_parts = []
    ctx_parts = []
    for h in range(H):                       # static; each step is batched over B
        cols = slice(h * dh, (h + 1) * dh)
        s = jnp.einsum('bqd,bkd->bqk', q3[:, :, cols], k3[:, :, cols],
                       preferred_element_type=jnp.float32)          # (B, Lq, Lk)
        s = s + bias
        s = s - jnp.max(s, axis=-1, keepdims=True)
        p = jnp.exp(s)
        # exact reciprocal: returned attention maps sum to 1 (parity w/ PyTorch)
        p = p * pl.reciprocal(jnp.sum(p, axis=-1, keepdims=True), approx=False)
        attn_parts.append(p.reshape(B * Lq, Lk))
        ctx_parts.append(jnp.einsum('bqk,bkd->bqd', p.astype(jnp.bfloat16),
                                    v3[:, :, cols],
                                    preferred_element_type=jnp.float32))

    # one lane-dense store of all heads' probabilities for this layer
    attn_ref[0] = jnp.concatenate(attn_parts, axis=-1)              # (B*Lq, H*Lk)

    # assemble full context once, then a single K=D output projection GEMM
    ctx = jnp.concatenate(ctx_parts, axis=-1).reshape(B * Lq, D)
    return jnp.dot(ctx.astype(jnp.bfloat16), w_o,
                   preferred_element_type=jnp.float32) + b_o


# ------------------------------- Pallas kernel --------------------------------

def decoder_stack_kernel(
        x_ref, enc_ref, bias_s_ref, bias_c_ref,
        wqkv_s_ref, bqkv_s_ref, wo_s_ref, bo_s_ref,
        wq_c_ref, bq_c_ref, wkv_c_ref, bkv_c_ref, wo_c_ref, bo_c_ref,
        w1_ref, b1_ref, w2_ref, b2_ref, ln_g_ref, ln_b_ref,
        y_ref, sattn_ref, cattn_ref,
        *, num_heads, eps):
    layer = pl.program_id(0)

    B, Lq, _ = bias_s_ref.shape
    Le = bias_c_ref.shape[2]
    D = y_ref.shape[-1]

    # y is the VMEM-resident running activation (constant index_map over layers)
    @pl.when(layer == 0)
    def _():
        y_ref[...] = x_ref[...]

    x = y_ref[...]                                  # (B*Lq, D) f32
    enc16 = enc_ref[...]                            # (B*Le, D) bf16 (no cast)
    bias_s = bias_s_ref[...]                        # (B, Lq, Lq) additive
    bias_c = bias_c_ref[...]                        # (B, Lq, Le) additive

    ln_g = ln_g_ref[0]                              # (3, 1, D)
    ln_b = ln_b_ref[0]

    # ---- self attention: fused QKV projection (scale folded into W_q) ----
    qkv = jnp.dot(x.astype(jnp.bfloat16), wqkv_s_ref[0],
                  preferred_element_type=jnp.float32) + bqkv_s_ref[0]   # (B*Lq, 3D)
    q16 = qkv[:, 0:D].astype(jnp.bfloat16)
    k16 = qkv[:, D:2 * D].astype(jnp.bfloat16)
    v16 = qkv[:, 2 * D:3 * D].astype(jnp.bfloat16)
    sa = _mha(q16, k16, v16, wo_s_ref[0], bo_s_ref[0], bias_s, sattn_ref,
              B=B, Lq=Lq, Lk=Lq, H=num_heads)
    x = _layer_norm(x + sa, ln_g[0], ln_b[0], eps)

    # ---- cross attention: fused KV projection of encoder output ----
    qc = jnp.dot(x.astype(jnp.bfloat16), wq_c_ref[0],
                 preferred_element_type=jnp.float32) + bq_c_ref[0]      # (B*Lq, D)
    q16 = qc.astype(jnp.bfloat16)
    kv = jnp.dot(enc16, wkv_c_ref[0],
                 preferred_element_type=jnp.float32) + bkv_c_ref[0]     # (B*Le, 2D)
    k16 = kv[:, 0:D].astype(jnp.bfloat16)
    v16 = kv[:, D:2 * D].astype(jnp.bfloat16)
    ca = _mha(q16, k16, v16, wo_c_ref[0], bo_c_ref[0], bias_c, cattn_ref,
              B=B, Lq=Lq, Lk=Le, H=num_heads)
    x = _layer_norm(x + ca, ln_g[1], ln_b[1], eps)

    # ---- position-wise feed-forward ----
    h1 = jnp.maximum(jnp.dot(x.astype(jnp.bfloat16), w1_ref[0],
                             preferred_element_type=jnp.float32) + b1_ref[0], 0.0)
    ff = jnp.dot(h1.astype(jnp.bfloat16), w2_ref[0],
                 preferred_element_type=jnp.float32) + b2_ref[0]
    x = _layer_norm(x + ff, ln_g[2], ln_b[2], eps)

    y_ref[...] = x


def decoder_stack(x_flat, enc_flat16, bias_s, bias_c, params, num_heads, eps):
    num_layers = params['w_qkv_self'].shape[0]
    BM, D = x_flat.shape
    BE = enc_flat16.shape[0]
    B, Ld, _ = bias_s.shape
    Le = bias_c.shape[2]
    F = params['w1'].shape[-1]
    H = num_heads

    kernel = functools.partial(decoder_stack_kernel, num_heads=num_heads, eps=eps)

    def const_spec(shape):
        zeros = (0,) * len(shape)
        return pl.BlockSpec(shape, lambda l, z=zeros: z)

    def layer_spec(shape):
        zeros = (0,) * len(shape)
        return pl.BlockSpec((1,) + shape, lambda l, z=zeros: (l,) + z)

    in_specs = [
        const_spec((BM, D)),                               # x (embedded, flattened)
        const_spec((BE, D)),                               # encoder output (bf16)
        const_spec((B, Ld, Ld)),                           # self additive bias
        const_spec((B, Ld, Le)),                           # cross additive bias
        layer_spec((D, 3 * D)), layer_spec((1, 3 * D)),    # fused Wqkv / bqkv (self)
        layer_spec((D, D)), layer_spec((1, D)),            # Wo / bo (self)
        layer_spec((D, D)), layer_spec((1, D)),            # Wq / bq (cross)
        layer_spec((D, 2 * D)), layer_spec((1, 2 * D)),    # fused Wkv / bkv (cross)
        layer_spec((D, D)), layer_spec((1, D)),            # Wo / bo (cross)
        layer_spec((D, F)), layer_spec((1, F)),            # W1 / b1
        layer_spec((F, D)), layer_spec((1, D)),            # W2 / b2
        layer_spec((3, 1, D)), layer_spec((3, 1, D)),      # LN gamma / beta
    ]
    out_specs = (
        const_spec((BM, D)),                               # y (resident accumulator)
        pl.BlockSpec((1, BM, H * Ld), lambda l: (l, 0, 0)),   # self attn slab / layer
        pl.BlockSpec((1, BM, H * Le), lambda l: (l, 0, 0)),   # cross attn slab / layer
    )
    out_shapes = (
        jax.ShapeDtypeStruct((BM, D), jnp.float32),
        jax.ShapeDtypeStruct((num_layers, BM, H * Ld), jnp.float32),
        jax.ShapeDtypeStruct((num_layers, BM, H * Le), jnp.float32),
    )

    return pl.pallas_call(
        kernel,
        out_shape=out_shapes,
        grid=(num_layers,),
        in_specs=in_specs,
        out_specs=out_specs,
        compiler_params=pltpu.CompilerParams(
            dimension_semantics=("arbitrary",),
            vmem_limit_bytes=48 * 1024 * 1024,   # headroom on v7x's 64 MiB
        ),
    )(x_flat, enc_flat16, bias_s, bias_c,
      params['w_qkv_self'], params['b_qkv_self'],
      params['w_o_self'], params['b_o_self'],
      params['w_q_cross'], params['b_q_cross'],
      params['w_kv_cross'], params['b_kv_cross'],
      params['w_o_cross'], params['b_o_cross'],
      params['w1'], params['b1'], params['w2'], params['b2'],
      params['ln_g'], params['ln_b'])


# ------------------------------- JAX glue -------------------------------------

def positional_encoding(max_len, d_model):
    pos = jnp.arange(max_len, dtype=jnp.float32)[:, None]
    i = jnp.arange(0, d_model, 2, dtype=jnp.float32)
    angle = pos / jnp.power(10000.0, i / d_model)
    pe = jnp.zeros((max_len, d_model), jnp.float32)
    pe = pe.at[:, 0::2].set(jnp.sin(angle))
    pe = pe.at[:, 1::2].set(jnp.cos(angle))
    return pe


def init_params(key, vocab_size, d_model, num_heads, d_ff, num_layers, max_len):
    D, F, L = d_model, d_ff, num_layers
    dh = D // num_heads
    q_scale = 1.0 / math.sqrt(dh)          # folded into the Q projection weights

    def normal_f32(k, shape, scale=0.02):
        return scale * jax.random.normal(k, shape, jnp.float32)

    keys = jax.random.split(key, 9)

    w_qkv_self = normal_f32(keys[1], (L, D, 3 * D))
    w_qkv_self = w_qkv_self.at[:, :, 0:D].multiply(q_scale)      # scale Q columns
    w_q_cross = normal_f32(keys[3], (L, D, D)) * q_scale

    return {
        'embedding': jax.random.normal(keys[0], (vocab_size, D), jnp.float32),
        'pe': positional_encoding(max_len, D),
        # per-layer weights stacked along a leading layer axis, stored bf16
        # (f32 accumulation in-kernel); biases stay f32
        'w_qkv_self': w_qkv_self.astype(jnp.bfloat16),
        'b_qkv_self': jnp.zeros((L, 1, 3 * D), jnp.float32),   # Q part pre-scaled (zeros)
        'w_o_self': normal_f32(keys[2], (L, D, D)).astype(jnp.bfloat16),
        'b_o_self': jnp.zeros((L, 1, D), jnp.float32),
        'w_q_cross': w_q_cross.astype(jnp.bfloat16),
        'b_q_cross': jnp.zeros((L, 1, D), jnp.float32),
        'w_kv_cross': normal_f32(keys[4], (L, D, 2 * D)).astype(jnp.bfloat16),
        'b_kv_cross': jnp.zeros((L, 1, 2 * D), jnp.float32),
        'w_o_cross': normal_f32(keys[5], (L, D, D)).astype(jnp.bfloat16),
        'b_o_cross': jnp.zeros((L, 1, D), jnp.float32),
        'w1': normal_f32(keys[6], (L, D, F)).astype(jnp.bfloat16),
        'b1': jnp.zeros((L, 1, F), jnp.float32),
        'w2': normal_f32(keys[7], (L, F, D)).astype(jnp.bfloat16),
        'b2': jnp.zeros((L, 1, D), jnp.float32),
        'ln_g': jnp.ones((L, 3, 1, D), jnp.float32),
        'ln_b': jnp.zeros((L, 3, 1, D), jnp.float32),
    }


def transformer_decoder(tokens, enc_output, self_mask, cross_mask, params,
                        num_heads, eps=1e-6):
    d_model = params['embedding'].shape[1]
    B, Ld = tokens.shape
    Le = enc_output.shape[1]
    num_layers = params['w_qkv_self'].shape[0]

    # TransformerEmbedding: scaled token embedding + sinusoidal PE (dropout=eval)
    x = params['embedding'][tokens] * math.sqrt(d_model) + params['pe'][:Ld]
    x_flat = x.astype(jnp.float32).reshape(B * Ld, d_model)
    enc_flat16 = enc_output.astype(jnp.bfloat16).reshape(B * Le, d_model)

    # additive masks computed ONCE (1=keep / 0=mask), not per layer in-kernel
    neg = jnp.float32(-1e9)
    bias_s = jnp.where(self_mask.astype(jnp.float32) > 0.5, jnp.float32(0.0), neg)
    bias_c = jnp.where(cross_mask.astype(jnp.float32) > 0.5, jnp.float32(0.0), neg)

    y, sattn, cattn = decoder_stack(x_flat, enc_flat16, bias_s, bias_c,
                                    params, num_heads, eps)

    # lane-dense kernel slabs back to (L, B, H, Lq, Lk)
    sattn = sattn.reshape(num_layers, B, Ld, num_heads, Ld).transpose(0, 1, 3, 2, 4)
    cattn = cattn.reshape(num_layers, B, Ld, num_heads, Le).transpose(0, 1, 3, 2, 4)
    return {
        'output': y.reshape(B, Ld, d_model),
        'self_attention': [sattn[l] for l in range(num_layers)],
        'cross_attention': [cattn[l] for l in range(num_layers)],
    }


# --------------------------------- main ---------------------------------------

if __name__ == "__main__":
    vocab_size = 100
    d_model = 32
    num_heads = 4
    d_ff = 64
    num_layers = 2
    max_len = 64
    batch = 2
    dec_len = 8
    enc_len = 16

    key = jax.random.PRNGKey(0)
    k_par, k_tok, k_enc = jax.random.split(key, 3)

    params = init_params(k_par, vocab_size, d_model, num_heads, d_ff,
                         num_layers, max_len)

    tokens = jax.random.randint(k_tok, (batch, dec_len), 0, vocab_size)
    enc_output = jax.random.normal(k_enc, (batch, enc_len, d_model), jnp.float32)

    # causal self-attention mask (1 = attend, 0 = masked)
    causal = jnp.tril(jnp.ones((dec_len, dec_len), jnp.float32))
    self_mask = jnp.broadcast_to(causal, (batch, dec_len, dec_len))
    cross_mask = jnp.ones((batch, dec_len, enc_len), jnp.float32)

    outputs = transformer_decoder(tokens, enc_output, self_mask, cross_mask,
                                  params, num_heads, eps=1e-6)

    jax.block_until_ready(outputs['output'])
    for a in outputs['self_attention'] + outputs['cross_attention']:
        jax.block_until_ready(a)

    assert outputs['output'].shape == (batch, dec_len, d_model)
    assert outputs['self_attention'][0].shape == (batch, num_heads, dec_len, dec_len)
    assert outputs['cross_attention'][0].shape == (batch, num_heads, dec_len, enc_len)
    assert len(outputs['self_attention']) == num_layers
    assert len(outputs['cross_attention']) == num_layers

    # sanity: attention rows are proper distributions (exact reciprocal used)
    row_sums = outputs['self_attention'][0].sum(-1)
    assert bool(jnp.all(jnp.abs(row_sums - 1.0) < 1e-3))

    print("KERNEL_OK")
</pallas_src>

<mosaic_0001>
module attributes {stable_mosaic.version = 11 : i64} {
  func.func @decoder_stack_kernel(%arg0: i32, %arg1: memref<16x32xf32, #tpu.memory_space<vmem>>, %arg2: memref<32x32xbf16, #tpu.memory_space<vmem>>, %arg3: memref<2x8x8xf32, #tpu.memory_space<vmem>>, %arg4: memref<2x8x16xf32, #tpu.memory_space<vmem>>, %arg5: memref<1x32x96xbf16, #tpu.memory_space<vmem>>, %arg6: memref<1x1x96xf32, #tpu.memory_space<vmem>>, %arg7: memref<1x32x32xbf16, #tpu.memory_space<vmem>>, %arg8: memref<1x1x32xf32, #tpu.memory_space<vmem>>, %arg9: memref<1x32x32xbf16, #tpu.memory_space<vmem>>, %arg10: memref<1x1x32xf32, #tpu.memory_space<vmem>>, %arg11: memref<1x32x64xbf16, #tpu.memory_space<vmem>>, %arg12: memref<1x1x64xf32, #tpu.memory_space<vmem>>, %arg13: memref<1x32x32xbf16, #tpu.memory_space<vmem>>, %arg14: memref<1x1x32xf32, #tpu.memory_space<vmem>>, %arg15: memref<1x32x64xbf16, #tpu.memory_space<vmem>>, %arg16: memref<1x1x64xf32, #tpu.memory_space<vmem>>, %arg17: memref<1x64x32xbf16, #tpu.memory_space<vmem>>, %arg18: memref<1x1x32xf32, #tpu.memory_space<vmem>>, %arg19: memref<1x3x1x32xf32, #tpu.memory_space<vmem>>, %arg20: memref<1x3x1x32xf32, #tpu.memory_space<vmem>>, %arg21: memref<16x32xf32, #tpu.memory_space<vmem>>, %arg22: memref<1x16x32xf32, #tpu.memory_space<vmem>>, %arg23: memref<1x16x64xf32, #tpu.memory_space<vmem>>) attributes {dimension_semantics = [#tpu.dimension_semantics<arbitrary>], iteration_bounds = array<i64: 2>, scalar_prefetch = 0 : i64, scratch_operands = 0 : i64, tpu.core_type = #tpu.core_type<tc>, window_params = [{pipeline_mode = #tpu.pipeline_mode<synchronous>, transform_indices = @transform_0, window_bounds = array<i64: 16, 32>}, {pipeline_mode = #tpu.pipeline_mode<synchronous>, transform_indices = @transform_1, window_bounds = array<i64: 32, 32>}, {pipeline_mode = #tpu.pipeline_mode<synchronous>, transform_indices = @transform_2, window_bounds = array<i64: 2, 8, 8>}, {pipeline_mode = #tpu.pipeline_mode<synchronous>, transform_indices = @transform_3, window_bounds = array<i64: 2, 8, 16>}, {transform_indices = @transform_4, window_bounds = array<i64: 1, 32, 96>}, {transform_indices = @transform_5, window_bounds = array<i64: 1, 1, 96>}, {transform_indices = @transform_6, window_bounds = array<i64: 1, 32, 32>}, {transform_indices = @transform_7, window_bounds = array<i64: 1, 1, 32>}, {transform_indices = @transform_8, window_bounds = array<i64: 1, 32, 32>}, {transform_indices = @transform_9, window_bounds = array<i64: 1, 1, 32>}, {transform_indices = @transform_10, window_bounds = array<i64: 1, 32, 64>}, {transform_indices = @transform_11, window_bounds = array<i64: 1, 1, 64>}, {transform_indices = @transform_12, window_bounds = array<i64: 1, 32, 32>}, {transform_indices = @transform_13, window_bounds = array<i64: 1, 1, 32>}, {transform_indices = @transform_14, window_bounds = array<i64: 1, 32, 64>}, {transform_indices = @transform_15, window_bounds = array<i64: 1, 1, 64>}, {transform_indices = @transform_16, window_bounds = array<i64: 1, 64, 32>}, {transform_indices = @transform_17, window_bounds = array<i64: 1, 1, 32>}, {transform_indices = @transform_18, window_bounds = array<i64: 1, 3, 1, 32>}, {transform_indices = @transform_19, window_bounds = array<i64: 1, 3, 1, 32>}, {pipeline_mode = #tpu.pipeline_mode<synchronous>, transform_indices = @transform_20, window_bounds = array<i64: 16, 32>}, {transform_indices = @transform_21, window_bounds = array<i64: 1, 16, 32>}, {transform_indices = @transform_22, window_bounds = array<i64: 1, 16, 64>}]} {
    %c0_i32 = arith.constant 0 : i32
    %0 = arith.cmpi eq, %arg0, %c0_i32 : i32
    %1 = arith.extui %0 : i1 to i32
    %c0_i32_0 = arith.constant 0 : i32
    %2 = arith.cmpi ne, %1, %c0_i32_0 : i32
    scf.if %2 {
      %c0_122 = arith.constant 0 : index
      %c0_123 = arith.constant 0 : index
      %323 = vector.load %arg1[%c0_122, %c0_123] : memref<16x32xf32, #tpu.memory_space<vmem>>, vector<16x32xf32>
      %c0_124 = arith.constant 0 : index
      %c0_125 = arith.constant 0 : index
      %324 = vector.load %arg21[%c0_124, %c0_125] : memref<16x32xf32, #tpu.memory_space<vmem>>, vector<16x32xf32>
      tpu.vector_store %arg21[%c0_124, %c0_125], %323 {strides = array<i32>} : memref<16x32xf32, #tpu.memory_space<vmem>>, vector<16x32xf32>,
    } else {
    }
    %c0 = arith.constant 0 : index
    %c0_1 = arith.constant 0 : index
    %3 = vector.load %arg21[%c0, %c0_1] : memref<16x32xf32, #tpu.memory_space<vmem>>, vector<16x32xf32>
    %c0_2 = arith.constant 0 : index
    %c0_3 = arith.constant 0 : index
    %4 = vector.load %arg2[%c0_2, %c0_3] : memref<32x32xbf16, #tpu.memory_space<vmem>>, vector<32x32xbf16>
    %c0_4 = arith.constant 0 : index
    %c0_5 = arith.constant 0 : index
    %c0_6 = arith.constant 0 : index
    %5 = vector.load %arg3[%c0_4, %c0_5, %c0_6] : memref<2x8x8xf32, #tpu.memory_space<vmem>>, vector<2x8x8xf32>
    %c0_7 = arith.constant 0 : index
    %c0_8 = arith.constant 0 : index
    %c0_9 = arith.constant 0 : index
    %6 = vector.load %arg4[%c0_7, %c0_8, %c0_9] : memref<2x8x16xf32, #tpu.memory_space<vmem>>, vector<2x8x16xf32>
    %c0_10 = arith.constant 0 : index
    %c0_11 = arith.constant 0 : index
    %c0_12 = arith.constant 0 : index
    %c0_13 = arith.constant 0 : index
    %7 = vector.load %arg19[%c0_10, %c0_11, %c0_12, %c0_13] : memref<1x3x1x32xf32, #tpu.memory_space<vmem>>, vector<1x3x1x32xf32>
    %8 = vector.shape_cast %7 : vector<1x3x1x32xf32> to vector<3x1x32xf32>
    %c0_14 = arith.constant 0 : index
    %c0_15 = arith.constant 0 : index
    %c0_16 = arith.constant 0 : index
    %c0_17 = arith.constant 0 : index
    %9 = vector.load %arg20[%c0_14, %c0_15, %c0_16, %c0_17] : memref<1x3x1x32xf32, #tpu.memory_space<vmem>>, vector<1x3x1x32xf32>
    %10 = vector.shape_cast %9 : vector<1x3x1x32xf32> to vector<3x1x32xf32>
    %11 = arith.truncf %3 : vector<16x32xf32> to vector<16x32xbf16>
    %c0_18 = arith.constant 0 : index
    %c0_19 = arith.constant 0 : index
    %c0_20 = arith.constant 0 : index
    %12 = vector.load %arg5[%c0_18, %c0_19, %c0_20] : memref<1x32x96xbf16, #tpu.memory_space<vmem>>, vector<1x32x96xbf16>
    %13 = vector.shape_cast %12 : vector<1x32x96xbf16> to vector<32x96xbf16>
    %cst = arith.constant dense<0.000000e+00> : vector<16x96xf32>
    %14 = tpu.matmul %11, %13, %cst {dimension_numbers = #tpu.dot_dimension_numbers<[1], [0], [0], [1], [0, 0, 1, 1], [], []>} : vector<16x32xbf16>, vector<32x96xbf16>, vector<16x96xf32> -> vector<16x96xf32>
    %c0_21 = arith.constant 0 : index
    %c0_22 = arith.constant 0 : index
    %c0_23 = arith.constant 0 : index
    %15 = vector.load %arg6[%c0_21, %c0_22, %c0_23] : memref<1x1x96xf32, #tpu.memory_space<vmem>>, vector<1x1x96xf32>
    %16 = vector.shape_cast %15 : vector<1x1x96xf32> to vector<1x96xf32>
    %17 = vector.broadcast %16 : vector<1x96xf32> to vector<16x96xf32>
    %18 = arith.addf %14, %17 : vector<16x96xf32>
    %19 = vector.extract_strided_slice %18 {offsets = [0, 0], sizes = [16, 32], strides = [1, 1]} : vector<16x96xf32> to vector<16x32xf32>
    %20 = arith.truncf %19 : vector<16x32xf32> to vector<16x32xbf16>
    %21 = vector.extract_strided_slice %18 {offsets = [0, 32], sizes = [16, 32], strides = [1, 1]} : vector<16x96xf32> to vector<16x32xf32>
    %22 = arith.truncf %21 : vector<16x32xf32> to vector<16x32xbf16>
    %23 = vector.extract_strided_slice %18 {offsets = [0, 64], sizes = [16, 32], strides = [1, 1]} : vector<16x96xf32> to vector<16x32xf32>
    %24 = arith.truncf %23 : vector<16x32xf32> to vector<16x32xbf16>
    %c0_24 = arith.constant 0 : index
    %c0_25 = arith.constant 0 : index
    %c0_26 = arith.constant 0 : index
    %25 = vector.load %arg7[%c0_24, %c0_25, %c0_26] : memref<1x32x32xbf16, #tpu.memory_space<vmem>>, vector<1x32x32xbf16>
    %26 = vector.shape_cast %25 : vector<1x32x32xbf16> to vector<32x32xbf16>
    %c0_27 = arith.constant 0 : index
    %c0_28 = arith.constant 0 : index
    %c0_29 = arith.constant 0 : index
    %27 = vector.load %arg8[%c0_27, %c0_28, %c0_29] : memref<1x1x32xf32, #tpu.memory_space<vmem>>, vector<1x1x32xf32>
    %28 = vector.shape_cast %27 : vector<1x1x32xf32> to vector<1x32xf32>
    %29 = vector.shape_cast %20 : vector<16x32xbf16> to vector<2x8x32xbf16>
    %30 = vector.shape_cast %22 : vector<16x32xbf16> to vector<2x8x32xbf16>
    %31 = vector.shape_cast %24 : vector<16x32xbf16> to vector<2x8x32xbf16>
    %32 = vector.extract_strided_slice %29 {offsets = [0, 0, 0], sizes = [2, 8, 8], strides = [1, 1, 1]} : vector<2x8x32xbf16> to vector<2x8x8xbf16>
    %33 = vector.extract_strided_slice %30 {offsets = [0, 0, 0], sizes = [2, 8, 8], strides = [1, 1, 1]} : vector<2x8x32xbf16> to vector<2x8x8xbf16>
    "tpu.trace_start"() <{level = 10 : i32, message = "bqd,bkd->bqk"}> : () -> ()
    %cst_30 = arith.constant dense<0.000000e+00> : vector<2x8x8xf32>
    %34 = tpu.matmul %32, %33, %cst_30 {dimension_numbers = #tpu.dot_dimension_numbers<[2], [2], [1], [1], [0, 0, 0, 1, 1, 1], [0], [0]>} : vector<2x8x8xbf16>, vector<2x8x8xbf16>, vector<2x8x8xf32> -> vector<2x8x8xf32>
    "tpu.trace_stop"() : () -> ()
    %35 = arith.addf %34, %5 : vector<2x8x8xf32>
    %cst_31 = arith.constant dense<0xFF800000> : vector<2x8xf32>
    %36 = vector.multi_reduction <maximumf>, %35, %cst_31 [2] : vector<2x8x8xf32> to vector<2x8xf32>
    %37 = vector.shape_cast %36 : vector<2x8xf32> to vector<2x8x1xf32>
    %38 = vector.broadcast %37 : vector<2x8x1xf32> to vector<2x8x8xf32>
    %39 = arith.subf %35, %38 : vector<2x8x8xf32>
    %40 = math.exp %39 : vector<2x8x8xf32>
    %cst_32 = arith.constant dense<0.000000e+00> : vector<2x8xf32>
    %41 = vector.multi_reduction <add>, %40, %cst_32 [2] : vector<2x8x8xf32> to vector<2x8xf32>
    %42 = vector.shape_cast %41 : vector<2x8xf32> to vector<2x8x1xf32>
    %43 = tpu.reciprocal %42 : vector<2x8x1xf32> -> vector<2x8x1xf32>
    %44 = vector.broadcast %43 : vector<2x8x1xf32> to vector<2x8x8xf32>
    %45 = arith.mulf %40, %44 : vector<2x8x8xf32>
    %46 = vector.shape_cast %45 : vector<2x8x8xf32> to vector<16x8xf32>
    %47 = arith.truncf %45 : vector<2x8x8xf32> to vector<2x8x8xbf16>
    %48 = vector.extract_strided_slice %31 {offsets = [0, 0, 0], sizes = [2, 8, 8], strides = [1, 1, 1]} : vector<2x8x32xbf16> to vector<2x8x8xbf16>
    "tpu.trace_start"() <{level = 10 : i32, message = "bqk,bkd->bqd"}> : () -> ()
    %cst_33 = arith.constant dense<0.000000e+00> : vector<2x8x8xf32>
    %49 = tpu.matmul %47, %48, %cst_33 {dimension_numbers = #tpu.dot_dimension_numbers<[2], [1], [1], [2], [0, 0, 0, 1, 1, 2], [0], [0]>} : vector<2x8x8xbf16>, vector<2x8x8xbf16>, vector<2x8x8xf32> -> vector<2x8x8xf32>
    "tpu.trace_stop"() : () -> ()
    %50 = vector.extract_strided_slice %29 {offsets = [0, 0, 8], sizes = [2, 8, 8], strides = [1, 1, 1]} : vector<2x8x32xbf16> to vector<2x8x8xbf16>
    %51 = vector.extract_strided_slice %30 {offsets = [0, 0, 8], sizes = [2, 8, 8], strides = [1, 1, 1]} : vector<2x8x32xbf16> to vector<2x8x8xbf16>
    "tpu.trace_start"() <{level = 10 : i32, message = "bqd,bkd->bqk"}> : () -> ()
    %cst_34 = arith.constant dense<0.000000e+00> : vector<2x8x8xf32>
    %52 = tpu.matmul %50, %51, %cst_34 {dimension_numbers = #tpu.dot_dimension_numbers<[2], [2], [1], [1], [0, 0, 0, 1, 1, 1], [0], [0]>} : vector<2x8x8xbf16>, vector<2x8x8xbf16>, vector<2x8x8xf32> -> vector<2x8x8xf32>
    "tpu.trace_stop"() : () -> ()
    %53 = arith.addf %52, %5 : vector<2x8x8xf32>
    %cst_35 = arith.constant dense<0xFF800000> : vector<2x8xf32>
    %54 = vector.multi_reduction <maximumf>, %53, %cst_35 [2] : vector<2x8x8xf32> to vector<2x8xf32>
    %55 = vector.shape_cast %54 : vector<2x8xf32> to vector<2x8x1xf32>
    %56 = vector.broadcast %55 : vector<2x8x1xf32> to vector<2x8x8xf32>
    %57 = arith.subf %53, %56 : vector<2x8x8xf32>
    %58 = math.exp %57 : vector<2x8x8xf32>
    %cst_36 = arith.constant dense<0.000000e+00> : vector<2x8xf32>
    %59 = vector.multi_reduction <add>, %58, %cst_36 [2] : vector<2x8x8xf32> to vector<2x8xf32>
    %60 = vector.shape_cast %59 : vector<2x8xf32> to vector<2x8x1xf32>
    %61 = tpu.reciprocal %60 : vector<2x8x1xf32> -> vector<2x8x1xf32>
    %62 = vector.broadcast %61 : vector<2x8x1xf32> to vector<2x8x8xf32>
    %63 = arith.mulf %58, %62 : vector<2x8x8xf32>
    %64 = vector.shape_cast %63 : vector<2x8x8xf32> to vector<16x8xf32>
    %65 = arith.truncf %63 : vector<2x8x8xf32> to vector<2x8x8xbf16>
    %66 = vector.extract_strided_slice %31 {offsets = [0, 0, 8], sizes = [2, 8, 8], strides = [1, 1, 1]} : vector<2x8x32xbf16> to vector<2x8x8xbf16>
    "tpu.trace_start"() <{level = 10 : i32, message = "bqk,bkd->bqd"}> : () -> ()
    %cst_37 = arith.constant dense<0.000000e+00> : vector<2x8x8xf32>
    %67 = tpu.matmul %65, %66, %cst_37 {dimension_numbers = #tpu.dot_dimension_numbers<[2], [1], [1], [2], [0, 0, 0, 1, 1, 2], [0], [0]>} : vector<2x8x8xbf16>, vector<2x8x8xbf16>, vector<2x8x8xf32> -> vector<2x8x8xf32>
    "tpu.trace_stop"() : () -> ()
    %68 = vector.extract_strided_slice %29 {offsets = [0, 0, 16], sizes = [2, 8, 8], strides = [1, 1, 1]} : vector<2x8x32xbf16> to vector<2x8x8xbf16>
    %69 = vector.extract_strided_slice %30 {offsets = [0, 0, 16], sizes = [2, 8, 8], strides = [1, 1, 1]} : vector<2x8x32xbf16> to vector<2x8x8xbf16>
    "tpu.trace_start"() <{level = 10 : i32, message = "bqd,bkd->bqk"}> : () -> ()
    %cst_38 = arith.constant dense<0.000000e+00> : vector<2x8x8xf32>
    %70 = tpu.matmul %68, %69, %cst_38 {dimension_numbers = #tpu.dot_dimension_numbers<[2], [2], [1], [1], [0, 0, 0, 1, 1, 1], [0], [0]>} : vector<2x8x8xbf16>, vector<2x8x8xbf16>, vector<2x8x8xf32> -> vector<2x8x8xf32>
    "tpu.trace_stop"() : () -> ()
    %71 = arith.addf %70, %5 : vector<2x8x8xf32>
    %cst_39 = arith.constant dense<0xFF800000> : vector<2x8xf32>
    %72 = vector.multi_reduction <maximumf>, %71, %cst_39 [2] : vector<2x8x8xf32> to vector<2x8xf32>
    %73 = vector.shape_cast %72 : vector<2x8xf32> to vector<2x8x1xf32>
    %74 = vector.broadcast %73 : vector<2x8x1xf32> to vector<2x8x8xf32>
    %75 = arith.subf %71, %74 : vector<2x8x8xf32>
    %76 = math.exp %75 : vector<2x8x8xf32>
    %cst_40 = arith.constant dense<0.000000e+00> : vector<2x8xf32>
    %77 = vector.multi_reduction <add>, %76, %cst_40 [2] : vector<2x8x8xf32> to vector<2x8xf32>
    %78 = vector.shape_cast %77 : vector<2x8xf32> to vector<2x8x1xf32>
    %79 = tpu.reciprocal %78 : vector<2x8x1xf32> -> vector<2x8x1xf32>
    %80 = vector.broadcast %79 : vector<2x8x1xf32> to vector<2x8x8xf32>
    %81 = arith.mulf %76, %80 : vector<2x8x8xf32>
    %82 = vector.shape_cast %81 : vector<2x8x8xf32> to vector<16x8xf32>
    %83 = arith.truncf %81 : vector<2x8x8xf32> to vector<2x8x8xbf16>
    %84 = vector.extract_strided_slice %31 {offsets = [0, 0, 16], sizes = [2, 8, 8], strides = [1, 1, 1]} : vector<2x8x32xbf16> to vector<2x8x8xbf16>
    "tpu.trace_start"() <{level = 10 : i32, message = "bqk,bkd->bqd"}> : () -> ()
    %cst_41 = arith.constant dense<0.000000e+00> : vector<2x8x8xf32>
    %85 = tpu.matmul %83, %84, %cst_41 {dimension_numbers = #tpu.dot_dimension_numbers<[2], [1], [1], [2], [0, 0, 0, 1, 1, 2], [0], [0]>} : vector<2x8x8xbf16>, vector<2x8x8xbf16>, vector<2x8x8xf32> -> vector<2x8x8xf32>
    "tpu.trace_stop"() : () -> ()
    %86 = vector.extract_strided_slice %29 {offsets = [0, 0, 24], sizes = [2, 8, 8], strides = [1, 1, 1]} : vector<2x8x32xbf16> to vector<2x8x8xbf16>
    %87 = vector.extract_strided_slice %30 {offsets = [0, 0, 24], sizes = [2, 8, 8], strides = [1, 1, 1]} : vector<2x8x32xbf16> to vector<2x8x8xbf16>
    "tpu.trace_start"() <{level = 10 : i32, message = "bqd,bkd->bqk"}> : () -> ()
    %cst_42 = arith.constant dense<0.000000e+00> : vector<2x8x8xf32>
    %88 = tpu.matmul %86, %87, %cst_42 {dimension_numbers = #tpu.dot_dimension_numbers<[2], [2], [1], [1], [0, 0, 0, 1, 1, 1], [0], [0]>} : vector<2x8x8xbf16>, vector<2x8x8xbf16>, vector<2x8x8xf32> -> vector<2x8x8xf32>
    "tpu.trace_stop"() : () -> ()
    %89 = arith.addf %88, %5 : vector<2x8x8xf32>
    %cst_43 = arith.constant dense<0xFF800000> : vector<2x8xf32>
    %90 = vector.multi_reduction <maximumf>, %89, %cst_43 [2] : vector<2x8x8xf32> to vector<2x8xf32>
    %91 = vector.shape_cast %90 : vector<2x8xf32> to vector<2x8x1xf32>
    %92 = vector.broadcast %91 : vector<2x8x1xf32> to vector<2x8x8xf32>
    %93 = arith.subf %89, %92 : vector<2x8x8xf32>
    %94 = math.exp %93 : vector<2x8x8xf32>
    %cst_44 = arith.constant dense<0.000000e+00> : vector<2x8xf32>
    %95 = vector.multi_reduction <add>, %94, %cst_44 [2] : vector<2x8x8xf32> to vector<2x8xf32>
    %96 = vector.shape_cast %95 : vector<2x8xf32> to vector<2x8x1xf32>
    %97 = tpu.reciprocal %96 : vector<2x8x1xf32> -> vector<2x8x1xf32>
    %98 = vector.broadcast %97 : vector<2x8x1xf32> to vector<2x8x8xf32>
    %99 = arith.mulf %94, %98 : vector<2x8x8xf32>
    %100 = vector.shape_cast %99 : vector<2x8x8xf32> to vector<16x8xf32>
    %101 = arith.truncf %99 : vector<2x8x8xf32> to vector<2x8x8xbf16>
    %102 = vector.extract_strided_slice %31 {offsets = [0, 0, 24], sizes = [2, 8, 8], strides = [1, 1, 1]} : vector<2x8x32xbf16> to vector<2x8x8xbf16>
    "tpu.trace_start"() <{level = 10 : i32, message = "bqk,bkd->bqd"}> : () -> ()
    %cst_45 = arith.constant dense<0.000000e+00> : vector<2x8x8xf32>
    %103 = tpu.matmul %101, %102, %cst_45 {dimension_numbers = #tpu.dot_dimension_numbers<[2], [1], [1], [2], [0, 0, 0, 1, 1, 2], [0], [0]>} : vector<2x8x8xbf16>, vector<2x8x8xbf16>, vector<2x8x8xf32> -> vector<2x8x8xf32>
    "tpu.trace_stop"() : () -> ()
    %104 = tpu.concatenate %46, %64, %82, %100 in 1 : vector<16x8xf32>, vector<16x8xf32>, vector<16x8xf32>, vector<16x8xf32> -> vector<16x32xf32>
    %c0_46 = arith.constant 0 : index
    %c0_47 = arith.constant 0 : index
    %c0_48 = arith.constant 0 : index
    %105 = vector.load %arg22[%c0_46, %c0_47, %c0_48] : memref<1x16x32xf32, #tpu.memory_space<vmem>>, vector<1x16x32xf32>
    %106 = vector.shape_cast %105 : vector<1x16x32xf32> to vector<16x32xf32>
    %107 = vector.shape_cast %104 : vector<16x32xf32> to vector<1x16x32xf32>
    tpu.vector_store %arg22[%c0_46, %c0_47, %c0_48], %107 {strides = array<i32>} : memref<1x16x32xf32, #tpu.memory_space<vmem>>, vector<1x16x32xf32>,
    %108 = tpu.concatenate %49, %67, %85, %103 in 2 : vector<2x8x8xf32>, vector<2x8x8xf32>, vector<2x8x8xf32>, vector<2x8x8xf32> -> vector<2x8x32xf32>
    %109 = vector.shape_cast %108 : vector<2x8x32xf32> to vector<16x32xf32>
    %110 = arith.truncf %109 : vector<16x32xf32> to vector<16x32xbf16>
    %cst_49 = arith.constant dense<0.000000e+00> : vector<16x32xf32>
    %111 = tpu.matmul %110, %26, %cst_49 {dimension_numbers = #tpu.dot_dimension_numbers<[1], [0], [0], [1], [0, 0, 1, 1], [], []>} : vector<16x32xbf16>, vector<32x32xbf16>, vector<16x32xf32> -> vector<16x32xf32>
    %112 = vector.broadcast %28 : vector<1x32xf32> to vector<16x32xf32>
    %113 = arith.addf %111, %112 : vector<16x32xf32>
    %114 = arith.addf %3, %113 : vector<16x32xf32>
    %115 = vector.extract_strided_slice %8 {offsets = [0, 0, 0], sizes = [1, 1, 32], strides = [1, 1, 1]} : vector<3x1x32xf32> to vector<1x1x32xf32>
    %116 = vector.shape_cast %115 : vector<1x1x32xf32> to vector<1x32xf32>
    %117 = vector.extract_strided_slice %10 {offsets = [0, 0, 0], sizes = [1, 1, 32], strides = [1, 1, 1]} : vector<3x1x32xf32> to vector<1x1x32xf32>
    %118 = vector.shape_cast %117 : vector<1x1x32xf32> to vector<1x32xf32>
    %cst_50 = arith.constant dense<0.000000e+00> : vector<16xf32>
    %119 = vector.multi_reduction <add>, %114, %cst_50 [1] : vector<16x32xf32> to vector<16xf32>
    %120 = vector.shape_cast %119 : vector<16xf32> to vector<16x1xf32>
    %cst_51 = arith.constant 3.200000e+01 : f32
    %121 = vector.broadcast %cst_51 : f32 to vector<16x1xf32>
    %122 = arith.divf %120, %121 : vector<16x1xf32>
    %123 = vector.broadcast %122 : vector<16x1xf32> to vector<16x32xf32>
    %124 = arith.subf %114, %123 : vector<16x32xf32>
    %125 = arith.mulf %124, %124 : vector<16x32xf32>
    %cst_52 = arith.constant dense<0.000000e+00> : vector<16xf32>
    %126 = vector.multi_reduction <add>, %125, %cst_52 [1] : vector<16x32xf32> to vector<16xf32>
    %127 = vector.shape_cast %126 : vector<16xf32> to vector<16x1xf32>
    %cst_53 = arith.constant 3.200000e+01 : f32
    %128 = vector.broadcast %cst_53 : f32 to vector<16x1xf32>
    %129 = arith.divf %127, %128 : vector<16x1xf32>
    %130 = vector.broadcast %122 : vector<16x1xf32> to vector<16x32xf32>
    %131 = arith.subf %114, %130 : vector<16x32xf32>
    %cst_54 = arith.constant 9.99999997E-7 : f32
    %132 = vector.broadcast %cst_54 : f32 to vector<16x1xf32>
    %133 = arith.addf %129, %132 : vector<16x1xf32>
    %134 = math.rsqrt %133 : vector<16x1xf32>
    %135 = vector.broadcast %134 : vector<16x1xf32> to vector<16x32xf32>
    %136 = arith.mulf %131, %135 : vector<16x32xf32>
    %137 = vector.broadcast %116 : vector<1x32xf32> to vector<16x32xf32>
    %138 = arith.mulf %136, %137 : vector<16x32xf32>
    %139 = vector.broadcast %118 : vector<1x32xf32> to vector<16x32xf32>
    %140 = arith.addf %138, %139 : vector<16x32xf32>
    %141 = arith.truncf %140 : vector<16x32xf32> to vector<16x32xbf16>
    %c0_55 = arith.constant 0 : index
    %c0_56 = arith.constant 0 : index
    %c0_57 = arith.constant 0 : index
    %142 = vector.load %arg9[%c0_55, %c0_56, %c0_57] : memref<1x32x32xbf16, #tpu.memory_space<vmem>>, vector<1x32x32xbf16>
    %143 = vector.shape_cast %142 : vector<1x32x32xbf16> to vector<32x32xbf16>
    %cst_58 = arith.constant dense<0.000000e+00> : vector<16x32xf32>
    %144 = tpu.matmul %141, %143, %cst_58 {dimension_numbers = #tpu.dot_dimension_numbers<[1], [0], [0], [1], [0, 0, 1, 1], [], []>} : vector<16x32xbf16>, vector<32x32xbf16>, vector<16x32xf32> -> vector<16x32xf32>
    %c0_59 = arith.constant 0 : index
    %c0_60 = arith.constant 0 : index
    %c0_61 = arith.constant 0 : index
    %145 = vector.load %arg10[%c0_59, %c0_60, %c0_61] : memref<1x1x32xf32, #tpu.memory_space<vmem>>, vector<1x1x32xf32>
    %146 = vector.shape_cast %145 : vector<1x1x32xf32> to vector<1x32xf32>
    %147 = vector.broadcast %146 : vector<1x32xf32> to vector<16x32xf32>
    %148 = arith.addf %144, %147 : vector<16x32xf32>
    %149 = arith.truncf %148 : vector<16x32xf32> to vector<16x32xbf16>
    %c0_62 = arith.constant 0 : index
    %c0_63 = arith.constant 0 : index
    %c0_64 = arith.constant 0 : index
    %150 = vector.load %arg11[%c0_62, %c0_63, %c0_64] : memref<1x32x64xbf16, #tpu.memory_space<vmem>>, vector<1x32x64xbf16>
    %151 = vector.shape_cast %150 : vector<1x32x64xbf16> to vector<32x64xbf16>
    %cst_65 = arith.constant dense<0.000000e+00> : vector<32x64xf32>
    %152 = tpu.matmul %4, %151, %cst_65 {dimension_numbers = #tpu.dot_dimension_numbers<[1], [0], [0], [1], [0, 0, 1, 1], [], []>} : vector<32x32xbf16>, vector<32x64xbf16>, vector<32x64xf32> -> vector<32x64xf32>
    %c0_66 = arith.constant 0 : index
    %c0_67 = arith.constant 0 : index
    %c0_68 = arith.constant 0 : index
    %153 = vector.load %arg12[%c0_66, %c0_67, %c0_68] : memref<1x1x64xf32, #tpu.memory_space<vmem>>, vector<1x1x64xf32>
    %154 = vector.shape_cast %153 : vector<1x1x64xf32> to vector<1x64xf32>
    %155 = vector.broadcast %154 : vector<1x64xf32> to vector<32x64xf32>
    %156 = arith.addf %152, %155 : vector<32x64xf32>
    %157 = vector.extract_strided_slice %156 {offsets = [0, 0], sizes = [32, 32], strides = [1, 1]} : vector<32x64xf32> to vector<32x32xf32>
    %158 = arith.truncf %157 : vector<32x32xf32> to vector<32x32xbf16>
    %159 = vector.extract_strided_slice %156 {offsets = [0, 32], sizes = [32, 32], strides = [1, 1]} : vector<32x64xf32> to vector<32x32xf32>
    %160 = arith.truncf %159 : vector<32x32xf32> to vector<32x32xbf16>
    %c0_69 = arith.constant 0 : index
    %c0_70 = arith.constant 0 : index
    %c0_71 = arith.constant 0 : index
    %161 = vector.load %arg13[%c0_69, %c0_70, %c0_71] : memref<1x32x32xbf16, #tpu.memory_space<vmem>>, vector<1x32x32xbf16>
    %162 = vector.shape_cast %161 : vector<1x32x32xbf16> to vector<32x32xbf16>
    %c0_72 = arith.constant 0 : index
    %c0_73 = arith.constant 0 : index
    %c0_74 = arith.constant 0 : index
    %163 = vector.load %arg14[%c0_72, %c0_73, %c0_74] : memref<1x1x32xf32, #tpu.memory_space<vmem>>, vector<1x1x32xf32>
    %164 = vector.shape_cast %163 : vector<1x1x32xf32> to vector<1x32xf32>
    %165 = vector.shape_cast %149 : vector<16x32xbf16> to vector<2x8x32xbf16>
    %166 = vector.shape_cast %158 : vector<32x32xbf16> to vector<2x16x32xbf16>
    %167 = vector.shape_cast %160 : vector<32x32xbf16> to vector<2x16x32xbf16>
    %168 = vector.extract_strided_slice %165 {offsets = [0, 0, 0], sizes = [2, 8, 8], strides = [1, 1, 1]} : vector<2x8x32xbf16> to vector<2x8x8xbf16>
    %169 = vector.extract_strided_slice %166 {offsets = [0, 0, 0], sizes = [2, 16, 8], strides = [1, 1, 1]} : vector<2x16x32xbf16> to vector<2x16x8xbf16>
    "tpu.trace_start"() <{level = 10 : i32, message = "bqd,bkd->bqk"}> : () -> ()
    %cst_75 = arith.constant dense<0.000000e+00> : vector<2x8x16xf32>
    %170 = tpu.matmul %168, %169, %cst_75 {dimension_numbers = #tpu.dot_dimension_numbers<[2], [2], [1], [1], [0, 0, 0, 1, 1, 1], [0], [0]>} : vector<2x8x8xbf16>, vector<2x16x8xbf16>, vector<2x8x16xf32> -> vector<2x8x16xf32>
    "tpu.trace_stop"() : () -> ()
    %171 = arith.addf %170, %6 : vector<2x8x16xf32>
    %cst_76 = arith.constant dense<0xFF800000> : vector<2x8xf32>
    %172 = vector.multi_reduction <maximumf>, %171, %cst_76 [2] : vector<2x8x16xf32> to vector<2x8xf32>
    %173 = vector.shape_cast %172 : vector<2x8xf32> to vector<2x8x1xf32>
    %174 = vector.broadcast %173 : vector<2x8x1xf32> to vector<2x8x16xf32>
    %175 = arith.subf %171, %174 : vector<2x8x16xf32>
    %176 = math.exp %175 : vector<2x8x16xf32>
    %cst_77 = arith.constant dense<0.000000e+00> : vector<2x8xf32>
    %177 = vector.multi_reduction <add>, %176, %cst_77 [2] : vector<2x8x16xf32> to vector<2x8xf32>
    %178 = vector.shape_cast %177 : vector<2x8xf32> to vector<2x8x1xf32>
    %179 = tpu.reciprocal %178 : vector<2x8x1xf32> -> vector<2x8x1xf32>
    %180 = vector.broadcast %179 : vector<2x8x1xf32> to vector<2x8x16xf32>
    %181 = arith.mulf %176, %180 : vector<2x8x16xf32>
    %182 = vector.shape_cast %181 : vector<2x8x16xf32> to vector<16x16xf32>
    %183 = arith.truncf %181 : vector<2x8x16xf32> to vector<2x8x16xbf16>
    %184 = vector.extract_strided_slice %167 {offsets = [0, 0, 0], sizes = [2, 16, 8], strides = [1, 1, 1]} : vector<2x16x32xbf16> to vector<2x16x8xbf16>
    "tpu.trace_start"() <{level = 10 : i32, message = "bqk,bkd->bqd"}> : () -> ()
    %cst_78 = arith.constant dense<0.000000e+00> : vector<2x8x8xf32>
    %185 = tpu.matmul %183, %184, %cst_78 {dimension_numbers = #tpu.dot_dimension_numbers<[2], [1], [1], [2], [0, 0, 0, 1, 1, 2], [0], [0]>} : vector<2x8x16xbf16>, vector<2x16x8xbf16>, vector<2x8x8xf32> -> vector<2x8x8xf32>
    "tpu.trace_stop"() : () -> ()
    %186 = vector.extract_strided_slice %165 {offsets = [0, 0, 8], sizes = [2, 8, 8], strides = [1, 1, 1]} : vector<2x8x32xbf16> to vector<2x8x8xbf16>
    %187 = vector.extract_strided_slice %166 {offsets = [0, 0, 8], sizes = [2, 16, 8], strides = [1, 1, 1]} : vector<2x16x32xbf16> to vector<2x16x8xbf16>
    "tpu.trace_start"() <{level = 10 : i32, message = "bqd,bkd->bqk"}> : () -> ()
    %cst_79 = arith.constant dense<0.000000e+00> : vector<2x8x16xf32>
    %188 = tpu.matmul %186, %187, %cst_79 {dimension_numbers = #tpu.dot_dimension_numbers<[2], [2], [1], [1], [0, 0, 0, 1, 1, 1], [0], [0]>} : vector<2x8x8xbf16>, vector<2x16x8xbf16>, vector<2x8x16xf32> -> vector<2x8x16xf32>
    "tpu.trace_stop"() : () -> ()
    %189 = arith.addf %188, %6 : vector<2x8x16xf32>
    %cst_80 = arith.constant dense<0xFF800000> : vector<2x8xf32>
    %190 = vector.multi_reduction <maximumf>, %189, %cst_80 [2] : vector<2x8x16xf32> to vector<2x8xf32>
    %191 = vector.shape_cast %190 : vector<2x8xf32> to vector<2x8x1xf32>
    %192 = vector.broadcast %191 : vector<2x8x1xf32> to vector<2x8x16xf32>
    %193 = arith.subf %189, %192 : vector<2x8x16xf32>
    %194 = math.exp %193 : vector<2x8x16xf32>
    %cst_81 = arith.constant dense<0.000000e+00> : vector<2x8xf32>
    %195 = vector.multi_reduction <add>, %194, %cst_81 [2] : vector<2x8x16xf32> to vector<2x8xf32>
    %196 = vector.shape_cast %195 : vector<2x8xf32> to vector<2x8x1xf32>
    %197 = tpu.reciprocal %196 : vector<2x8x1xf32> -> vector<2x8x1xf32>
    %198 = vector.broadcast %197 : vector<2x8x1xf32> to vector<2x8x16xf32>
    %199 = arith.mulf %194, %198 : vector<2x8x16xf32>
    %200 = vector.shape_cast %199 : vector<2x8x16xf32> to vector<16x16xf32>
    %201 = arith.truncf %199 : vector<2x8x16xf32> to vector<2x8x16xbf16>
    %202 = vector.extract_strided_slice %167 {offsets = [0, 0, 8], sizes = [2, 16, 8], strides = [1, 1, 1]} : vector<2x16x32xbf16> to vector<2x16x8xbf16>
    "tpu.trace_start"() <{level = 10 : i32, message = "bqk,bkd->bqd"}> : () -> ()
    %cst_82 = arith.constant dense<0.000000e+00> : vector<2x8x8xf32>
    %203 = tpu.matmul %201, %202, %cst_82 {dimension_numbers = #tpu.dot_dimension_numbers<[2], [1], [1], [2], [0, 0, 0, 1, 1, 2], [0], [0]>} : vector<2x8x16xbf16>, vector<2x16x8xbf16>, vector<2x8x8xf32> -> vector<2x8x8xf32>
    "tpu.trace_stop"() : () -> ()
    %204 = vector.extract_strided_slice %165 {offsets = [0, 0, 16], sizes = [2, 8, 8], strides = [1, 1, 1]} : vector<2x8x32xbf16> to vector<2x8x8xbf16>
    %205 = vector.extract_strided_slice %166 {offsets = [0, 0, 16], sizes = [2, 16, 8], strides = [1, 1, 1]} : vector<2x16x32xbf16> to vector<2x16x8xbf16>
    "tpu.trace_start"() <{level = 10 : i32, message = "bqd,bkd->bqk"}> : () -> ()
    %cst_83 = arith.constant dense<0.000000e+00> : vector<2x8x16xf32>
    %206 = tpu.matmul %204, %205, %cst_83 {dimension_numbers = #tpu.dot_dimension_numbers<[2], [2], [1], [1], [0, 0, 0, 1, 1, 1], [0], [0]>} : vector<2x8x8xbf16>, vector<2x16x8xbf16>, vector<2x8x16xf32> -> vector<2x8x16xf32>
    "tpu.trace_stop"() : () -> ()
    %207 = arith.addf %206, %6 : vector<2x8x16xf32>
    %cst_84 = arith.constant dense<0xFF800000> : vector<2x8xf32>
    %208 = vector.multi_reduction <maximumf>, %207, %cst_84 [2] : vector<2x8x16xf32> to vector<2x8xf32>
    %209 = vector.shape_cast %208 : vector<2x8xf32> to vector<2x8x1xf32>
    %210 = vector.broadcast %209 : vector<2x8x1xf32> to vector<2x8x16xf32>
    %211 = arith.subf %207, %210 : vector<2x8x16xf32>
    %212 = math.exp %211 : vector<2x8x16xf32>
    %cst_85 = arith.constant dense<0.000000e+00> : vector<2x8xf32>
    %213 = vector.multi_reduction <add>, %212, %cst_85 [2] : vector<2x8x16xf32> to vector<2x8xf32>
    %214 = vector.shape_cast %213 : vector<2x8xf32> to vector<2x8x1xf32>
    %215 = tpu.reciprocal %214 : vector<2x8x1xf32> -> vector<2x8x1xf32>
    %216 = vector.broadcast %215 : vector<2x8x1xf32> to vector<2x8x16xf32>
    %217 = arith.mulf %212, %216 : vector<2x8x16xf32>
    %218 = vector.shape_cast %217 : vector<2x8x16xf32> to vector<16x16xf32>
    %219 = arith.truncf %217 : vector<2x8x16xf32> to vector<2x8x16xbf16>
    %220 = vector.extract_strided_slice %167 {offsets = [0, 0, 16], sizes = [2, 16, 8], strides = [1, 1, 1]} : vector<2x16x32xbf16> to vector<2x16x8xbf16>
    "tpu.trace_start"() <{level = 10 : i32, message = "bqk,bkd->bqd"}> : () -> ()
    %cst_86 = arith.constant dense<0.000000e+00> : vector<2x8x8xf32>
    %221 = tpu.matmul %219, %220, %cst_86 {dimension_numbers = #tpu.dot_dimension_numbers<[2], [1], [1], [2], [0, 0, 0, 1, 1, 2], [0], [0]>} : vector<2x8x16xbf16>, vector<2x16x8xbf16>, vector<2x8x8xf32> -> vector<2x8x8xf32>
    "tpu.trace_stop"() : () -> ()
    %222 = vector.extract_strided_slice %165 {offsets = [0, 0, 24], sizes = [2, 8, 8], strides = [1, 1, 1]} : vector<2x8x32xbf16> to vector<2x8x8xbf16>
    %223 = vector.extract_strided_slice %166 {offsets = [0, 0, 24], sizes = [2, 16, 8], strides = [1, 1, 1]} : vector<2x16x32xbf16> to vector<2x16x8xbf16>
    "tpu.trace_start"() <{level = 10 : i32, message = "bqd,bkd->bqk"}> : () -> ()
    %cst_87 = arith.constant dense<0.000000e+00> : vector<2x8x16xf32>
    %224 = tpu.matmul %222, %223, %cst_87 {dimension_numbers = #tpu.dot_dimension_numbers<[2], [2], [1], [1], [0, 0, 0, 1, 1, 1], [0], [0]>} : vector<2x8x8xbf16>, vector<2x16x8xbf16>, vector<2x8x16xf32> -> vector<2x8x16xf32>
    "tpu.trace_stop"() : () -> ()
    %225 = arith.addf %224, %6 : vector<2x8x16xf32>
    %cst_88 = arith.constant dense<0xFF800000> : vector<2x8xf32>
    %226 = vector.multi_reduction <maximumf>, %225, %cst_88 [2] : vector<2x8x16xf32> to vector<2x8xf32>
    %227 = vector.shape_cast %226 : vector<2x8xf32> to vector<2x8x1xf32>
    %228 = vector.broadcast %227 : vector<2x8x1xf32> to vector<2x8x16xf32>
    %229 = arith.subf %225, %228 : vector<2x8x16xf32>
    %230 = math.exp %229 : vector<2x8x16xf32>
    %cst_89 = arith.constant dense<0.000000e+00> : vector<2x8xf32>
    %231 = vector.multi_reduction <add>, %230, %cst_89 [2] : vector<2x8x16xf32> to vector<2x8xf32>
    %232 = vector.shape_cast %231 : vector<2x8xf32> to vector<2x8x1xf32>
    %233 = tpu.reciprocal %232 : vector<2x8x1xf32> -> vector<2x8x1xf32>
    %234 = vector.broadcast %233 : vector<2x8x1xf32> to vector<2x8x16xf32>
    %235 = arith.mulf %230, %234 : vector<2x8x16xf32>
    %236 = vector.shape_cast %235 : vector<2x8x16xf32> to vector<16x16xf32>
    %237 = arith.truncf %235 : vector<2x8x16xf32> to vector<2x8x16xbf16>
    %238 = vector.extract_strided_slice %167 {offsets = [0, 0, 24], sizes = [2, 16, 8], strides = [1, 1, 1]} : vector<2x16x32xbf16> to vector<2x16x8xbf16>
    "tpu.trace_start"() <{level = 10 : i32, message = "bqk,bkd->bqd"}> : () -> ()
    %cst_90 = arith.constant dense<0.000000e+00> : vector<2x8x8xf32>
    %239 = tpu.matmul %237, %238, %cst_90 {dimension_numbers = #tpu.dot_dimension_numbers<[2], [1], [1], [2], [0, 0, 0, 1, 1, 2], [0], [0]>} : vector<2x8x16xbf16>, vector<2x16x8xbf16>, vector<2x8x8xf32> -> vector<2x8x8xf32>
    "tpu.trace_stop"() : () -> ()
    %240 = tpu.concatenate %182, %200, %218, %236 in 1 : vector<16x16xf32>, vector<16x16xf32>, vector<16x16xf32>, vector<16x16xf32> -> vector<16x64xf32>
    %c0_91 = arith.constant 0 : index
    %c0_92 = arith.constant 0 : index
    %c0_93 = arith.constant 0 : index
    %241 = vector.load %arg23[%c0_91, %c0_92, %c0_93] : memref<1x16x64xf32, #tpu.memory_space<vmem>>, vector<1x16x64xf32>
    %242 = vector.shape_cast %241 : vector<1x16x64xf32> to vector<16x64xf32>
    %243 = vector.shape_cast %240 : vector<16x64xf32> to vector<1x16x64xf32>
    tpu.vector_store %arg23[%c0_91, %c0_92, %c0_93], %243 {strides = array<i32>} : memref<1x16x64xf32, #tpu.memory_space<vmem>>, vector<1x16x64xf32>,
    %244 = tpu.concatenate %185, %203, %221, %239 in 2 : vector<2x8x8xf32>, vector<2x8x8xf32>, vector<2x8x8xf32>, vector<2x8x8xf32> -> vector<2x8x32xf32>
    %245 = vector.shape_cast %244 : vector<2x8x32xf32> to vector<16x32xf32>
    %246 = arith.truncf %245 : vector<16x32xf32> to vector<16x32xbf16>
    %cst_94 = arith.constant dense<0.000000e+00> : vector<16x32xf32>
    %247 = tpu.matmul %246, %162, %cst_94 {dimension_numbers = #tpu.dot_dimension_numbers<[1], [0], [0], [1], [0, 0, 1, 1], [], []>} : vector<16x32xbf16>, vector<32x32xbf16>, vector<16x32xf32> -> vector<16x32xf32>
    %248 = vector.broadcast %164 : vector<1x32xf32> to vector<16x32xf32>
    %249 = arith.addf %247, %248 : vector<16x32xf32>
    %250 = arith.addf %140, %249 : vector<16x32xf32>
    %251 = vector.extract_strided_slice %8 {offsets = [1, 0, 0], sizes = [1, 1, 32], strides = [1, 1, 1]} : vector<3x1x32xf32> to vector<1x1x32xf32>
    %252 = vector.shape_cast %251 : vector<1x1x32xf32> to vector<1x32xf32>
    %253 = vector.extract_strided_slice %10 {offsets = [1, 0, 0], sizes = [1, 1, 32], strides = [1, 1, 1]} : vector<3x1x32xf32> to vector<1x1x32xf32>
    %254 = vector.shape_cast %253 : vector<1x1x32xf32> to vector<1x32xf32>
    %cst_95 = arith.constant dense<0.000000e+00> : vector<16xf32>
    %255 = vector.multi_reduction <add>, %250, %cst_95 [1] : vector<16x32xf32> to vector<16xf32>
    %256 = vector.shape_cast %255 : vector<16xf32> to vector<16x1xf32>
    %cst_96 = arith.constant 3.200000e+01 : f32
    %257 = vector.broadcast %cst_96 : f32 to vector<16x1xf32>
    %258 = arith.divf %256, %257 : vector<16x1xf32>
    %259 = vector.broadcast %258 : vector<16x1xf32> to vector<16x32xf32>
    %260 = arith.subf %250, %259 : vector<16x32xf32>
    %261 = arith.mulf %260, %260 : vector<16x32xf32>
    %cst_97 = arith.constant dense<0.000000e+00> : vector<16xf32>
    %262 = vector.multi_reduction <add>, %261, %cst_97 [1] : vector<16x32xf32> to vector<16xf32>
    %263 = vector.shape_cast %262 : vector<16xf32> to vector<16x1xf32>
    %cst_98 = arith.constant 3.200000e+01 : f32
    %264 = vector.broadcast %cst_98 : f32 to vector<16x1xf32>
    %265 = arith.divf %263, %264 : vector<16x1xf32>
    %266 = vector.broadcast %258 : vector<16x1xf32> to vector<16x32xf32>
    %267 = arith.subf %250, %266 : vector<16x32xf32>
    %cst_99 = arith.constant 9.99999997E-7 : f32
    %268 = vector.broadcast %cst_99 : f32 to vector<16x1xf32>
    %269 = arith.addf %265, %268 : vector<16x1xf32>
    %270 = math.rsqrt %269 : vector<16x1xf32>
    %271 = vector.broadcast %270 : vector<16x1xf32> to vector<16x32xf32>
    %272 = arith.mulf %267, %271 : vector<16x32xf32>
    %273 = vector.broadcast %252 : vector<1x32xf32> to vector<16x32xf32>
    %274 = arith.mulf %272, %273 : vector<16x32xf32>
    %275 = vector.broadcast %254 : vector<1x32xf32> to vector<16x32xf32>
    %276 = arith.addf %274, %275 : vector<16x32xf32>
    %277 = arith.truncf %276 : vector<16x32xf32> to vector<16x32xbf16>
    %c0_100 = arith.constant 0 : index
    %c0_101 = arith.constant 0 : index
    %c0_102 = arith.constant 0 : index
    %278 = vector.load %arg15[%c0_100, %c0_101, %c0_102] : memref<1x32x64xbf16, #tpu.memory_space<vmem>>, vector<1x32x64xbf16>
    %279 = vector.shape_cast %278 : vector<1x32x64xbf16> to vector<32x64xbf16>
    %cst_103 = arith.constant dense<0.000000e+00> : vector<16x64xf32>
    %280 = tpu.matmul %277, %279, %cst_103 {dimension_numbers = #tpu.dot_dimension_numbers<[1], [0], [0], [1], [0, 0, 1, 1], [], []>} : vector<16x32xbf16>, vector<32x64xbf16>, vector<16x64xf32> -> vector<16x64xf32>
    %c0_104 = arith.constant 0 : index
    %c0_105 = arith.constant 0 : index
    %c0_106 = arith.constant 0 : index
    %281 = vector.load %arg16[%c0_104, %c0_105, %c0_106] : memref<1x1x64xf32, #tpu.memory_space<vmem>>, vector<1x1x64xf32>
    %282 = vector.shape_cast %281 : vector<1x1x64xf32> to vector<1x64xf32>
    %283 = vector.broadcast %282 : vector<1x64xf32> to vector<16x64xf32>
    %284 = arith.addf %280, %283 : vector<16x64xf32>
    %cst_107 = arith.constant 0.000000e+00 : f32
    %285 = vector.broadcast %cst_107 : f32 to vector<16x64xf32>
    %286 = arith.maximumf %284, %285 : vector<16x64xf32>
    %287 = arith.truncf %286 : vector<16x64xf32> to vector<16x64xbf16>
    %c0_108 = arith.constant 0 : index
    %c0_109 = arith.constant 0 : index
    %c0_110 = arith.constant 0 : index
    %288 = vector.load %arg17[%c0_108, %c0_109, %c0_110] : memref<1x64x32xbf16, #tpu.memory_space<vmem>>, vector<1x64x32xbf16>
    %289 = vector.shape_cast %288 : vector<1x64x32xbf16> to vector<64x32xbf16>
    %cst_111 = arith.constant dense<0.000000e+00> : vector<16x32xf32>
    %290 = tpu.matmul %287, %289, %cst_111 {dimension_numbers = #tpu.dot_dimension_numbers<[1], [0], [0], [1], [0, 0, 1, 1], [], []>} : vector<16x64xbf16>, vector<64x32xbf16>, vector<16x32xf32> -> vector<16x32xf32>
    %c0_112 = arith.constant 0 : index
    %c0_113 = arith.constant 0 : index
    %c0_114 = arith.constant 0 : index
    %291 = vector.load %arg18[%c0_112, %c0_113, %c0_114] : memref<1x1x32xf32, #tpu.memory_space<vmem>>, vector<1x1x32xf32>
    %292 = vector.shape_cast %291 : vector<1x1x32xf32> to vector<1x32xf32>
    %293 = vector.broadcast %292 : vector<1x32xf32> to vector<16x32xf32>
    %294 = arith.addf %290, %293 : vector<16x32xf32>
    %295 = arith.addf %276, %294 : vector<16x32xf32>
    %296 = vector.extract_strided_slice %8 {offsets = [2, 0, 0], sizes = [1, 1, 32], strides = [1, 1, 1]} : vector<3x1x32xf32> to vector<1x1x32xf32>
    %297 = vector.shape_cast %296 : vector<1x1x32xf32> to vector<1x32xf32>
    %298 = vector.extract_strided_slice %10 {offsets = [2, 0, 0], sizes = [1, 1, 32], strides = [1, 1, 1]} : vector<3x1x32xf32> to vector<1x1x32xf32>
    %299 = vector.shape_cast %298 : vector<1x1x32xf32> to vector<1x32xf32>
    %cst_115 = arith.constant dense<0.000000e+00> : vector<16xf32>
    %300 = vector.multi_reduction <add>, %295, %cst_115 [1] : vector<16x32xf32> to vector<16xf32>
    %301 = vector.shape_cast %300 : vector<16xf32> to vector<16x1xf32>
    %cst_116 = arith.constant 3.200000e+01 : f32
    %302 = vector.broadcast %cst_116 : f32 to vector<16x1xf32>
    %303 = arith.divf %301, %302 : vector<16x1xf32>
    %304 = vector.broadcast %303 : vector<16x1xf32> to vector<16x32xf32>
    %305 = arith.subf %295, %304 : vector<16x32xf32>
    %306 = arith.mulf %305, %305 : vector<16x32xf32>
    %cst_117 = arith.constant dense<0.000000e+00> : vector<16xf32>
    %307 = vector.multi_reduction <add>, %306, %cst_117 [1] : vector<16x32xf32> to vector<16xf32>
    %308 = vector.shape_cast %307 : vector<16xf32> to vector<16x1xf32>
    %cst_118 = arith.constant 3.200000e+01 : f32
    %309 = vector.broadcast %cst_118 : f32 to vector<16x1xf32>
    %310 = arith.divf %308, %309 : vector<16x1xf32>
    %311 = vector.broadcast %303 : vector<16x1xf32> to vector<16x32xf32>
    %312 = arith.subf %295, %311 : vector<16x32xf32>
    %cst_119 = arith.constant 9.99999997E-7 : f32
    %313 = vector.broadcast %cst_119 : f32 to vector<16x1xf32>
    %314 = arith.addf %310, %313 : vector<16x1xf32>
    %315 = math.rsqrt %314 : vector<16x1xf32>
    %316 = vector.broadcast %315 : vector<16x1xf32> to vector<16x32xf32>
    %317 = arith.mulf %312, %316 : vector<16x32xf32>
    %318 = vector.broadcast %297 : vector<1x32xf32> to vector<16x32xf32>
    %319 = arith.mulf %317, %318 : vector<16x32xf32>
    %320 = vector.broadcast %299 : vector<1x32xf32> to vector<16x32xf32>
    %321 = arith.addf %319, %320 : vector<16x32xf32>
    %c0_120 = arith.constant 0 : index
    %c0_121 = arith.constant 0 : index
    %322 = vector.load %arg21[%c0_120, %c0_121] : memref<16x32xf32, #tpu.memory_space<vmem>>, vector<16x32xf32>
    tpu.vector_store %arg21[%c0_120, %c0_121], %321 {strides = array<i32>} : memref<16x32xf32, #tpu.memory_space<vmem>>, vector<16x32xf32>,
    return
  }
  func.func @transform_0(%arg0: i32) -> (i32, i32) {
    %c0_i32 = arith.constant 0 : i32
    %c0_i32_0 = arith.constant 0 : i32
    %c0_i32_1 = arith.constant 0 : i32
    return %c0_i32, %c0_i32_0 : i32, i32
  }
  func.func @transform_1(%arg0: i32) -> (i32, i32) {
    %c0_i32 = arith.constant 0 : i32
    %c0_i32_0 = arith.constant 0 : i32
    %c0_i32_1 = arith.constant 0 : i32
    return %c0_i32, %c0_i32_0 : i32, i32
  }
  func.func @transform_2(%arg0: i32) -> (i32, i32, i32) {
    %c0_i32 = arith.constant 0 : i32
    %c0_i32_0 = arith.constant 0 : i32
    %c0_i32_1 = arith.constant 0 : i32
    %c0_i32_2 = arith.constant 0 : i32
    return %c0_i32, %c0_i32_0, %c0_i32_1 : i32, i32, i32
  }
  func.func @transform_3(%arg0: i32) -> (i32, i32, i32) {
    %c0_i32 = arith.constant 0 : i32
    %c0_i32_0 = arith.constant 0 : i32
    %c0_i32_1 = arith.constant 0 : i32
    %c0_i32_2 = arith.constant 0 : i32
    return %c0_i32, %c0_i32_0, %c0_i32_1 : i32, i32, i32
  }
  func.func @transform_4(%arg0: i32) -> (i32, i32, i32) {
    %c0_i32 = arith.constant 0 : i32
    %c0_i32_0 = arith.constant 0 : i32
    %c0_i32_1 = arith.constant 0 : i32
    return %arg0, %c0_i32, %c0_i32_0 : i32, i32, i32
  }
  func.func @transform_5(%arg0: i32) -> (i32, i32, i32) {
    %c0_i32 = arith.constant 0 : i32
    %c0_i32_0 = arith.constant 0 : i32
    %c0_i32_1 = arith.constant 0 : i32
    return %arg0, %c0_i32, %c0_i32_0 : i32, i32, i32
  }
  func.func @transform_6(%arg0: i32) -> (i32, i32, i32) {
    %c0_i32 = arith.constant 0 : i32
    %c0_i32_0 = arith.constant 0 : i32
    %c0_i32_1 = arith.constant 0 : i32
    return %arg0, %c0_i32, %c0_i32_0 : i32, i32, i32
  }
  func.func @transform_7(%arg0: i32) -> (i32, i32, i32) {
    %c0_i32 = arith.constant 0 : i32
    %c0_i32_0 = arith.constant 0 : i32
    %c0_i32_1 = arith.constant 0 : i32
    return %arg0, %c0_i32, %c0_i32_0 : i32, i32, i32
  }
  func.func @transform_8(%arg0: i32) -> (i32, i32, i32) {
    %c0_i32 = arith.constant 0 : i32
    %c0_i32_0 = arith.constant 0 : i32
    %c0_i32_1 = arith.constant 0 : i32
    return %arg0, %c0_i32, %c0_i32_0 : i32, i32, i32
  }
  func.func @transform_9(%arg0: i32) -> (i32, i32, i32) {
    %c0_i32 = arith.constant 0 : i32
    %c0_i32_0 = arith.constant 0 : i32
    %c0_i32_1 = arith.constant 0 : i32
    return %arg0, %c0_i32, %c0_i32_0 : i32, i32, i32
  }
  func.func @transform_10(%arg0: i32) -> (i32, i32, i32) {
    %c0_i32 = arith.constant 0 : i32
    %c0_i32_0 = arith.constant 0 : i32
    %c0_i32_1 = arith.constant 0 : i32
    return %arg0, %c0_i32, %c0_i32_0 : i32, i32, i32
  }
  func.func @transform_11(%arg0: i32) -> (i32, i32, i32) {
    %c0_i32 = arith.constant 0 : i32
    %c0_i32_0 = arith.constant 0 : i32
    %c0_i32_1 = arith.constant 0 : i32
    return %arg0, %c0_i32, %c0_i32_0 : i32, i32, i32
  }
  func.func @transform_12(%arg0: i32) -> (i32, i32, i32) {
    %c0_i32 = arith.constant 0 : i32
    %c0_i32_0 = arith.constant 0 : i32
    %c0_i32_1 = arith.constant 0 : i32
    return %arg0, %c0_i32, %c0_i32_0 : i32, i32, i32
  }
  func.func @transform_13(%arg0: i32) -> (i32, i32, i32) {
    %c0_i32 = arith.constant 0 : i32
    %c0_i32_0 = arith.constant 0 : i32
    %c0_i32_1 = arith.constant 0 : i32
    return %arg0, %c0_i32, %c0_i32_0 : i32, i32, i32
  }
  func.func @transform_14(%arg0: i32) -> (i32, i32, i32) {
    %c0_i32 = arith.constant 0 : i32
    %c0_i32_0 = arith.constant 0 : i32
    %c0_i32_1 = arith.constant 0 : i32
    return %arg0, %c0_i32, %c0_i32_0 : i32, i32, i32
  }
  func.func @transform_15(%arg0: i32) -> (i32, i32, i32) {
    %c0_i32 = arith.constant 0 : i32
    %c0_i32_0 = arith.constant 0 : i32
    %c0_i32_1 = arith.constant 0 : i32
    return %arg0, %c0_i32, %c0_i32_0 : i32, i32, i32
  }
  func.func @transform_16(%arg0: i32) -> (i32, i32, i32) {
    %c0_i32 = arith.constant 0 : i32
    %c0_i32_0 = arith.constant 0 : i32
    %c0_i32_1 = arith.constant 0 : i32
    return %arg0, %c0_i32, %c0_i32_0 : i32, i32, i32
  }
  func.func @transform_17(%arg0: i32) -> (i32, i32, i32) {
    %c0_i32 = arith.constant 0 : i32
    %c0_i32_0 = arith.constant 0 : i32
    %c0_i32_1 = arith.constant 0 : i32
    return %arg0, %c0_i32, %c0_i32_0 : i32, i32, i32
  }
  func.func @transform_18(%arg0: i32) -> (i32, i32, i32, i32) {
    %c0_i32 = arith.constant 0 : i32
    %c0_i32_0 = arith.constant 0 : i32
    %c0_i32_1 = arith.constant 0 : i32
    %c0_i32_2 = arith.constant 0 : i32
    return %arg0, %c0_i32, %c0_i32_0, %c0_i32_1 : i32, i32, i32, i32
  }
  func.func @transform_19(%arg0: i32) -> (i32, i32, i32, i32) {
    %c0_i32 = arith.constant 0 : i32
    %c0_i32_0 = arith.constant 0 : i32
    %c0_i32_1 = arith.constant 0 : i32
    %c0_i32_2 = arith.constant 0 : i32
    return %arg0, %c0_i32, %c0_i32_0, %c0_i32_1 : i32, i32, i32, i32
  }
  func.func @transform_20(%arg0: i32) -> (i32, i32) {
    %c0_i32 = arith.constant 0 : i32
    %c0_i32_0 = arith.constant 0 : i32
    %c0_i32_1 = arith.constant 0 : i32
    return %c0_i32, %c0_i32_0 : i32, i32
  }
  func.func @transform_21(%arg0: i32) -> (i32, i32, i32) {
    %c0_i32 = arith.constant 0 : i32
    %c0_i32_0 = arith.constant 0 : i32
    %c0_i32_1 = arith.constant 0 : i32
    return %arg0, %c0_i32, %c0_i32_0 : i32, i32, i32
  }
  func.func @transform_22(%arg0: i32) -> (i32, i32, i32) {
    %c0_i32 = arith.constant 0 : i32
    %c0_i32_0 = arith.constant 0 : i32
    %c0_i32_1 = arith.constant 0 : i32
    return %arg0, %c0_i32, %c0_i32_0 : i32, i32, i32
  }
}

</mosaic_0001>

<bundles_post_ra>
// kernel: tpu_custom_call.1
= control target key start
LH: loop header
LB: loop body
LE: loop exit
PB: predicated region body
PF: predicated region fallthrough
CT: control target
= control target key end

     0   :  { %s5441_s0 = inlined_call_operand.hbm [shape: f32[16,32], index: 0, kind: input, shape index: {}]   ;;  %s5442_s1 = inlined_call_operand.hbm [shape: bf16[32,32], index: 1, kind: input, shape index: {}]   ;;  %s5443_s2 = inlined_call_operand.hbm [shape: f32[2,8,8], index: 2, kind: input, shape index: {}]   ;;  %s5444_s3 = inlined_call_operand.hbm [shape: f32[2,8,16], index: 3, kind: input, shape index: {}]   ;;  %s5445_s4 = inlined_call_operand.vmem [shape: bf16[2,32,96], index: 4, kind: input, shape index: {}]   ;;  %s5446_s5 = inlined_call_operand.hbm [shape: f32[2,1,96], index: 5, kind: input, shape index: {}]   ;;  %s5447_s6 = inlined_call_operand.vmem [shape: bf16[2,32,32], index: 6, kind: input, shape index: {}]   ;;  %s5448_s7 = inlined_call_operand.hbm [shape: f32[2,1,32], index: 7, kind: input, shape index: {}]   ;;  %s5449_s8 = inlined_call_operand.vmem [shape: bf16[2,32,32], index: 8, kind: input, shape index: {}]   ;;  %s5450_s9 = inlined_call_operand.hbm [shape: f32[2,1,32], index: 9, kind: input, shape index: {}]   ;;  %s5451_s10 = inlined_call_operand.hbm [shape: bf16[2,32,64], index: 10, kind: input, shape index: {}]   ;;  %s5452_s11 = inlined_call_operand.hbm [shape: f32[2,1,64], index: 11, kind: input, shape index: {}]   ;;  %s5453_s12 = inlined_call_operand.hbm [shape: bf16[2,32,32], index: 12, kind: input, shape index: {}]   ;;  %s5454_s13 = inlined_call_operand.hbm [shape: f32[2,1,32], index: 13, kind: input, shape index: {}]   ;;  %s5455_s14 = inlined_call_operand.hbm [shape: bf16[2,32,64], index: 14, kind: input, shape index: {}]   ;;  %s5456_s15 = inlined_call_operand.hbm [shape: f32[2,1,64], index: 15, kind: input, shape index: {}]   ;;  %s5457_s16 = inlined_call_operand.vmem [shape: bf16[2,64,32], index: 16, kind: input, shape index: {}]   ;;  %s5458_s17 = inlined_call_operand.vmem [shape: f32[2,1,32], index: 17, kind: input, shape index: {}]   ;;  %s5459_s18 = inlined_call_operand.vmem [shape: f32[2,3,1,32], index: 18, kind: input, shape index: {}]   ;;  %s5460_s19 = inlined_call_operand.vmem [shape: f32[2,3,1,32], index: 19, kind: input, shape index: {}]   ;;  %s5461_s20 = inlined_call_operand.hbm [shape: f32[16,32], index: 20, kind: output, shape index: {0}]   ;;  %s5462_s21 = inlined_call_operand.hbm [shape: f32[2,16,32], index: 21, kind: output, shape index: {1}]   ;;  %s5463_s22 = inlined_call_operand.hbm [shape: f32[2,16,64], index: 22, kind: output, shape index: {2}]  }
   0x1   :  { %5485 = sst [smem:[#allocation35_spill]] %s5441_s0 }
   0x2   :  { %5486 = sst [smem:[#allocation36_spill]] %s5442_s1 }
   0x3   :  { %5487 = sst [smem:[#allocation37_spill]] %s5443_s2 }
   0x4   :  { %5488 = sst [smem:[#allocation38_spill]] %s5444_s3 }
   0x5   :  { %5489 = sst [smem:[#allocation39_spill]] %s5445_s4 }
   0x6   :  { %5490 = sst [smem:[#allocation40_spill]] %s5446_s5 }
   0x7   :  { %5491 = sst [smem:[#allocation41_spill]] %s5447_s6 }
   0x8   :  { %5492 = sst [smem:[#allocation42_spill]] %s5448_s7 }
   0x9   :  { %5493 = sst [smem:[#allocation43_spill]] %s5449_s8 }
   0xa   :  { %5494 = sst [smem:[#allocation44_spill]] %s5450_s9 }
   0xb   :  { %5495 = sst [smem:[#allocation45_spill]] %s5451_s10 }
   0xc   :  { %5496 = sst [smem:[#allocation46_spill]] %s5452_s11 }
   0xd   :  { %5497 = sst [smem:[#allocation47_spill]] %s5453_s12 }
   0xe   :  { %5498 = sst [smem:[#allocation48_spill]] %s5454_s13 }
   0xf   :  { %5499 = sst [smem:[#allocation49_spill]] %s5455_s14 }
  0x10   :  { %5500 = sst [smem:[#allocation50_spill]] %s5456_s15 }
  0x11   :  { %5501 = sst [smem:[#allocation51_spill]] %s5457_s16 }
  0x12   :  { %5502 = sst [smem:[#allocation52_spill]] %s5458_s17 }
  0x13   :  { %5503 = sst [smem:[#allocation53_spill]] %s5459_s18 }
  0x14   :  { %5504 = sst [smem:[#allocation54_spill]] %s5460_s19 }
  0x15   :  { %5505 = sst [smem:[#allocation55_spill]] %s5461_s20 }
  0x16   :  { %5506 = sst [smem:[#allocation56_spill]] %s5462_s21 }
  0x17   :  { %5507 = sst [smem:[#allocation57_spill]] %s5463_s22 }
  0x18   :  { %28 = vsyncpa [#allocation3], 0 }
  0x19   :  { %29 = vsyncpa [#allocation6], 0 }
  0x1a   :  { %30 = vsyncpa [#allocation9], 0 }
  0x1b   :  { %31 = vsyncpa [#allocation4], 0 }
  0x1c   :  { %32 = vsyncpa [#allocation21], 0 }
  0x1d   :  { %34 = vsyncpa [#allocation21 + $0x1], 0  ;;  %s4474_s3 = smov 0   ;;  %s4476_s28 = smov 0  }
  0x1e   :  { %s4478_s29 = smov 0   ;;  %s4480_s30 = smov 0  }
  0x1f LB: > { %5508 = sst [smem:[#allocation29_spill]] %s4327_s29  ;;  %s4493_s4 = sadd.s32 4294967295, %s4331_s30   ;;  %s4331_s30 = sphi %s4480_s30, %s5570_s30   ;;  %s4327_s29 = sphi %s4478_s29, %s5572_s29   ;;  %s4323_s28 = sphi %s4476_s28, %s5574_s28   ;;  %s4319_s3 = sphi %s4474_s3, %s5573_s3  }
  0x20   : > { %s5465_s0 = sadd.s32 4294967294, %s4331_s30   ;;  %s4497_s23 = sadd.s32 1, %s4331_s30  }
  0x21   : > { %5509 = sst [smem:[#allocation30_spill]] %s4497_s23  ;;  %s157_s1 = sadd.s32 1, %s4327_s29 }
  0x22   : > { %s154_s5 = ssub.s32 %s4331_s30, %s4497_s23  ;;  %p164_p0 = scmp.ne.s32.totalorder %s4327_s29, %s4323_s28 }
  0x23   : > { %p155_p1 = scmp.eq.s32.totalorder %s154_s5, 0  ;;  %p165_p2 = scmp.eq.s32.totalorder %s4331_s30, 0 }
  0x24   : > { %p170_p3 = scmp.ne.s32.totalorder %s4323_s28, %s4319_s3  ;;  %p5476_p4 = scmp.eq.s32.totalorder %s4493_s4, 0 }
  0x25   : > { %s4508_s24 = scalar_select %p155_p1, %s4327_s29, %s157_s1  }
  0x26   : > { %p4510_p5 = por %p165_p2, %p164_p0  ;;  %p4516_p6 = por %p5476_p4, %p170_p3 }
  0x27   : > { %5510 = sst [smem:[#allocation31_spill]] %s4508_s24  ;;  %p5475_p7 = scmp.eq.s32.totalorder %s4493_s4, 1 }
  0x28   : > { %s5512_s25 = scalar_select %p4516_p6, 1, 0 }
  0x29   : > { %p585_p8 = scmp.eq.s32.totalorder %s5465_s0, 1  ;;  %p3338_p9 = scmp.ge.s32.totalorder %s4331_s30, 1 }
  0x2a   : > { %5513 = sst [smem:[#allocation32_spill]] %s5512_s25  ;;  %p618_p10 = scmp.lt.s32.totalorder %s4331_s30, 3 }
  0x2b   : > { %p4527_p11 = por %p5475_p7, %p164_p0  ;;  %p4531_p12 = por %p585_p8, %p170_p3 }
  0x2c   : > { %p4535_p13 = pnand %p3338_p9, %p618_p10  ;;  %s5519_s5 = sld [smem:[#allocation35_spill]] }
  0x2d   : > { %s5514_s26 = scalar_select %p4527_p11, 1, 0 }
  0x2e   : > { %s5516_s2 = scalar_select %p4531_p12, 1, 0 }
  0x2f   : > { %5515 = sst [smem:[#allocation33_spill]] %s5514_s26  ;;  %p3564_p0 = pneg %p4535_p13 }
  0x30   : > { %5517 = sst [smem:[#allocation34_spill]] %s5516_s2  ;;  %s4333_s24 = smov [#allocation2]  }
  0x31   : > { %s631_s23 = sshll.u32 %s4333_s24, 4  ;;  %p4547_p2 = pnand %p3564_p0, %p5476_p4  ;;  %s632_s23 = int_to_ptr.vmem [resolvable:$true] %s631_s23 }
  0x32   : > { %s629_s0 = sshll.u32 %s5519_s5, 4  ;;  %p3616_p8 = scmp.lt.s32.totalorder %s4331_s30, 2  ;;  %s630_s0 = int_to_ptr.hbm [resolvable:$true] %s629_s0 }
  0x33   : > { %s5473_s20 = smov 128   ;;  %s5477_s22 = smov 8  }
  0x34   : > { %3567 = dma.hbm_to_vmem [thread:$0]  (!%p4547_p2), %s630_s0, 256, %s632_s23, [#allocation3], %s5473_s20, %s5473_s20, %s5477_s22  }
  0x35   : > { %p4560_p9 = pnand %p3616_p8, %p4510_p5  ;;  %s695_s24 = sand.u32 1, %s4331_s30  }
  0x36   : > { %s4566_s1 = sand.u32 1, %s4327_s29   ;;  %s5522_s26 = sld [smem:[#allocation40_spill]] }
  0x37   : > { %s698_s18 = scalar_lea.vmem [#allocation10], %s4566_s1  ;;  %s4573_s0 = scalar_lea.sflag [#allocation3], %s695_s24 }
  0x38   : > { %s705_s17 = sshll.u32 %s698_s18, 4  ;;  %p4577_p10 = pneg %p4560_p9  ;;  %s706_s17 = int_to_ptr.vmem [resolvable:$true] %s705_s17 }
  0x3c   : > { %s701_s19 = scalar_lea.hbm %s5522_s26, %s4331_s30 }
  0x3d   : > { %s703_s16 = sshll.u32 %s701_s19, 4  ;;  %s3840_s19 = scalar_lea.hbm %s5522_s26, 2  ;;  %s704_s16 = int_to_ptr.hbm [resolvable:$true] %s703_s16 }
  0x3e   : > { %s3833_s23 = sshra.s32 %s704_s16, 4  ;;  %s3834_s23 = int_to_ptr.hbm [resolvable:$true] %s3833_s23 }
  0x3f   : > { %s3835_s6 = scalar_lea.hbm %s3834_s23, 1  ;;  %p3841_p3 = scmp.lt.s32.totalorder %s3834_s23, %s5522_s26 }
  0x40   : > { %p3836_p5 = scmp.ne.s32.totalorder %s3834_s23, %s3835_s6  ;;  %p3842_p7 = scmp.lt.s32.totalorder %s3840_s19, %s3835_s6 }
  0x42   : > { %p3838_p0 = pnand %p4577_p10, %p3836_p5  ;;  %p3843_p1 = por %p3842_p7, %p3841_p3 }
  0x44   : > { %p3839_p8 = pneg %p3838_p0 }
  0x46   : > { %p3844_p4 = pnand %p3843_p1, %p3839_p8 }
  0x48   : > { %3847 = shalt.err (!%p3844_p4)
}
  0x49   : > { %3580 = dma.hbm_to_vmem [thread:$0]  (!%p4560_p9), %s704_s16, 16, %s706_s17, %s4573_s0  }
  0x4a   : > { %s5524_s7 = sld [smem:[#allocation42_spill]]  ;;  %s723_s18 = scalar_lea.vmem [#allocation11], %s4566_s1 }
  0x4b   : > { %s730_s8 = sshll.u32 %s723_s18, 4  ;;  %s731_s8 = int_to_ptr.vmem [resolvable:$true] %s730_s8 }
  0x50   : > { %s726_s21 = scalar_lea.hbm %s5524_s7, %s4331_s30  ;;  %s3870_s16 = scalar_lea.hbm %s5524_s7, 2 }
  0x51   : > { %s728_s25 = sshll.u32 %s726_s21, 4  ;;  %s729_s25 = int_to_ptr.hbm [resolvable:$true] %s728_s25 }
  0x52   : > { %s3863_s23 = sshra.s32 %s729_s25, 4  ;;  %s3864_s23 = int_to_ptr.hbm [resolvable:$true] %s3863_s23 }
  0x53   : > { %s3865_s6 = scalar_lea.hbm %s3864_s23, 1  ;;  %p3871_p3 = scmp.lt.s32.totalorder %s3864_s23, %s5524_s7 }
  0x54   : > { %p3866_p4 = scmp.ne.s32.totalorder %s3864_s23, %s3865_s6  ;;  %p3872_p5 = scmp.lt.s32.totalorder %s3870_s16, %s3865_s6 }
  0x56   : > { %p3868_p7 = pnand %p3866_p4, %p4577_p10  ;;  %p3873_p0 = por %p3872_p5, %p3871_p3 }
  0x58   : > { %p3869_p1 = pneg %p3868_p7 }
  0x5a   : > { %p3874_p8 = pnand %p3873_p0, %p3869_p1 }
  0x5c   : > { %3877 = shalt.err (!%p3874_p8)
}
  0x5d   : > { %3583 = dma.hbm_to_vmem [thread:$0]  (!%p4560_p9), %s729_s25, 16, %s731_s8, %s4573_s0  }
  0x5e   : > { %s5525_s9 = sld [smem:[#allocation44_spill]]  ;;  %s748_s18 = scalar_lea.vmem [#allocation12], %s4566_s1 }
  0x5f   : > { %s755_s19 = sshll.u32 %s748_s18, 4  ;;  %s756_s19 = int_to_ptr.vmem [resolvable:$true] %s755_s19 }
  0x64   : > { %s751_s21 = scalar_lea.hbm %s5525_s9, %s4331_s30  ;;  %s3900_s8 = scalar_lea.hbm %s5525_s9, 2 }
  0x65   : > { %s753_s5 = sshll.u32 %s751_s21, 4  ;;  %s754_s5 = int_to_ptr.hbm [resolvable:$true] %s753_s5 }
  0x66   : > { %s3893_s23 = sshra.s32 %s754_s5, 4  ;;  %s3894_s23 = int_to_ptr.hbm [resolvable:$true] %s3893_s23 }
  0x67   : > { %s3895_s6 = scalar_lea.hbm %s3894_s23, 1  ;;  %p3901_p3 = scmp.lt.s32.totalorder %s3894_s23, %s5525_s9 }
  0x68   : > { %p3896_p4 = scmp.ne.s32.totalorder %s3894_s23, %s3895_s6  ;;  %p3902_p5 = scmp.lt.s32.totalorder %s3900_s8, %s3895_s6 }
  0x6a   : > { %p3898_p7 = pnand %p3896_p4, %p4577_p10  ;;  %p3903_p0 = por %p3902_p5, %p3901_p3 }
  0x6c   : > { %p3899_p1 = pneg %p3898_p7 }
  0x6e   : > { %p3904_p8 = pnand %p3903_p0, %p3899_p1 }
  0x70   : > { %3907 = shalt.err (!%p3904_p8)
}
  0x71   : > { %3586 = dma.hbm_to_vmem [thread:$0]  (!%p4560_p9), %s754_s5, 16, %s756_s19, %s4573_s0  }
  0x72   : > { %s4625_s22 = sshll.u32 %s4566_s1, 4  ;;  %s4628_s29 = sshll.u32 %s4331_s30, 4 }
  0x73   : > { %s5526_s10 = sld [smem:[#allocation45_spill]]  ;;  %s766_s6 = scalar_lea.vmem [#allocation13], %s4625_s22 }
  0x74   : > { %s774_s16 = sshll.u32 %s766_s6, 4  ;;  %s775_s16 = int_to_ptr.vmem [resolvable:$true] %s774_s16 }
  0x79   : > { %s771_s23 = scalar_lea.hbm %s5526_s10, %s4628_s29  ;;  %s3930_s24 = scalar_lea.hbm %s5526_s10, 32 }
  0x7a   : > { %s772_s17 = sshll.u32 %s771_s23, 4  ;;  %s773_s17 = int_to_ptr.hbm [resolvable:$true] %s772_s17 }
  0x7b   : > { %s3923_s8 = sshra.s32 %s773_s17, 4  ;;  %s3924_s8 = int_to_ptr.hbm [resolvable:$true] %s3923_s8 }
  0x7c   : > { %s3925_s25 = scalar_lea.hbm %s3924_s8, 16  ;;  %p3931_p3 = scmp.lt.s32.totalorder %s3924_s8, %s5526_s10 }
  0x7d   : > { %p3926_p4 = scmp.ne.s32.totalorder %s3924_s8, %s3925_s25  ;;  %p3932_p5 = scmp.lt.s32.totalorder %s3930_s24, %s3925_s25 }
  0x7f   : > { %p3928_p7 = pnand %p3926_p4, %p4577_p10  ;;  %p3933_p0 = por %p3932_p5, %p3931_p3 }
  0x81   : > { %p3929_p1 = pneg %p3928_p7 }
  0x83   : > { %p3934_p8 = pnand %p3933_p0, %p3929_p1 }
  0x85   : > { %3937 = shalt.err (!%p3934_p8)
}
  0x86   : > { %s5482_s21 = smov 64   ;;  %s4337_s18 = smov 4  }
  0x87   : > { %3589 = dma.hbm_to_vmem [thread:$0]  (!%p4560_p9), %s773_s17, 256, %s775_s16, %s4573_s0, %s5482_s21, %s5482_s21, %s4337_s18  }
  0x88   : > { %s5527_s11 = sld [smem:[#allocation46_spill]]  ;;  %s787_s9 = scalar_lea.vmem [#allocation14], %s4566_s1 }
  0x89   : > { %s794_s8 = sshll.u32 %s787_s9, 4  ;;  %s795_s8 = int_to_ptr.vmem [resolvable:$true] %s794_s8 }
  0x8e   : > { %s790_s7 = scalar_lea.hbm %s5527_s11, %s4331_s30  ;;  %s3960_s16 = scalar_lea.hbm %s5527_s11, 2 }
  0x8f   : > { %s792_s25 = sshll.u32 %s790_s7, 4  ;;  %s793_s25 = int_to_ptr.hbm [resolvable:$true] %s792_s25 }
  0x90   : > { %s3953_s19 = sshra.s32 %s793_s25, 4  ;;  %s3954_s19 = int_to_ptr.hbm [resolvable:$true] %s3953_s19 }
  0x91   : > { %s3955_s5 = scalar_lea.hbm %s3954_s19, 1  ;;  %p3961_p3 = scmp.lt.s32.totalorder %s3954_s19, %s5527_s11 }
  0x92   : > { %p3956_p4 = scmp.ne.s32.totalorder %s3954_s19, %s3955_s5  ;;  %p3962_p5 = scmp.lt.s32.totalorder %s3960_s16, %s3955_s5 }
  0x94   : > { %p3958_p7 = pnand %p3956_p4, %p4577_p10  ;;  %p3963_p0 = por %p3962_p5, %p3961_p3 }
  0x96   : > { %p3959_p1 = pneg %p3958_p7 }
  0x98   : > { %p3964_p8 = pnand %p3963_p0, %p3959_p1 }
  0x9a   : > { %3967 = shalt.err (!%p3964_p8)
}
  0x9b   : > { %3592 = dma.hbm_to_vmem [thread:$0]  (!%p4560_p9), %s793_s25, 16, %s795_s8, %s4573_s0  }
  0x9c   : > { %s5528_s12 = sld [smem:[#allocation47_spill]]  ;;  %s805_s7 = scalar_lea.vmem [#allocation15], %s4625_s22 }
  0x9d   : > { %s813_s9 = sshll.u32 %s805_s7, 4  ;;  %s814_s9 = int_to_ptr.vmem [resolvable:$true] %s813_s9 }
  0xa2   : > { %s810_s10 = scalar_lea.hbm %s5528_s12, %s4628_s29  ;;  %s3990_s8 = scalar_lea.hbm %s5528_s12, 32 }
  0xa3   : > { %s811_s24 = sshll.u32 %s810_s10, 4  ;;  %s812_s24 = int_to_ptr.hbm [resolvable:$true] %s811_s24 }
  0xa4   : > { %s3983_s21 = sshra.s32 %s812_s24, 4  ;;  %s3984_s21 = int_to_ptr.hbm [resolvable:$true] %s3983_s21 }
  0xa5   : > { %s3985_s19 = scalar_lea.hbm %s3984_s21, 16  ;;  %p3991_p3 = scmp.lt.s32.totalorder %s3984_s21, %s5528_s12 }
  0xa6   : > { %p3986_p4 = scmp.ne.s32.totalorder %s3984_s21, %s3985_s19  ;;  %p3992_p5 = scmp.lt.s32.totalorder %s3990_s8, %s3985_s19 }
  0xa8   : > { %p3988_p7 = pnand %p3986_p4, %p4577_p10  ;;  %p3993_p0 = por %p3992_p5, %p3991_p3 }
  0xaa   : > { %p3989_p1 = pneg %p3988_p7 }
  0xac   : > { %p3994_p8 = pnand %p3993_p0, %p3989_p1 }
  0xae   : > { %3997 = shalt.err (!%p3994_p8)
}
  0xaf   : > { %s5529_s23 = smov 64   ;;  %s5530_s13 = sld [smem:[#allocation48_spill]] }
  0xb0   : > { %3595 = dma.hbm_to_vmem [thread:$0]  (!%p4560_p9), %s812_s24, 256, %s814_s9, %s4573_s0, %s5529_s23, %s5529_s23, %s4337_s18  }
  0xb1   : > { %s826_s5 = scalar_lea.vmem [#allocation16], %s4566_s1  ;;  %s5531_s25 = sld [smem:[#allocation36_spill]] }
  0xb2   : > { %s833_s21 = sshll.u32 %s826_s5, 4  ;;  %s834_s21 = int_to_ptr.vmem [resolvable:$true] %s833_s21 }
  0xb5   : > { %s829_s7 = scalar_lea.hbm %s5530_s13, %s4331_s30  ;;  %s4020_s6 = scalar_lea.hbm %s5530_s13, 2 }
  0xb6   : > { %s831_s19 = sshll.u32 %s829_s7, 4  ;;  %s832_s19 = int_to_ptr.hbm [resolvable:$true] %s831_s19 }
  0xb7   : > { %s643_s17 = sshll.u32 %s5531_s25, 4  ;;  %s4013_s11 = sshra.s32 %s832_s19, 4  ;;  %s4014_s11 = int_to_ptr.hbm [resolvable:$true] %s4013_s11  ;;  %s644_s17 = int_to_ptr.hbm [resolvable:$true] %s643_s17 }
  0xb8   : > { %s4015_s12 = scalar_lea.hbm %s4014_s11, 1  ;;  %p4021_p3 = scmp.lt.s32.totalorder %s4014_s11, %s5530_s13 }
  0xb9   : > { %p4016_p4 = scmp.ne.s32.totalorder %s4014_s11, %s4015_s12  ;;  %p4022_p5 = scmp.lt.s32.totalorder %s4020_s6, %s4015_s12 }
  0xbb   : > { %p4018_p7 = pnand %p4016_p4, %p4577_p10  ;;  %p4023_p0 = por %p4022_p5, %p4021_p3 }
  0xbd   : > { %p4019_p1 = pneg %p4018_p7 }
  0xbf   : > { %p4024_p8 = pnand %p4023_p0, %p4019_p1 }
  0xc1   : > { %4027 = shalt.err (!%p4024_p8)
}
  0xc2   : > { %3598 = dma.hbm_to_vmem [thread:$0]  (!%p4560_p9), %s832_s19, 16, %s834_s21, %s4573_s0  }
  0xc3   : > { %s4338_s7 = smov [#allocation5]   ;;  %s5532_s14 = sld [smem:[#allocation49_spill]] }
  0xc4   : > { %s645_s16 = sshll.u32 %s4338_s7, 4  ;;  %s844_s9 = scalar_lea.vmem [#allocation17], %s4625_s22  ;;  %s646_s16 = int_to_ptr.vmem [resolvable:$true] %s645_s16 }
  0xc5   : > { %3570 = dma.hbm_to_vmem [thread:$0]  (!%p4547_p2), %s644_s17, 256, %s646_s16, [#allocation6], %s5529_s23, %s5529_s23, %s4337_s18  }
  0xc6   : > { %s852_s24 = sshll.u32 %s844_s9, 4  ;;  %s853_s24 = int_to_ptr.vmem [resolvable:$true] %s852_s24 }
  0xc9   : > { %s849_s11 = scalar_lea.hbm %s5532_s14, %s4628_s29  ;;  %s4080_s29 = scalar_lea.hbm %s5532_s14, 32 }
  0xca   : > { %s850_s12 = sshll.u32 %s849_s11, 4  ;;  %s851_s12 = int_to_ptr.hbm [resolvable:$true] %s850_s12 }
  0xcb   : > { %s4073_s21 = sshra.s32 %s851_s12, 4  ;;  %s4074_s21 = int_to_ptr.hbm [resolvable:$true] %s4073_s21 }
  0xcc   : > { %s4075_s19 = scalar_lea.hbm %s4074_s21, 16  ;;  %p4081_p3 = scmp.lt.s32.totalorder %s4074_s21, %s5532_s14 }
  0xcd   : > { %p4076_p4 = scmp.ne.s32.totalorder %s4074_s21, %s4075_s19  ;;  %p4082_p5 = scmp.lt.s32.totalorder %s4080_s29, %s4075_s19 }
  0xcf   : > { %p4078_p7 = pnand %p4076_p4, %p4577_p10  ;;  %p4083_p0 = por %p4082_p5, %p4081_p3 }
  0xd1   : > { %p4079_p1 = pneg %p4078_p7 }
  0xd3   : > { %p4084_p8 = pnand %p4083_p0, %p4079_p1 }
  0xd5   : > { %4087 = shalt.err (!%p4084_p8)
}
  0xd6   : > { %3601 = dma.hbm_to_vmem [thread:$0]  (!%p4560_p9), %s851_s12, 256, %s853_s24, %s4573_s0, %s5529_s23, %s5529_s23, %s4337_s18  }
  0xd7   : > { %s5533_s16 = sld [smem:[#allocation37_spill]]  ;;  %s4339_s25 = smov [#allocation7]  }
  0xd8   : > { %s659_s11 = sshll.u32 %s4339_s25, 4  ;;  %s5534_s19 = sld [smem:[#allocation38_spill]]  ;;  %s660_s11 = int_to_ptr.vmem [resolvable:$true] %s659_s11 }
  0xd9   : > { %s5535_s10 = smov 8   ;;  %s5536_s29 = smov 128  }
  0xda   : > { %s4340_s18 = smov [#allocation8]   ;;  %s5537_s15 = sld [smem:[#allocation50_spill]] }
  0xdb   : > { %s673_s23 = sshll.u32 %s4340_s18, 4  ;;  %s865_s22 = scalar_lea.vmem [#allocation18], %s4566_s1  ;;  %s674_s23 = int_to_ptr.vmem [resolvable:$true] %s673_s23 }
  0xdc   : > { %s872_s17 = sshll.u32 %s865_s22, 4  ;;  %s873_s17 = int_to_ptr.vmem [resolvable:$true] %s872_s17 }
  0xdd   : > { %s657_s8 = sshll.u32 %s5533_s16, 4  ;;  %s658_s8 = int_to_ptr.hbm [resolvable:$true] %s657_s8 }
  0xde   : > { %s671_s6 = sshll.u32 %s5534_s19, 4  ;;  %s672_s6 = int_to_ptr.hbm [resolvable:$true] %s671_s6 }
  0xdf   : > { %3573 = dma.hbm_to_vmem [thread:$0]  (!%p4547_p2), %s658_s8, 256, %s660_s11, [#allocation6], %s5536_s29, %s5536_s29, %s5535_s10  }
  0xe0   : > { %s868_s5 = scalar_lea.hbm %s5537_s15, %s4331_s30  ;;  %s4170_s2 = scalar_lea.hbm %s5537_s15, 2 }
  0xe1   : > { %3576 = dma.hbm_to_vmem [thread:$0]  (!%p4547_p2), %s672_s6, 256, %s674_s23, [#allocation9], %s5536_s29, %s5536_s29, %s5535_s10  }
  0xe2   : > { %s870_s7 = sshll.u32 %s868_s5, 4  ;;  %s871_s7 = int_to_ptr.hbm [resolvable:$true] %s870_s7 }
  0xe3   : > { %s4163_s16 = sshra.s32 %s871_s7, 4  ;;  %s4164_s16 = int_to_ptr.hbm [resolvable:$true] %s4163_s16 }
  0xe4   : > { %s4165_s8 = scalar_lea.hbm %s4164_s16, 1  ;;  %p4171_p2 = scmp.lt.s32.totalorder %s4164_s16, %s5537_s15 }
  0xe5   : > { %p4166_p4 = scmp.ne.s32.totalorder %s4164_s16, %s4165_s8  ;;  %p4172_p3 = scmp.lt.s32.totalorder %s4170_s2, %s4165_s8 }
  0xe7   : > { %p4168_p7 = pnand %p4166_p4, %p4577_p10  ;;  %p4173_p5 = por %p4172_p3, %p4171_p2 }
  0xe9   : > { %p4169_p1 = pneg %p4168_p7 }
  0xeb   : > { %p4174_p0 = pnand %p4173_p5, %p4169_p1 }
  0xed   : > { %4177 = shalt.err (!%p4174_p0)
}
  0xee   : > { %3604 = dma.hbm_to_vmem [thread:$0]  (!%p4560_p9), %s871_s7, 16, %s873_s17, %s4573_s0  }
  0xef   : > { %909 = sbr.rel (%p4535_p13) target bundleno = 3914 (0xf4a), region = 100  ;;  %p5538_p10 = scmp.eq.s32.totalorder (!%p4535_p13), %s4493_s4, 0 }
  0xf4   : > { %4294 = dma.done.wait (%p5538_p10), [#allocation3], 256   ;;  %p5539_p8 = pmov %p5538_p10 }
  0xf6   : > { %4296 = vsyncadd (%p5539_p8), [#allocation3], 4294967040  ;;  %p5540_p4 = pmov %p5539_p8 }
  0xf8   : > { %4298 = dma.done.wait (%p5540_p4), [#allocation6], 512   ;;  %p5541_p7 = pmov %p5540_p4 }
  0xf9   : > { %p5542_p1 = pmov %p5540_p4 }
  0xfa   : > { %4300 = vsyncadd (%p5541_p7), [#allocation6], 4294966784 }
  0xfb   : > { %4302 = dma.done.wait (%p5542_p1), [#allocation9], 256   ;;  %p5543_p9 = pmov %p5542_p1 }
  0xfc   : > { %s5484_s27 = sand.u32 1, %s4493_s4   ;;  %s4775_s3 = sand.u32 1, %s4323_s28  }
  0xfd   : > { %4304 = vsyncadd (%p5543_p9), [#allocation9], 4294967040  ;;  %s932_s1 = scalar_lea.sflag [#allocation3], %s5484_s27 }
  0xfe   : > { %4306 = dma.done.wait (%p4516_p6), %s932_s1, 864  }
  0xff   : > { %4308 = vsyncadd (%p4516_p6), %s932_s1, 4294966432  ;;  %s4785_s19 = sshll.u32 %s4775_s3, 4  ;;  %p1141_p13 = scmp.lt.s32.totalorder %s4493_s4, 1 }
 0x100   : > { %s5545_s12 = sld [smem:[#allocation39_spill]]  ;;  %s952_s14 = scalar_lea.vmem [#allocation12], %s4775_s3 }
 0x101   : > { %s4789_s6 = scalar_select %p1141_p13, %s4493_s4, 1 }
 0x102   : > { %s5546_s22 = sld [smem:[#allocation41_spill]]  ;;  %s962_s2 = scalar_lea.vmem [#allocation13], %s4785_s19 }
 0x103   : > { %s3497_s10 = sshll.u32 %s4789_s6, 4  ;;  %s3500_s29 = sshll.u32 %s4789_s6, 5 }
 0x104   : > { %s5547_s25 = sld [smem:[#allocation43_spill]]  ;;  %s3521_s27 = smul.u32 3, %s4789_s6 }
 0x105   : > { %s5548_s21 = sld [smem:[#allocation51_spill]]  ;;  %s981_s9 = scalar_lea.vmem [#allocation15], %s4785_s19 }
 0x106   : > { %s1145_s24 = scalar_lea.vmem %s5545_s12, %s3497_s10  ;;  %s5551_s8 = sld [smem:[#allocation54_spill]] }
 0x107   : > { %s4835_s18 = scalar_lea.vmem [#allocation20], %s4785_s19  ;;  %s4838_s23 = scalar_lea.vmem [#allocation22], %s4785_s19 }
 0x108   : > { %s4799_s17 = scalar_lea.vmem %s5546_s22, %s3497_s10  ;;  %s5550_s22 = sld [smem:[#allocation53_spill]] }
 0x109   : > { %p5552_p6 = scmp.ne.s32.totalorder %s4493_s4, 0 }
 0x10a   : > { %s4804_s11 = scalar_lea.vmem %s5547_s25, %s3497_s10  ;;  %s943_s25 = scalar_lea.vmem [#allocation11], %s4775_s3 }
 0x10b   : > { %s4809_s20 = scalar_lea.vmem %s5548_s21, %s3500_s29  ;;  %s971_s29 = scalar_lea.vmem [#allocation14], %s4775_s3 }
 0x10c   : > { %s4824_s10 = scalar_lea.vmem %s5551_s8, %s3521_s27  ;;  %s990_s21 = scalar_lea.vmem [#allocation16], %s4775_s3 }
 0x10d   : > { %1176 = sbr.rel (%p5552_p6) target bundleno = 277 (0x115), region = 156 }
 0x10e   : > { %s4819_s0 = scalar_lea.vmem %s5550_s22, %s3521_s27 }
 0x112   : > { %v1177_v0 = vld [vmem:[#allocation2] sm:$0xff]  ;;  %vm1179_vm0 = vcmask 261120   ;;  %v1178_v1 = vld [vmem:[#allocation2 + $0x8] sm:$0xff] }
 0x113   : > { %1180 = vst.msk [vmem:[#allocation19] sm:$0xff] %vm1179_vm0, %v1177_v0 }
 0x114   : > { %1181 = vst.msk [vmem:[#allocation19 + $0x8] sm:$0xff] %vm1179_vm0, %v1178_v1 }
 0x115 PF: > { %v3504_v2 = vld [vmem:[%s1145_s24 + $0x8] sm:$0xff]  ;;  %v3503_v3 = vld [vmem:[%s1145_s24] sm:$0xff]  ;;  %vm1219_vm1 = vcmask 261120   ;;  %s5553_s13 = scalar_lea.vmem [#allocation10], %s4775_s3  ;;  %s4341_s27 = smov 120   ;;  %vm1249_vm2 = vcmask 64512  }
 0x116   : > { %1229 = vmatpush.bf16.msra.mxu0 %v3504_v2  ;;  %v3712_v7 = vld [vmem:[%s5553_s13] ss:$0 sm:$0xff]  ;;  %s4342_s24 = smov 88   ;;  %s4343_s5 = smov 96   ;;  %v1189_v49 = vld [vmem:[#allocation7 + $0x8] sm:$0xff]  ;;  %vm1348_vm3 = vcmask 1043456  }
 0x117   : > { %s4344_s7 = smov 112   ;;  %s4345_s22 = smov 80   ;;  %v1188_v40 = vld [vmem:[#allocation7] sm:$0xff] }
 0x118   : > { %s4346_s16 = smov 72   ;;  %s4347_s8 = smov 104  }
 0x119   : > { %s4348_s13 = smov 56   ;;  %s4349_s12 = smov 64  }
 0x11a   : > { %v4842_v4 = vld [vmem:[#allocation19] sm:$0xff]  ;;  %1230 = vmatpush.bf16.msra.mxu0 %v3503_v3  ;;  %s4353_s1 = smov 16   ;;  %s4354_s15 = smov 24  }
 0x11b   : > { %v4844_v5 = vld [vmem:[#allocation19 + $0x8] sm:$0xff] }
 0x11c   : > { %v1198_v6 = vpack.c.bf16 %v4844_v5, %v4842_v4 }
 0x11e   : > { %3380 = vmatmul.msk.bf16.vlgmr.msra.gmra.mxu0 %vm1219_vm1, %v1198_v6 }
 0x19b   : > { %v1232_v8 = vpop.f32.mrf.mxu0 }
 0x19c   : > { %v1233_v9 = vadd.f32 %v3712_v7, %v1232_v8 }
 0x19e   : > { %v1237_v10 = vpack.c.bf16 %v1233_v9, %v1233_v9 }
 0x1a0   : > { %v1245_v11 = vunpack.c.l.b16 %v1237_v10 }
 0x1a2   : > { %v4851_v12 = vpack.c.b16 %v1245_v11, %v1245_v11 }
 0x1a3   : > { %v1234_v13 = vpop.f32.mrf.mxu0 }
 0x1a4   : > { %v1235_v14 = vadd.f32 %v3712_v7, %v1234_v13  ;;  %1386 = vrot.lane.b32.xlu2 %v4851_v12, %s4341_s27  ;;  %1388 = vrot.lane.b32.xlu1 %v4851_v12, %s4342_s24 }
 0x1a5   : > { %1247 = vrot.lane.b32.xlu0 %v4851_v12, %s4343_s5 }
 0x1a6   : > { %v1238_v15 = vpack.c.bf16 %v1235_v14, %v1235_v14 }
 0x1a8   : > { %v1270_v16 = vunpack.c.l.b16 %v1238_v15 }
 0x1aa   : > { %v4859_v17 = vpack.c.b16 %v1270_v16, %v1270_v16 }
 0x1ac   : > { %1409 = vrot.lane.b32.xlu2 %v4859_v17, %s4341_s27  ;;  %1411 = vrot.lane.b32.xlu1 %v4859_v17, %s4342_s24 }
 0x1ad   : > { %1272 = vrot.lane.b32.xlu0 %v4859_v17, %s4343_s5 }
 0x1b4   : > { %1524 = vrot.lane.b32.xlu2 %v4851_v12, %s4344_s7  ;;  %1549 = vrot.lane.b32.xlu1 %v4859_v17, %s4345_s22 }
 0x1b5   : > { %1526 = vrot.lane.b32.xlu0 %v4851_v12, %s4345_s22 }
 0x1bc   : > { %1687 = vrot.lane.b32.xlu2 %v4859_v17, %s4346_s16  ;;  %1664 = vrot.lane.b32.xlu1 %v4851_v12, %s4346_s16 }
 0x1bd   : > { %1547 = vrot.lane.b32.xlu0 %v4859_v17, %s4344_s7 }
 0x1c4   : > { %1685 = vrot.lane.b32.xlu1 %v4859_v17, %s4347_s8 }
 0x1c5   : > { %1662 = vrot.lane.b32.xlu0 %v4851_v12, %s4347_s8 }
 0x1fe   : > { %v1387_v18 = vpop.permute.xlu2 %1386 }
 0x206   : > { %v1410_v23 = vpop.permute.xlu2 %1409 }
 0x20e   : > { %v1525_v28 = vpop.permute.xlu2 %1524 }
 0x216   : > { %v1389_v19 = vpop.permute.xlu1 %1388  ;;  %v1688_v33 = vpop.permute.xlu2 %1687 }
 0x217   : > { %v1248_v20 = vpop.permute.xlu0 %1247  ;;  %v1394_v21 = vsel %vm1249_vm2, %v1389_v19, 0  ;;  %v1693_v36 = vsel %vm1249_vm2, %v1688_v33, 0 }
 0x218   : > { %v1254_v22 = vsel %vm1249_vm2, %v1248_v20, 0  ;;  %1403 = vmatpush.bf16.xpose.msrb.mxu0 %v1394_v21 }
 0x219   : > { %1263 = vmatpush.bf16.xpose.msra.mxu1 %v1254_v22 }
 0x21e   : > { %v1412_v24 = vpop.permute.xlu1 %1411 }
 0x21f   : > { %v1273_v25 = vpop.permute.xlu0 %1272  ;;  %3385 = vmatmul.msk.bf16.vlgmr.msrb.gmra.mxu0 %vm1249_vm2, %v1387_v18  ;;  %v1417_v26 = vsel %vm1249_vm2, %v1412_v24, 0 }
 0x220   : > { %3381 = vmatmul.msk.bf16.vlgmr.msra.gmra.mxu1 %vm1249_vm2, %v1237_v10  ;;  %v1278_v27 = vsel %vm1249_vm2, %v1273_v25, 0 }
 0x221   : > { %1287 = vmatpush.bf16.xpose.msra.mxu2 %v1278_v27  ;;  %1426 = vmatpush.bf16.xpose.msrb.mxu1 %v1417_v26 }
 0x226   : > { %v1550_v29 = vpop.permute.xlu1 %1549 }
 0x227   : > { %v1555_v30 = vsel %vm1249_vm2, %v1550_v29, 0  ;;  %v1527_v31 = vpop.permute.xlu0 %1526 }
 0x228   : > { %v1532_v32 = vsel %vm1249_vm2, %v1527_v31, 0  ;;  %3382 = vmatmul.msk.bf16.vlgmr.msra.gmra.mxu2 %vm1249_vm2, %v1238_v15 }
 0x229   : > { %1564 = vmatpush.bf16.xpose.msra.mxu1 %v1555_v30  ;;  %1541 = vmatpush.bf16.xpose.msra.mxu0 %v1532_v32 }
 0x22e   : > { %v1665_v34 = vpop.permute.xlu1 %1664 }
 0x22f   : > { %v1670_v35 = vsel %vm1249_vm2, %v1665_v34, 0  ;;  %v1548_v37 = vpop.permute.xlu0 %1547 }
 0x230   : > { %3386 = vmatmul.msk.bf16.vlgmr.msrb.gmra.mxu1 %vm1249_vm2, %v1410_v23  ;;  %3389 = vmatmul.msk.bf16.vlgmr.msra.gmra.mxu0 %vm1249_vm2, %v1525_v28 }
 0x231   : > { %1702 = vmatpush.bf16.xpose.msrb.mxu1 %v1693_v36  ;;  %1679 = vmatpush.bf16.xpose.msrb.mxu0 %v1670_v35 }
 0x236   : > { %v1686_v39 = vpop.permute.xlu1 %1685 }
 0x237   : > { %v1663_v38 = vpop.permute.xlu0 %1662 }
 0x240   : > { %3390 = vmatmul.msk.bf16.vlgmr.msra.gmra.mxu1 %vm1249_vm2, %v1548_v37  ;;  %3393 = vmatmul.msk.bf16.vlgmr.msrb.gmra.mxu0 %vm1249_vm2, %v1663_v38 }
 0x250   : > { %3394 = vmatmul.msk.bf16.vlgmr.msrb.gmra.mxu1 %vm1249_vm2, %v1686_v39 }
 0x29c   : > { %v1405_v41 = vpop.f32.mrf.mxu0 }
 0x29d   : > { %v1265_v42 = vpop.f32.mrf.mxu1  ;;  %v1406_v43 = vadd.f32 %v1405_v41, %v1188_v40 }
 0x29e   : > { %v1266_v44 = vadd.f32 %v1265_v42, %v1188_v40 }
 0x29f   : > { %v1432_v45 = vsel %vm1249_vm2, %v1406_v43, -inf }
 0x2a0   : > { %1433 = vmax.xlane.f32.xlu1 %v1432_v45  ;;  %v1293_v46 = vsel %vm1249_vm2, %v1266_v44, -inf }
 0x2a1   : > { %1294 = vmax.xlane.f32.xlu2 %v1293_v46 }
 0x2a4   : > { %v1407_v47 = vpop.f32.mrf.mxu0 }
 0x2a5   : > { %v1267_v48 = vpop.f32.mrf.mxu1 }
 0x2ab   : > { %v1289_v50 = vpop.f32.mrf.mxu2 }
 0x2ac   : > { %v1290_v51 = vadd.f32 %v1289_v50, %v1189_v49 }
 0x2ad   : > { %v1428_v52 = vpop.f32.mrf.mxu1  ;;  %v1543_v53 = vpop.f32.mrf.mxu0 }
 0x2ae   : > { %v1429_v54 = vadd.f32 %v1428_v52, %v1189_v49  ;;  %v4901_v55 = vadd.f32 %v1543_v53, %v1188_v40  ;;  %v1296_v56 = vsel %vm1249_vm2, %v1290_v51, -inf }
 0x2af   : > { %1297 = vmax.xlane.f32.xlu0 %v1296_v56 }
 0x2b0   : > { %v1435_v57 = vsel %vm1249_vm2, %v1429_v54, -inf  ;;  %v1570_v9 = vsel %vm1249_vm2, %v4901_v55, -inf }
 0x2b1   : > { %1436 = vmax.xlane.f32.xlu2 %v1435_v57 }
 0x2b3   : > { %v1291_v58 = vpop.f32.mrf.mxu2 }
 0x2b5   : > { %v1430_v59 = vpop.f32.mrf.mxu1  ;;  %v1545_v60 = vpop.f32.mrf.mxu0 }
 0x2b9   : > { %1503 = vrot.lane.b32.xlu1 %v4859_v17, %s4348_s13 }
 0x2bd   : > { %v1566_v61 = vpop.f32.mrf.mxu1  ;;  %v1681_v62 = vpop.f32.mrf.mxu0 }
 0x2be   : > { %v4906_v63 = vadd.f32 %v1566_v61, %v1189_v49  ;;  %v1682_v10 = vadd.f32 %v1681_v62, %v1188_v40 }
 0x2c0   : > { %v1573_v0 = vsel %vm1249_vm2, %v4906_v63, -inf  ;;  %v1708_v11 = vsel %vm1249_vm2, %v1682_v10, -inf }
 0x2c1   : > { %1574 = vmax.xlane.f32.xlu0 %v1573_v0 }
 0x2c5   : > { %v1568_v1 = vpop.f32.mrf.mxu1  ;;  %v1683_v2 = vpop.f32.mrf.mxu0 }
 0x2c9   : > { %1343 = vrot.lane.b32.xlu2 %v4851_v12, %s4349_s12 }
 0x2cd   : > { %v1704_v3 = vpop.f32.mrf.mxu1 }
 0x2ce   : > { %v1705_v6 = vadd.f32 %v1704_v3, %v1189_v49 }
 0x2d0   : > { %v1711_v7 = vsel %vm1249_vm2, %v1705_v6, -inf }
 0x2d1   : > { %1712 = vmax.xlane.f32.xlu0 %v1711_v7 }
 0x2d5   : > { %v1706_v8 = vpop.f32.mrf.mxu1 }
 0x2e5   : > { %1365 = vrot.lane.b32.xlu0 %v4859_v17, %s4349_s12  ;;  %s4350_s12 = smov 40  }
 0x2f2   : > { %1571 = vmax.xlane.f32.xlu2 %v1570_v9 }
 0x2fa   : > { %1709 = vmax.xlane.f32.xlu2 %v1708_v11 }
 0x312   : > { %1482 = vrot.lane.b32.xlu2 %v4851_v12, %s4348_s13  ;;  %s4351_s13 = smov 48  }
 0x313   : > { %v1434_v13 = vpop.xlane.xlu1 %1433 }
 0x314   : > { %v1438_v14 = vsub.f32 %v1406_v43, %v1434_v13  ;;  %v1295_v15 = vpop.xlane.xlu2 %1294 }
 0x315   : > { %v1299_v16 = vsub.f32 %v1266_v44, %v1295_v15 }
 0x316   : > { %v1440_v18 = vmul.f32 1.442695, %v1438_v14 }
 0x317   : > { %v1301_v19 = vmul.f32 1.442695, %v1299_v16 }
 0x318   : > { %3725 = vpow2.f32 %v1440_v18 }
 0x319   : > { %3727 = vpow2.f32 %v1301_v19 }
 0x31e   : > { %v4917_v20 = vpop.eup %3725 }
 0x31f   : > { %v4919_v21 = vpop.eup %3727  ;;  %v1444_v22 = vsel %vm1249_vm2, %v4917_v20, 0.0 }
 0x320   : > { %v1305_v23 = vsel %vm1249_vm2, %v4919_v21, 0.0  ;;  %1445 = vadd.xlane.f32.xlu0 %v1444_v22 }
 0x321   : > { %1306 = vadd.xlane.f32.xlu1 %v1305_v23 }
 0x322   : > { %v1298_v24 = vpop.xlane.xlu0 %1297 }
 0x323   : > { %v1300_v25 = vsub.f32 %v1290_v51, %v1298_v24 }
 0x324   : > { %v1437_v26 = vpop.xlane.xlu2 %1436 }
 0x325   : > { %v1303_v27 = vmul.f32 1.442695, %v1300_v25  ;;  %v1439_v28 = vsub.f32 %v1429_v54, %v1437_v26 }
 0x327   : > { %3729 = vpow2.f32 %v1303_v27  ;;  %v1442_v29 = vmul.f32 1.442695, %v1439_v28 }
 0x329   : > { %3731 = vpow2.f32 %v1442_v29 }
 0x32b   : > { %v1504_v60 = vpop.permute.xlu1 %1503 }
 0x32c   : > { %v1344_v30 = vpop.permute.xlu2 %1343 }
 0x32d   : > { %v4925_v31 = vpop.eup %3729  ;;  %v1350_v32 = vsel %vm1348_vm3, %v1344_v30, 0 }
 0x32e   : > { %1359 = vmatpush.bf16.msra.mxu3 %v1350_v32  ;;  %v1308_v33 = vsel %vm1249_vm2, %v4925_v31, 0.0 }
 0x32f   : > { %1309 = vadd.xlane.f32.xlu1 %v1308_v33  ;;  %v4930_v34 = vpop.eup %3731 }
 0x330   : > { %v1447_v35 = vsel %vm1249_vm2, %v4930_v34, 0.0 }
 0x334   : > { %v1575_v36 = vpop.xlane.xlu0 %1574 }
 0x335   : > { %v1577_v46 = vsub.f32 %v4906_v63, %v1575_v36 }
 0x337   : > { %1448 = vadd.xlane.f32.xlu1 %v1447_v35  ;;  %v1580_v48 = vmul.f32 1.442695, %v1577_v46 }
 0x344   : > { %v1713_v37 = vpop.xlane.xlu0 %1712 }
 0x345   : > { %v1715_v38 = vsub.f32 %v1705_v6, %v1713_v37 }
 0x347   : > { %v1718_v39 = vmul.f32 1.442695, %v1715_v38 }
 0x349   : > { %3733 = vpow2.f32 %v1718_v39 }
 0x34f   : > { %v4934_v40 = vpop.eup %3733 }
 0x350   : > { %v1723_v41 = vsel %vm1249_vm2, %v4934_v40, 0.0 }
 0x351   : > { %1724 = vadd.xlane.f32.xlu2 %v1723_v41 }
 0x357   : > { %v1366_v42 = vpop.permute.xlu0 %1365 }
 0x358   : > { %v1371_v43 = vsel %vm1348_vm3, %v1366_v42, 0 }
 0x359   : > { %1380 = vmatpush.bf16.msrb.mxu3 %v1371_v43 }
 0x365   : > { %v1572_v44 = vpop.xlane.xlu2 %1571 }
 0x366   : > { %v1576_v45 = vsub.f32 %v4901_v55, %v1572_v44 }
 0x368   : > { %v1578_v47 = vmul.f32 1.442695, %v1576_v45 }
 0x36a   : > { %3735 = vpow2.f32 %v1578_v47 }
 0x36b   : > { %3737 = vpow2.f32 %v1580_v48 }
 0x36d   : > { %v1710_v49 = vpop.xlane.xlu2 %1709 }
 0x36e   : > { %v1714_v50 = vsub.f32 %v1682_v10, %v1710_v49 }
 0x370   : > { %v4941_v51 = vpop.eup %3735  ;;  %v1716_v52 = vmul.f32 1.442695, %v1714_v50 }
 0x371   : > { %v1582_v53 = vsel %vm1249_vm2, %v4941_v51, 0.0  ;;  %v4945_v56 = vpop.eup %3737 }
 0x372   : > { %3739 = vpow2.f32 %v1716_v52  ;;  %1583 = vadd.xlane.f32.xlu1 %v1582_v53  ;;  %v1585_v59 = vsel %vm1249_vm2, %v4945_v56, 0.0 }
 0x375   : > { %v1483_v54 = vpop.permute.xlu2 %1482 }
 0x376   : > { %v1488_v55 = vsel %vm1348_vm3, %v1483_v54, 0 }
 0x377   : > { %1497 = vmatpush.bf16.msrb.mxu2 %v1488_v55 }
 0x378   : > { %v4948_v57 = vpop.eup %3739 }
 0x379   : > { %v1720_v58 = vsel %vm1249_vm2, %v4948_v57, 0.0 }
 0x37a   : > { %1721 = vadd.xlane.f32.xlu0 %v1720_v58  ;;  %1586 = vadd.xlane.f32.xlu1 %v1585_v59 }
 0x38e   : > { %1779 = vrot.lane.b32.xlu0 %v4859_v17, %s4350_s12 }
 0x393   : > { %1620 = vrot.lane.b32.xlu1 %v4851_v12, %s4351_s13  ;;  %v1446_v61 = vpop.xlane.xlu0 %1445 }
 0x394   : > { %v1307_v62 = vpop.xlane.xlu1 %1306  ;;  %3741 = vrcp.f32 %v1446_v61  ;;  %v1461_v7 = vand.u32 2147483648, %v1446_v61  ;;  %v1459_v10 = vand.u32 2147483647, %v1446_v61  ;;  %vm1455_vm6 = vweird.f32 %v1446_v61 }
 0x395   : > { %3743 = vrcp.f32 %v1307_v62  ;;  %v1322_v8 = vand.u32 2147483648, %v1307_v62  ;;  %v1320_v13 = vand.u32 2147483647, %v1307_v62  ;;  %vm1316_vm7 = vweird.f32 %v1307_v62 }
 0x396   : > { %v1462_v16 = vor.u32 1.1754944e-38, %v1461_v7  ;;  %vm1460_vm10 = vcmp.eq.f32.partialorder %v1459_v10, 8.507059e+37 }
 0x397   : > { %vm1321_vm11 = vcmp.eq.f32.partialorder %v1320_v13, 8.507059e+37 }
 0x39a   : > { %v3742_v63 = vpop.eup %3741 }
 0x39b   : > { %v3744_v0 = vpop.eup %3743  ;;  %v1451_v1 = vmul.f32 %v3742_v63, %v1446_v61  ;;  %1641 = vrot.lane.b32.xlu1 %v4859_v17, %s4351_s13  ;;  %vm1456_vm4 = vweird.f32 %v3742_v63  ;;  %v1323_v17 = vor.u32 1.1754944e-38, %v1322_v8 }
 0x39c   : > { %v1312_v2 = vmul.f32 %v3744_v0, %v1307_v62  ;;  %vm1317_vm5 = vweird.f32 %v3744_v0  ;;  %vm1457_vm8 = vmor %vm1455_vm6, %vm1456_vm4 }
 0x39d   : > { %v1452_v3 = vsub.f32 1.0, %v1451_v1  ;;  %vm1318_vm9 = vmor %vm1316_vm7, %vm1317_vm5 }
 0x39e   : > { %v1313_v6 = vsub.f32 1.0, %v1312_v2 }
 0x39f   : > { %v1453_v9 = vmul.f32 %v3742_v63, %v1452_v3 }
 0x3a0   : > { %v1314_v11 = vmul.f32 %v3744_v0, %v1313_v6 }
 0x3a1   : > { %v1454_v14 = vadd.f32 %v3742_v63, %v1453_v9 }
 0x3a2   : > { %v1315_v15 = vadd.f32 %v3744_v0, %v1314_v11  ;;  %v1310_v18 = vpop.xlane.xlu1 %1309 }
 0x3a3   : > { %v1458_v19 = vsel %vm1457_vm8, %v3742_v63, %v1454_v14  ;;  %3745 = vrcp.f32 %v1310_v18  ;;  %1758 = vrot.lane.b32.xlu1 %v4851_v12, %s4350_s12  ;;  %v1509_v12 = vsel %vm1348_vm3, %v1504_v60, 0  ;;  %v1334_v35 = vand.u32 2147483647, %v1310_v18  ;;  %s4352_s12 = smov 8  }
 0x3a4   : > { %v1319_v22 = vsel %vm1318_vm9, %v3744_v0, %v1315_v15  ;;  %v1463_v23 = vsel %vm1460_vm10, %v1462_v16, %v1458_v19  ;;  %vm1330_vm13 = vweird.f32 %v1310_v18 }
 0x3a5   : > { %v1324_v24 = vsel %vm1321_vm11, %v1323_v17, %v1319_v22  ;;  %v4963_v25 = vmul.f32 %v4917_v20, %v1463_v23  ;;  %vm1335_vm15 = vcmp.eq.f32.partialorder %v1334_v35, 8.507059e+37 }
 0x3a6   : > { %v4966_v26 = vmul.f32 %v4919_v21, %v1324_v24  ;;  %v1336_v21 = vand.u32 2147483648, %v1310_v18 }
 0x3a7   : > { %v1480_v27 = vpack.c.bf16 %v4963_v25, %v4963_v25 }
 0x3a8   : > { %v1341_v28 = vpack.c.bf16 %v4966_v26, %v4966_v26  ;;  %v1337_v38 = vor.u32 1.1754944e-38, %v1336_v21 }
 0x3a9   : > { %v3746_v29 = vpop.eup %3745  ;;  %3387 = vmatmul.msk.bf16.vlgmr.msrb.gmra.mxu2 %vm1249_vm2, %v1480_v27 }
 0x3aa   : > { %v1326_v30 = vmul.f32 %v3746_v29, %v1310_v18  ;;  %3383 = vmatmul.msk.bf16.vlgmr.msra.gmra.mxu3 %vm1249_vm2, %v1341_v28  ;;  %v1449_v32 = vpop.xlane.xlu1 %1448  ;;  %vm1331_vm12 = vweird.f32 %v3746_v29 }
 0x3ab   : > { %3747 = vrcp.f32 %v1449_v32  ;;  %1518 = vmatpush.bf16.msra.mxu3 %v1509_v12  ;;  %vm1332_vm14 = vmor %vm1330_vm13, %vm1331_vm12  ;;  %v1475_v48 = vand.u32 2147483648, %v1449_v32  ;;  %vm1469_vm4 = vweird.f32 %v1449_v32  ;;  %v1473_v49 = vand.u32 2147483647, %v1449_v32 }
 0x3ac   : > { %v1327_v20 = vsub.f32 1.0, %v1326_v30 }
 0x3ad   : > { %v1476_v52 = vor.u32 1.1754944e-38, %v1475_v48  ;;  %vm1474_vm6 = vcmp.eq.f32.partialorder %v1473_v49, 8.507059e+37 }
 0x3ae   : > { %v1328_v33 = vmul.f32 %v3746_v29, %v1327_v20 }
 0x3b0   : > { %v1329_v36 = vadd.f32 %v3746_v29, %v1328_v33 }
 0x3b1   : > { %v3748_v37 = vpop.eup %3747 }
 0x3b2   : > { %v1333_v39 = vsel %vm1332_vm14, %v3746_v29, %v1329_v36  ;;  %v1465_v41 = vmul.f32 %v3748_v37, %v1449_v32  ;;  %vm1470_vm0 = vweird.f32 %v3748_v37 }
 0x3b3   : > { %v1338_v42 = vsel %vm1335_vm15, %v1337_v38, %v1333_v39  ;;  %vm1471_vm5 = vmor %vm1469_vm4, %vm1470_vm0 }
 0x3b4   : > { %v1466_v43 = vsub.f32 1.0, %v1465_v41  ;;  %v4976_v44 = vmul.f32 %v4925_v31, %v1338_v42 }
 0x3b6   : > { %v1467_v45 = vmul.f32 %v3748_v37, %v1466_v43  ;;  %v1342_v46 = vpack.c.bf16 %v4976_v44, %v4976_v44 }
 0x3b8   : > { %v1468_v47 = vadd.f32 %v3748_v37, %v1467_v45 }
 0x3ba   : > { %3384 = vmatmul.msk.bf16.vlgmr.msrb.gmra.mxu3 %vm1249_vm2, %v1342_v46  ;;  %v1472_v50 = vsel %vm1471_vm5, %v3748_v37, %v1468_v47 }
 0x3bb   : > { %v1477_v53 = vsel %vm1474_vm6, %v1476_v52, %v1472_v50 }
 0x3bc   : > { %v4982_v54 = vmul.f32 %v4930_v34, %v1477_v53 }
 0x3be   : > { %v1481_v31 = vpack.c.bf16 %v4982_v54, %v4982_v54 }
 0x3c4   : > { %v4987_v2 = vpop.xlane.xlu2 %1724 }
 0x3c5   : > { %v1751_v47 = vand.u32 2147483648, %v4987_v2  ;;  %v1749_v48 = vand.u32 2147483647, %v4987_v2 }
 0x3ca   : > { %3388 = vmatmul.msk.bf16.vlgmr.msra.gmra.mxu3 %vm1249_vm2, %v1481_v31  ;;  %v1752_v31 = vor.u32 1.1754944e-38, %v1751_v47 }
 0x3e5   : > { %v1584_v55 = vpop.xlane.xlu1 %1583 }
 0x3e6   : > { %3749 = vrcp.f32 %v1584_v55  ;;  %v1599_v7 = vand.u32 2147483648, %v1584_v55  ;;  %vm1593_vm8 = vweird.f32 %v1584_v55  ;;  %v1597_v8 = vand.u32 2147483647, %v1584_v55 }
 0x3e8   : > { %v1600_v13 = vor.u32 1.1754944e-38, %v1599_v7  ;;  %vm1598_vm10 = vcmp.eq.f32.partialorder %v1597_v8, 8.507059e+37 }
 0x3ec   : > { %v3750_v58 = vpop.eup %3749 }
 0x3ed   : > { %v1587_v59 = vpop.xlane.xlu1 %1586  ;;  %v1589_v60 = vmul.f32 %v3750_v58, %v1584_v55  ;;  %v1722_v62 = vpop.xlane.xlu0 %1721  ;;  %vm1594_vm7 = vweird.f32 %v3750_v58 }
 0x3ee   : > { %3751 = vrcp.f32 %v1587_v59  ;;  %vm1595_vm9 = vmor %vm1593_vm8, %vm1594_vm7  ;;  %v1613_v17 = vand.u32 2147483648, %v1587_v59  ;;  %vm1607_vm12 = vweird.f32 %v1587_v59  ;;  %v1611_v22 = vand.u32 2147483647, %v1587_v59 }
 0x3ef   : > { %v1590_v61 = vsub.f32 1.0, %v1589_v60  ;;  %3753 = vrcp.f32 %v1722_v62  ;;  %v1737_v21 = vand.u32 2147483648, %v1722_v62  ;;  %vm1731_vm0 = vweird.f32 %v1722_v62 }
 0x3f0   : > { %3755 = vrcp.f32 %v4987_v2  ;;  %v1614_v12 = vor.u32 1.1754944e-38, %v1613_v17  ;;  %vm1612_vm14 = vcmp.eq.f32.partialorder %v1611_v22, 8.507059e+37  ;;  %v1735_v35 = vand.u32 2147483647, %v1722_v62 }
 0x3f1   : > { %v1591_v0 = vmul.f32 %v3750_v58, %v1590_v61  ;;  %v1738_v42 = vor.u32 1.1754944e-38, %v1737_v21  ;;  %vm1745_vm7 = vweird.f32 %v4987_v2 }
 0x3f2   : > { %vm1736_vm5 = vcmp.eq.f32.partialorder %v1735_v35, 8.507059e+37 }
 0x3f3   : > { %v1592_v34 = vadd.f32 %v3750_v58, %v1591_v0 }
 0x3f4   : > { %v3752_v63 = vpop.eup %3751 }
 0x3f5   : > { %v1603_v1 = vmul.f32 %v3752_v63, %v1587_v59  ;;  %v3754_v6 = vpop.eup %3753  ;;  %v1596_v9 = vsel %vm1595_vm9, %v3750_v58, %v1592_v34  ;;  %vm1608_vm11 = vweird.f32 %v3752_v63  ;;  %vm1750_vm9 = vcmp.eq.f32.partialorder %v1749_v48, 8.507059e+37 }
 0x3f6   : > { %v1727_v11 = vmul.f32 %v3754_v6, %v1722_v62  ;;  %v1601_v14 = vsel %vm1598_vm10, %v1600_v13, %v1596_v9  ;;  %v3756_v18 = vpop.eup %3755  ;;  %vm1609_vm13 = vmor %vm1607_vm12, %vm1608_vm11  ;;  %vm1732_vm15 = vweird.f32 %v3754_v6  ;;  %vm1829_vm10 = vcmask 195584  }
 0x3f7   : > { %v1604_v3 = vsub.f32 1.0, %v1603_v1  ;;  %v4991_v19 = vmul.f32 %v4941_v51, %v1601_v14  ;;  %v1741_v24 = vmul.f32 %v3756_v18, %v4987_v2  ;;  %vm1733_vm4 = vmor %vm1731_vm0, %vm1732_vm15  ;;  %vm1746_vm6 = vweird.f32 %v3756_v18 }
 0x3f8   : > { %v1728_v16 = vsub.f32 1.0, %v1727_v11  ;;  %vm1747_vm8 = vmor %vm1745_vm7, %vm1746_vm6  ;;  %v4355_v48 = vmov 32.0  }
 0x3f9   : > { %v1605_v10 = vmul.f32 %v3752_v63, %v1604_v3  ;;  %v1618_v30 = vpack.c.bf16 %v4991_v19, %v4991_v19  ;;  %v1742_v20 = vsub.f32 1.0, %v1741_v24  ;;  %3757 = vrcp.f32 %v4355_v48 }
 0x3fa   : > { %v1729_v28 = vmul.f32 %v3754_v6, %v1728_v16  ;;  %v3506_v16 = vld [vmem:[%s4799_s17 + $0x8] sm:$0xff] }
 0x3fb   : > { %v1606_v15 = vadd.f32 %v3752_v63, %v1605_v10  ;;  %v1743_v38 = vmul.f32 %v3756_v18, %v1742_v20  ;;  %1889 = vmatpush.bf16.msra.mxu0 %v3506_v16 }
 0x3fc   : > { %v1730_v51 = vadd.f32 %v3754_v6, %v1729_v28 }
 0x3fd   : > { %v1610_v27 = vsel %vm1609_vm13, %v3752_v63, %v1606_v15  ;;  %v1744_v46 = vadd.f32 %v3756_v18, %v1743_v38  ;;  %v3713_v38 = vld [vmem:[%s943_s25] ss:$0 sm:$0xff] }
 0x3fe   : > { %v1615_v32 = vsel %vm1612_vm14, %v1614_v12, %v1610_v27  ;;  %v1734_v39 = vsel %vm1733_vm4, %v3754_v6, %v1730_v51 }
 0x3ff   : > { %v4999_v33 = vmul.f32 %v4945_v56, %v1615_v32  ;;  %v1739_v56 = vsel %vm1736_vm5, %v1738_v42, %v1734_v39  ;;  %v1748_v52 = vsel %vm1747_vm8, %v3756_v18, %v1744_v46  ;;  %v3505_v18 = vld [vmem:[%s4799_s17] sm:$0xff] }
 0x400   : > { %v1780_v36 = vpop.permute.xlu0 %1779  ;;  %v5010_v49 = vmul.f32 %v4948_v57, %v1739_v56  ;;  %v1753_v58 = vsel %vm1750_vm9, %v1752_v31, %v1748_v52  ;;  %1890 = vmatpush.bf16.msra.mxu0 %v3505_v18 }
 0x401   : > { %v1785_v43 = vsel %vm1348_vm3, %v1780_v36, 0  ;;  %v1619_v45 = vpack.c.bf16 %v4999_v33, %v4999_v33  ;;  %v5017_v59 = vmul.f32 %v4934_v40, %v1753_v58 }
 0x402   : > { %v1756_v55 = vpack.c.bf16 %v5010_v49, %v5010_v49 }
 0x403   : > { %v1757_v57 = vpack.c.bf16 %v5017_v59, %v5017_v59 }
 0x405   : > { %v1621_v23 = vpop.permute.xlu1 %1620 }
 0x406   : > { %v1626_v29 = vsel %vm1348_vm3, %v1621_v23, 0 }
 0x407   : > { %1635 = vmatpush.bf16.msra.mxu2 %v1626_v29 }
 0x40a   : > { %3391 = vmatmul.msk.bf16.vlgmr.msra.gmra.mxu2 %vm1249_vm2, %v1618_v30 }
 0x40d   : > { %v1642_v37 = vpop.permute.xlu1 %1641 }
 0x40e   : > { %v1647_v41 = vsel %vm1348_vm3, %v1642_v37, 0 }
 0x40f   : > { %1656 = vmatpush.bf16.msrb.mxu3 %v1647_v41 }
 0x412   : > { %3392 = vmatmul.msk.bf16.vlgmr.msrb.gmra.mxu3 %vm1249_vm2, %v1619_v45 }
 0x413   : > { %1794 = vmatpush.bf16.msra.mxu3 %v1785_v43 }
 0x415   : > { %v1759_v50 = vpop.permute.xlu1 %1758 }
 0x416   : > { %v1764_v53 = vsel %vm1348_vm3, %v1759_v50, 0  ;;  %vm1826_vm3 = vcmask 130048   ;;  %v3758_v50 = vpop.eup %3757 }
 0x417   : > { %1773 = vmatpush.bf16.msrb.mxu2 %v1764_v53  ;;  %v1906_v52 = vmul.f32 32.0, %v3758_v50  ;;  %v3510_v53 = vld [vmem:[%s962_s2 + $0x8] sm:$0xff]  ;;  %vm1910_vm11 = vweird.f32 %v3758_v50 }
 0x419   : > { %v1907_v31 = vsub.f32 1.0, %v1906_v52 }
 0x41a   : > { %3395 = vmatmul.msk.bf16.vlgmr.msrb.gmra.mxu2 %vm1249_vm2, %v1756_v55 }
 0x41b   : > { %2042 = vmatpush.bf16.msra.mxu2 %v3510_v53  ;;  %v1908_v55 = vmul.f32 %v3758_v50, %v1907_v31 }
 0x422   : > { %3396 = vmatmul.msk.bf16.vlgmr.msra.gmra.mxu3 %vm1249_vm2, %v1757_v57 }
 0x42c   : > { %v1499_v60 = vpop.f32.mrf.mxu2 }
 0x42d   : > { %v1361_v61 = vpop.f32.mrf.mxu3 }
 0x434   : > { %v1501_v62 = vpop.f32.mrf.mxu2 }
 0x435   : > { %v1363_v63 = vpop.f32.mrf.mxu3 }
 0x43d   : > { %v1382_v0 = vpop.f32.mrf.mxu3 }
 0x445   : > { %v1384_v1 = vpop.f32.mrf.mxu3 }
 0x44d   : > { %v1520_v2 = vpop.f32.mrf.mxu3 }
 0x44e   : > { %v3682_v34 = vpack.i.bf16 %v1520_v2, %v1499_v60 }
 0x450   : > { %3683 = vrot.lane.b32.xlu2 %v3682_v34, %s4352_s12 }
 0x455   : > { %v1522_v3 = vpop.f32.mrf.mxu3 }
 0x456   : > { %v3509_v3 = vld [vmem:[%s962_s2] sm:$0xff]  ;;  %s5557_s2 = sld [smem:[#allocation52_spill]] }
 0x457   : > { %2043 = vmatpush.bf16.msra.mxu2 %v3509_v3  ;;  %v3717_v3 = vld [vmem:[%s952_s14] ss:$0 sm:$0xff]  ;;  %s5554_s14 = scalar_lea.vmem [#allocation17], %s4785_s19  ;;  %s5556_s19 = scalar_lea.vmem [#allocation18], %s4775_s3 }
 0x458   : > { %s5555_s17 = smov %s5554_s14  ;;  %s4356_s3 = smov 32  }
 0x48d   : > { %v1637_v40 = vpop.f32.mrf.mxu2 }
 0x495   : > { %v1639_v6 = vpop.f32.mrf.mxu2  ;;  %v1658_v7 = vpop.f32.mrf.mxu3 }
 0x496   : > { %v3687_v8 = vpack.i.bf16 %v1658_v7, %v1637_v40  ;;  %v3501_v40 = vld [vmem:[#allocation5] sm:$0xff]  ;;  %v3502_v6 = vld [vmem:[#allocation5 + $0x8] sm:$0xff] }
 0x497   : > { %3431 = vmatmul.msk.bf16.vlgmr.msra.gmra.mxu2 %vm1219_vm1, %v3501_v40 }
 0x498   : > { %3688 = vrot.lane.b32.xlu1 %v3687_v8, %s4353_s1  ;;  %v3508_v8 = vld [vmem:[%s4804_s11 + $0x8] sm:$0xff] }
 0x499   : > { %1990 = vmatpush.bf16.msra.mxu1 %v3508_v8 }
 0x49d   : > { %v1660_v9 = vpop.f32.mrf.mxu3  ;;  %v1775_v10 = vpop.f32.mrf.mxu2 }
 0x4a5   : > { %v1777_v11 = vpop.f32.mrf.mxu2  ;;  %v1796_v13 = vpop.f32.mrf.mxu3 }
 0x4a6   : > { %v3692_v14 = vpack.i.bf16 %v1796_v13, %v1775_v10  ;;  %v3507_v11 = vld [vmem:[%s4804_s11] sm:$0xff] }
 0x4a7   : > { %3432 = vmatmul.msk.bf16.gmra.mxu2 %vm1219_vm1, %v3502_v6  ;;  %1991 = vmatpush.bf16.msra.mxu1 %v3507_v11 }
 0x4a8   : > { %3693 = vrot.lane.b32.xlu1 %v3692_v14, %s4354_s15 }
 0x4aa   : > { %v3684_v22 = vpop.permute.xlu2 %3683 }
 0x4ab   : > { %v3686_v23 = vunpack.i.h.bf16 %v3684_v22  ;;  %v3685_v24 = vunpack.i.l.bf16 %v3684_v22 }
 0x4ad   : > { %v1798_v15 = vpop.f32.mrf.mxu3  ;;  %v1859_v12 = vsel %vm1249_vm2, %v1382_v0, %v3686_v23  ;;  %v1858_v30 = vsel %vm1249_vm2, %v1361_v61, %v3685_v24 }
 0x50a   : > { %v3689_v17 = vpop.permute.xlu1 %3688 }
 0x50b   : > { %v3691_v27 = vunpack.i.h.bf16 %v3689_v17  ;;  %v3690_v28 = vunpack.i.l.bf16 %v3689_v17 }
 0x50d   : > { %v1861_v51 = vsel %vm1826_vm3, %v1859_v12, %v3691_v27  ;;  %v1860_v21 = vsel %vm1826_vm3, %v1858_v30, %v3690_v28 }
 0x51a   : > { %v3694_v29 = vpop.permute.xlu1 %3693 }
 0x51b   : > { %v3696_v32 = vunpack.i.h.bf16 %v3694_v29  ;;  %v3695_v20 = vunpack.i.l.bf16 %v3694_v29 }
 0x51d   : > { %v1863_v35 = vsel %vm1829_vm10, %v1861_v51, %v3696_v32  ;;  %v1862_v36 = vsel %vm1829_vm10, %v1860_v21, %v3695_v20  ;;  %v3714_v20 = vld [vmem:[%s4819_s0] ss:$0 sm:$0xff] }
 0x51e   : > { %v1864_v37 = vpack.c.bf16 %v1863_v35, %v1862_v36  ;;  %v3715_v36 = vld [vmem:[%s4824_s10] ss:$0 sm:$0xff] }
 0x520   : > { %3405 = vmatmul.msk.bf16.vlgmr.msra.gmra.mxu0 %vm1219_vm1, %v1864_v37 }
 0x59d   : > { %v1892_v39 = vpop.f32.mrf.mxu0 }
 0x59e   : > { %v1893_v41 = vadd.f32 %v3713_v38, %v1892_v39 }
 0x5a0   : > { %v1897_v42 = vadd.f32 %v1893_v41, %v4842_v4  ;;  %v1909_v4 = vadd.f32 %v3758_v50, %v1908_v55 }
 0x5a2   : > { %v1899_v43 = vsel %vm1219_vm1, %v1897_v42, 0.0  ;;  %v5042_v58 = vsel %vm1910_vm11, %v3758_v50, %v1909_v4 }
 0x5a3   : > { %1900 = vadd.xlane.f32.xlu1 %v1899_v43 }
 0x5a5   : > { %v1894_v45 = vpop.f32.mrf.mxu0 }
 0x5a6   : > { %v1895_v56 = vadd.f32 %v3713_v38, %v1894_v45  ;;  %v3716_v45 = vld [vmem:[%s971_s29] ss:$0 sm:$0xff]  ;;  %s5558_s29 = scalar_lea.vmem %s5557_s2, %s4789_s6 }
 0x5a8   : > { %v1898_v46 = vadd.f32 %v1895_v56, %v4844_v5  ;;  %v2045_v56 = vpop.f32.mrf.mxu2 }
 0x5aa   : > { %v1902_v47 = vsel %vm1219_vm1, %v1898_v46, 0.0 }
 0x5ab   : > { %1903 = vadd.xlane.f32.xlu0 %v1902_v47 }
 0x5b0   : > { %v2047_v48 = vpop.f32.mrf.mxu2 }
 0x5b1   : > { %v2048_v50 = vadd.f32 %v3716_v45, %v2047_v48 }
 0x5b3   : > { %v2056_v53 = vpack.c.bf16 %v2048_v50, %v2048_v50 }
 0x5b5   : > { %v2067_v31 = vunpack.c.l.b16 %v2056_v53 }
 0x5b8   : > { %v2050_v4 = vpop.f32.mrf.mxu2 }
 0x616   : > { %v1901_v57 = vpop.xlane.xlu1 %1900 }
 0x617   : > { %v1912_v5 = vmul.f32 %v5042_v58, %v1901_v57 }
 0x619   : > { %v1914_v60 = vsub.f32 %v1897_v42, %v1912_v5  ;;  %v2051_v5 = vadd.f32 %v3716_v45, %v2050_v4 }
 0x61b   : > { %v1916_v61 = vmul.f32 %v1914_v60, %v1914_v60 }
 0x61d   : > { %v1918_v62 = vsel %vm1219_vm1, %v1916_v61, 0.0  ;;  %v2052_v61 = vpop.f32.mrf.mxu2 }
 0x61e   : > { %v1904_v63 = vpop.xlane.xlu0 %1903  ;;  %1919 = vadd.xlane.f32.xlu2 %v1918_v62  ;;  %v2053_v62 = vadd.f32 %v3716_v45, %v2052_v61 }
 0x61f   : > { %v1913_v0 = vmul.f32 %v5042_v58, %v1904_v63 }
 0x621   : > { %v1915_v1 = vsub.f32 %v1898_v46, %v1913_v0  ;;  %v2046_v46 = vadd.f32 %v3716_v45, %v2045_v56  ;;  %v2058_v0 = vpack.c.bf16 %v2053_v62, %v2053_v62 }
 0x623   : > { %v1917_v2 = vmul.f32 %v1915_v1, %v1915_v1  ;;  %v2055_v47 = vpack.c.bf16 %v2046_v46, %v2046_v46 }
 0x625   : > { %v1921_v34 = vsel %vm1219_vm1, %v1917_v2, 0.0  ;;  %v2066_v52 = vunpack.c.l.b16 %v2055_v47 }
 0x626   : > { %1922 = vadd.xlane.f32.xlu1 %v1921_v34 }
 0x627   : > { %v5067_v55 = vpack.c.b16 %v2067_v31, %v2066_v52 }
 0x629   : > { %v2073_v57 = vsel %vm1249_vm2, %v5067_v55, 0 }
 0x62a   : > { %2082 = vmatpush.bf16.xpose.msrb.mxu3 %v2073_v57 }
 0x63f   : > { %2162 = vrot.lane.b32.xlu1 %v5067_v55, %s4343_s5 }
 0x691   : > { %v1920_v7 = vpop.xlane.xlu2 %1919 }
 0x692   : > { %v1924_v9 = vmul.f32 %v1920_v7, %v5042_v58 }
 0x694   : > { %v1926_v10 = vadd.f32 1e-06, %v1924_v9 }
 0x696   : > { %3759 = vrsqrt.f32 %v1926_v10  ;;  %vm1934_vm13 = vweird.f32 %v1926_v10 }
 0x699   : > { %v1923_v13 = vpop.xlane.xlu1 %1922 }
 0x69a   : > { %v1925_v14 = vmul.f32 %v1923_v13, %v5042_v58 }
 0x69c   : > { %v3760_v15 = vpop.eup %3759  ;;  %v1927_v16 = vadd.f32 1e-06, %v1925_v14 }
 0x69d   : > { %v1929_v18 = vmul.f32 %v3760_v15, %v1926_v10  ;;  %vm1935_vm12 = vweird.f32 %v3760_v15 }
 0x69e   : > { %3761 = vrsqrt.f32 %v1927_v16  ;;  %vm1936_vm14 = vmor %vm1934_vm13, %vm1935_vm12  ;;  %vm1944_vm0 = vweird.f32 %v1927_v16 }
 0x69f   : > { %v1930_v17 = vmul.f32 %v3760_v15, %v1929_v18  ;;  %v5085_v18 = vld [vmem:[#allocation8] sm:$0xff] }
 0x6a1   : > { %v1931_v22 = vmul.f32 0.5, %v1930_v17 }
 0x6a3   : > { %v1932_v23 = vsub.f32 1.5, %v1931_v22  ;;  %v5087_v22 = vld [vmem:[#allocation8 + $0x8] sm:$0xff] }
 0x6a4   : > { %v3762_v24 = vpop.eup %3761 }
 0x6a5   : > { %v1933_v27 = vmul.f32 %v3760_v15, %v1932_v23  ;;  %v1939_v28 = vmul.f32 %v3762_v24, %v1927_v16  ;;  %vm1945_vm15 = vweird.f32 %v3762_v24 }
 0x6a6   : > { %vm1946_vm4 = vmor %vm1944_vm0, %vm1945_vm15 }
 0x6a7   : > { %v1940_v29 = vmul.f32 %v3762_v24, %v1939_v28  ;;  %v1937_v12 = vsel %vm1936_vm14, %v3760_v15, %v1933_v27 }
 0x6a8   : > { %v1948_v51 = vmul.f32 %v1937_v12, %v1914_v60  ;;  %v2057_v60 = vpack.c.bf16 %v2051_v5, %v2051_v5 }
 0x6a9   : > { %v1941_v30 = vmul.f32 0.5, %v1940_v29 }
 0x6aa   : > { %v1953_v37 = vmul.f32 %v3714_v20, %v1948_v51  ;;  %v2090_v63 = vunpack.c.l.b16 %v2057_v60 }
 0x6ab   : > { %v1942_v32 = vsub.f32 1.5, %v1941_v30 }
 0x6ac   : > { %v5058_v41 = vadd.f32 %v3715_v36, %v1953_v37 }
 0x6ad   : > { %v1943_v21 = vmul.f32 %v3762_v24, %v1942_v32 }
 0x6af   : > { %v1947_v35 = vsel %vm1946_vm4, %v3762_v24, %v1943_v21 }
 0x6b0   : > { %v1949_v38 = vmul.f32 %v1947_v35, %v1915_v1  ;;  %v2091_v1 = vunpack.c.l.b16 %v2058_v0 }
 0x6b1   : > { %v2163_v16 = vpop.permute.xlu1 %2162 }
 0x6b2   : > { %v1954_v39 = vmul.f32 %v3714_v20, %v1949_v38  ;;  %v5073_v2 = vpack.c.b16 %v2091_v1, %v2090_v63  ;;  %2175 = vmatpush.bf16.msrb.mxu1 %v2163_v16 }
 0x6b4   : > { %v5060_v42 = vadd.f32 %v3715_v36, %v1954_v39  ;;  %v2097_v34 = vsel %vm1249_vm2, %v5073_v2, 0 }
 0x6b5   : > { %2106 = vmatpush.bf16.xpose.msrb.mxu0 %v2097_v34 }
 0x6b6   : > { %v1960_v43 = vpack.c.bf16 %v5060_v42, %v5058_v41 }
 0x6b8   : > { %3414 = vmatmul.msk.bf16.vlgmr.msra.gmra.mxu1 %vm1219_vm1, %v1960_v43 }
 0x735   : > { %v1993_v40 = vpop.f32.mrf.mxu1 }
 0x736   : > { %v1994_v6 = vadd.f32 %v3717_v3, %v1993_v40 }
 0x738   : > { %v1998_v7 = vpack.c.bf16 %v1994_v6, %v1994_v6 }
 0x73a   : > { %3433 = vmatmul.msk.bf16.vlgmr.msrb.gmra.mxu3 %vm1249_vm2, %v1998_v7  ;;  %v2201_v14 = vunpack.c.l.b16 %v1998_v7 }
 0x73c   : > { %v2202_v15 = vpack.c.b16 %v2201_v14, %v2201_v14 }
 0x73d   : > { %v1995_v8 = vpop.f32.mrf.mxu1 }
 0x73e   : > { %v1996_v9 = vadd.f32 %v3717_v3, %v1995_v8 }
 0x740   : > { %v1999_v10 = vpack.c.bf16 %v1996_v9, %v1996_v9 }
 0x742   : > { %v2227_v11 = vunpack.c.l.b16 %v1999_v10  ;;  %3434 = vmatmul.msk.bf16.vlgmr.msrb.gmra.mxu0 %vm1249_vm2, %v1999_v10 }
 0x744   : > { %v2228_v13 = vpack.c.b16 %v2227_v11, %v2227_v11 }
 0x746   : > { %2229 = vrot.lane.b32.xlu1 %v2228_v13, %s4341_s27 }
 0x74e   : > { %2340 = vrot.lane.b32.xlu1 %v2202_v15, %s4344_s7 }
 0x756   : > { %2499 = vrot.lane.b32.xlu1 %v5073_v2, %s4347_s8 }
 0x7b8   : > { %v2230_v39 = vpop.permute.xlu1 %2229 }
 0x7bd   : > { %v2084_v17 = vpop.f32.mrf.mxu3 }
 0x7be   : > { %v2085_v23 = vadd.f32 %v2084_v17, %v5085_v18 }
 0x7bf   : > { %v2108_v24 = vpop.f32.mrf.mxu0 }
 0x7c0   : > { %v2109_v27 = vadd.f32 %v2108_v24, %v5087_v22  ;;  %v2112_v28 = vsel %vm1826_vm3, %v2085_v23, -inf  ;;  %v2341_v56 = vpop.permute.xlu1 %2340 }
 0x7c1   : > { %2113 = vmax.xlane.f32.xlu0 %v2112_v28 }
 0x7c2   : > { %v2115_v29 = vsel %vm1826_vm3, %v2109_v27, -inf }
 0x7c3   : > { %2116 = vmax.xlane.f32.xlu1 %v2115_v29 }
 0x7c5   : > { %v2086_v12 = vpop.f32.mrf.mxu3 }
 0x7c7   : > { %v2110_v30 = vpop.f32.mrf.mxu0 }
 0x7c8   : > { %v2500_v47 = vpop.permute.xlu1 %2499 }
 0x7c9   : > { %v2505_v24 = vsel %vm1249_vm2, %v2500_v47, 0 }
 0x7d5   : > { %2205 = vrot.lane.b32.xlu0 %v5067_v55, %s4341_s27 }
 0x7dd   : > { %2203 = vrot.lane.b32.xlu0 %v2202_v15, %s4341_s27 }
 0x7e5   : > { %2342 = vrot.lane.b32.xlu0 %v5067_v55, %s4344_s7 }
 0x7ed   : > { %2363 = vrot.lane.b32.xlu0 %v2228_v13, %s4344_s7 }
 0x7f5   : > { %2474 = vrot.lane.b32.xlu0 %v2202_v15, %s4347_s8 }
 0x834   : > { %v2114_v32 = vpop.xlane.xlu0 %2113 }
 0x835   : > { %v2118_v20 = vsub.f32 %v2085_v23, %v2114_v32 }
 0x836   : > { %v2117_v62 = vpop.xlane.xlu1 %2116 }
 0x837   : > { %v2120_v51 = vmul.f32 1.442695, %v2118_v20  ;;  %v2119_v3 = vsub.f32 %v2109_v27, %v2117_v62 }
 0x839   : > { %3763 = vpow2.f32 %v2120_v51  ;;  %v2122_v8 = vmul.f32 1.442695, %v2119_v3 }
 0x83f   : > { %v3764_v21 = vpop.eup %3763 }
 0x840   : > { %v2124_v35 = vsel %vm1826_vm3, %v3764_v21, 0.0 }
 0x841   : > { %2125 = vadd.xlane.f32.xlu2 %v2124_v35 }
 0x847   : > { %v2206_v36 = vpop.permute.xlu0 %2205 }
 0x848   : > { %v2211_v37 = vsel %vm1249_vm2, %v2206_v36, 0 }
 0x849   : > { %2220 = vmatpush.bf16.xpose.msra.mxu0 %v2211_v37 }
 0x84f   : > { %v2204_v38 = vpop.permute.xlu0 %2203 }
 0x850   : > { %3437 = vmatmul.msk.bf16.vlgmr.msra.gmra.mxu0 %vm1249_vm2, %v2204_v38 }
 0x857   : > { %v2343_v43 = vpop.permute.xlu0 %2342 }
 0x858   : > { %v2348_v45 = vsel %vm1249_vm2, %v2343_v43, 0 }
 0x859   : > { %2231 = vrot.lane.b32.xlu2 %v5073_v2, %s4341_s27  ;;  %2357 = vmatpush.bf16.xpose.msrb.mxu0 %v2348_v45  ;;  %s2945_s27 = sshll.u32 %s4835_s18, 4  ;;  %s2946_s27 = int_to_ptr.vmem [resolvable:$true] %s2945_s27 }
 0x85f   : > { %v2364_v6 = vpop.permute.xlu0 %2363 }
 0x860   : > { %3441 = vmatmul.msk.bf16.vlgmr.msrb.gmra.mxu0 %vm1249_vm2, %v2341_v56 }
 0x861   : > { %2365 = vrot.lane.b32.xlu2 %v5073_v2, %s4344_s7 }
 0x867   : > { %v2475_v15 = vpop.permute.xlu0 %2474 }
 0x869   : > { %2476 = vrot.lane.b32.xlu2 %v5067_v55, %s4347_s8 }
 0x871   : > { %2497 = vrot.lane.b32.xlu2 %v2228_v13, %s4347_s8 }
 0x8b4   : > { %v2126_v46 = vpop.xlane.xlu2 %2125 }
 0x8b5   : > { %3765 = vrcp.f32 %v2126_v46  ;;  %v2141_v4 = vand.u32 2147483648, %v2126_v46  ;;  %v2139_v5 = vand.u32 2147483647, %v2126_v46  ;;  %vm2135_vm6 = vweird.f32 %v2126_v46 }
 0x8b6   : > { %3767 = vpow2.f32 %v2122_v8 }
 0x8b7   : > { %v2142_v61 = vor.u32 1.1754944e-38, %v2141_v4  ;;  %vm2140_vm8 = vcmp.eq.f32.partialorder %v2139_v5, 8.507059e+37 }
 0x8bb   : > { %v3766_v48 = vpop.eup %3765 }
 0x8bc   : > { %v2131_v50 = vmul.f32 %v3766_v48, %v2126_v46  ;;  %v2232_v52 = vpop.permute.xlu2 %2231  ;;  %vm2136_vm5 = vweird.f32 %v3766_v48  ;;  %v5122_v16 = vpop.eup %3767 }
 0x8bd   : > { %v2237_v53 = vsel %vm1249_vm2, %v2232_v52, 0  ;;  %vm2137_vm7 = vmor %vm2135_vm6, %vm2136_vm5  ;;  %v2127_v23 = vsel %vm1826_vm3, %v5122_v16, 0.0 }
 0x8be   : > { %v2132_v31 = vsub.f32 1.0, %v2131_v50  ;;  %2246 = vmatpush.bf16.xpose.msra.mxu1 %v2237_v53 }
 0x8c0   : > { %v2133_v57 = vmul.f32 %v3766_v48, %v2132_v31 }
 0x8c2   : > { %v2134_v60 = vadd.f32 %v3766_v48, %v2133_v57 }
 0x8c4   : > { %v2138_v63 = vsel %vm2137_vm7, %v3766_v48, %v2134_v60  ;;  %v2366_v0 = vpop.permute.xlu2 %2365 }
 0x8c5   : > { %v2143_v1 = vsel %vm2140_vm8, %v2142_v61, %v2138_v63  ;;  %v2371_v7 = vsel %vm1249_vm2, %v2366_v0, 0 }
 0x8c6   : > { %v5113_v34 = vmul.f32 %v3764_v21, %v2143_v1 }
 0x8c8   : > { %v2160_v40 = vpack.c.bf16 %v5113_v34, %v5113_v34 }
 0x8ca   : > { %3435 = vmatmul.msk.bf16.vlgmr.msrb.gmra.mxu1 %vm1826_vm3, %v2160_v40 }
 0x8cb   : > { %2380 = vmatpush.bf16.xpose.msrb.mxu1 %v2371_v7 }
 0x8cc   : > { %v2477_v9 = vpop.permute.xlu2 %2476 }
 0x8cd   : > { %v2482_v10 = vsel %vm1249_vm2, %v2477_v9, 0  ;;  %v2222_v11 = vpop.f32.mrf.mxu0 }
 0x8ce   : > { %v2223_v13 = vadd.f32 %v2222_v11, %v5085_v18  ;;  %2491 = vmatpush.bf16.xpose.msra.mxu0 %v2482_v10 }
 0x8d0   : > { %v2252_v14 = vsel %vm1826_vm3, %v2223_v13, -inf }
 0x8d1   : > { %2253 = vmax.xlane.f32.xlu0 %v2252_v14 }
 0x8d4   : > { %v2498_v30 = vpop.permute.xlu2 %2497 }
 0x8d5   : > { %v2224_v17 = vpop.f32.mrf.mxu0  ;;  %3445 = vmatmul.msk.bf16.vlgmr.msra.gmra.mxu0 %vm1249_vm2, %v2475_v15 }
 0x8d9   : > { %2128 = vadd.xlane.f32.xlu0 %v2127_v23 }
 0x8da   : > { %3438 = vmatmul.msk.bf16.vlgmr.msra.gmra.mxu1 %vm1249_vm2, %v2230_v39 }
 0x8db   : > { %2514 = vmatpush.bf16.xpose.msra.mxu1 %v2505_v24 }
 0x8dd   : > { %v2359_v27 = vpop.f32.mrf.mxu0 }
 0x8de   : > { %v2360_v28 = vadd.f32 %v2359_v27, %v5085_v18 }
 0x8e0   : > { %v2386_v29 = vsel %vm1826_vm3, %v2360_v28, -inf }
 0x8e1   : > { %2387 = vmax.xlane.f32.xlu1 %v2386_v29 }
 0x8e5   : > { %v2361_v12 = vpop.f32.mrf.mxu0 }
 0x8ea   : > { %3442 = vmatmul.msk.bf16.vlgmr.msrb.gmra.mxu1 %vm1249_vm2, %v2364_v6 }
 0x8fa   : > { %2321 = vrot.lane.b32.xlu1 %v5073_v2, %s4342_s24  ;;  %3446 = vmatmul.msk.bf16.vlgmr.msra.gmra.mxu1 %vm1249_vm2, %v2498_v30 }
 0x944   : > { %v2254_v21 = vpop.xlane.xlu0 %2253 }
 0x945   : > { %v2258_v37 = vsub.f32 %v2223_v13, %v2254_v21 }
 0x947   : > { %v5135_v32 = vpop.f32.mrf.mxu1  ;;  %v2260_v43 = vmul.f32 1.442695, %v2258_v37 }
 0x949   : > { %3769 = vpow2.f32 %v2260_v43 }
 0x94c   : > { %v2129_v1 = vpop.xlane.xlu0 %2128 }
 0x94d   : > { %vm2149_vm11 = vweird.f32 %v2129_v1 }
 0x94f   : > { %v2179_v20 = vpop.f32.mrf.mxu1  ;;  %v5141_v52 = vpop.eup %3769 }
 0x950   : > { %v2264_v57 = vsel %vm1826_vm3, %v5141_v52, 0.0  ;;  %v2155_v20 = vand.u32 2147483648, %v2129_v1 }
 0x952   : > { %v2493_v51 = vpop.f32.mrf.mxu0 }
 0x953   : > { %v2494_v45 = vadd.f32 %v2493_v51, %v5085_v18 }
 0x954   : > { %v2388_v56 = vpop.xlane.xlu1 %2387 }
 0x955   : > { %v2392_v47 = vsub.f32 %v2360_v28, %v2388_v56  ;;  %v2520_v48 = vsel %vm1826_vm3, %v2494_v45, -inf }
 0x957   : > { %v2248_v35 = vpop.f32.mrf.mxu1  ;;  %v2394_v50 = vmul.f32 1.442695, %v2392_v47 }
 0x958   : > { %v2249_v36 = vadd.f32 %v2248_v35, %v5087_v22 }
 0x959   : > { %3771 = vpow2.f32 %v2394_v50 }
 0x95a   : > { %v2495_v38 = vpop.f32.mrf.mxu0  ;;  %v2255_v39 = vsel %vm1826_vm3, %v2249_v36, -inf  ;;  %3773 = vrcp.f32 %v2129_v1 }
 0x95b   : > { %2256 = vmax.xlane.f32.xlu2 %v2255_v39 }
 0x95f   : > { %v2250_v46 = vpop.f32.mrf.mxu1  ;;  %v5147_v18 = vpop.eup %3771 }
 0x960   : > { %v2398_v60 = vsel %vm1826_vm3, %v5147_v18, 0.0  ;;  %v3774_v7 = vpop.eup %3773 }
 0x961   : > { %v2145_v10 = vmul.f32 %v3774_v7, %v2129_v1  ;;  %vm2150_vm9 = vweird.f32 %v3774_v7 }
 0x962   : > { %vm2151_vm12 = vmor %vm2149_vm11, %vm2150_vm9 }
 0x963   : > { %2521 = vmax.xlane.f32.xlu2 %v2520_v48  ;;  %v2146_v14 = vsub.f32 1.0, %v2145_v10 }
 0x965   : > { %v2147_v27 = vmul.f32 %v3774_v7, %v2146_v14 }
 0x967   : > { %v2382_v53 = vpop.f32.mrf.mxu1  ;;  %v2148_v30 = vadd.f32 %v3774_v7, %v2147_v27 }
 0x968   : > { %v2383_v31 = vadd.f32 %v2382_v53, %v5087_v22 }
 0x969   : > { %v2152_v38 = vsel %vm2151_vm12, %v3774_v7, %v2148_v30 }
 0x96a   : > { %v2389_v4 = vsel %vm1826_vm3, %v2383_v31, -inf }
 0x96b   : > { %2390 = vmax.xlane.f32.xlu0 %v2389_v4  ;;  %2265 = vadd.xlane.f32.xlu2 %v2264_v57 }
 0x96c   : > { %v2322_v51 = vpop.permute.xlu1 %2321 }
 0x96f   : > { %v2384_v5 = vpop.f32.mrf.mxu1 }
 0x973   : > { %2399 = vadd.xlane.f32.xlu2 %v2398_v60 }
 0x977   : > { %v2516_v61 = vpop.f32.mrf.mxu1 }
 0x978   : > { %v5152_v62 = vadd.f32 %v2516_v61, %v5087_v22 }
 0x97a   : > { %v2523_v63 = vsel %vm1826_vm3, %v5152_v62, -inf }
 0x97b   : > { %2524 = vmax.xlane.f32.xlu1 %v2523_v63 }
 0x97f   : > { %v2518_v0 = vpop.f32.mrf.mxu1  ;;  %2181 = vrot.lane.b32.xlu0 %v5073_v2, %s4343_s5  ;;  %s5561_s5 = sand.u32 1, %s4493_s4  }
 0x980   : > { %s5354_s7 = scalar_lea.sflag [#allocation21], %s5561_s5 }
 0x98b   : > { %2302 = vrot.lane.b32.xlu2 %v5067_v55, %s4342_s24 }
 0x9ce   : > { %v2257_v3 = vpop.xlane.xlu2 %2256 }
 0x9cf   : > { %v2259_v40 = vsub.f32 %v2249_v36, %v2257_v3  ;;  %v2153_v36 = vand.u32 2147483647, %v2129_v1 }
 0x9d1   : > { %v2262_v6 = vmul.f32 1.442695, %v2259_v40  ;;  %vm2154_vm14 = vcmp.eq.f32.partialorder %v2153_v36, 8.507059e+37 }
 0x9d3   : > { %3775 = vpow2.f32 %v2262_v6 }
 0x9d6   : > { %v2522_v22 = vpop.xlane.xlu2 %2521 }
 0x9d7   : > { %v2526_v8 = vsub.f32 %v2494_v45, %v2522_v22  ;;  %v2156_v45 = vor.u32 1.1754944e-38, %v2155_v20 }
 0x9d9   : > { %v5160_v9 = vpop.eup %3775  ;;  %v2528_v11 = vmul.f32 1.442695, %v2526_v8  ;;  %v2157_v48 = vsel %vm2154_vm14, %v2156_v45, %v2152_v38 }
 0x9da   : > { %v2267_v13 = vsel %vm1826_vm3, %v5160_v9, 0.0  ;;  %v5175_v5 = vmul.f32 %v5122_v16, %v2157_v48 }
 0x9db   : > { %3777 = vpow2.f32 %v2528_v11  ;;  %2268 = vadd.xlane.f32.xlu1 %v2267_v13 }
 0x9dc   : > { %v2161_v40 = vpack.c.bf16 %v5175_v5, %v5175_v5 }
 0x9de   : > { %v2266_v15 = vpop.xlane.xlu2 %2265  ;;  %v2391_v17 = vpop.xlane.xlu0 %2390 }
 0x9df   : > { %3779 = vrcp.f32 %v2266_v15  ;;  %v2393_v23 = vsub.f32 %v2383_v31, %v2391_v17  ;;  %v2281_v39 = vand.u32 2147483648, %v2266_v15  ;;  %v2279_v46 = vand.u32 2147483647, %v2266_v15 }
 0x9e0   : > { %vm2275_vm15 = vweird.f32 %v2266_v15 }
 0x9e1   : > { %v5164_v24 = vpop.eup %3777  ;;  %v2396_v28 = vmul.f32 1.442695, %v2393_v23  ;;  %v2282_v53 = vor.u32 1.1754944e-38, %v2281_v39  ;;  %vm2280_vm4 = vcmp.eq.f32.partialorder %v2279_v46, 8.507059e+37 }
 0x9e2   : > { %v2532_v29 = vsel %vm1826_vm3, %v5164_v24, 0.0 }
 0x9e3   : > { %2533 = vadd.xlane.f32.xlu0 %v2532_v29  ;;  %3781 = vpow2.f32 %v2396_v28 }
 0x9e5   : > { %v3780_v12 = vpop.eup %3779 }
 0x9e6   : > { %v2271_v21 = vmul.f32 %v3780_v12, %v2266_v15  ;;  %v5168_v35 = vpop.xlane.xlu2 %2399  ;;  %vm2276_vm13 = vweird.f32 %v3780_v12 }
 0x9e7   : > { %vm2277_vm0 = vmor %vm2275_vm15, %vm2276_vm13  ;;  %v2415_v38 = vand.u32 2147483648, %v5168_v35  ;;  %vm2409_vm11 = vweird.f32 %v5168_v35 }
 0x9e8   : > { %v2272_v37 = vsub.f32 1.0, %v2271_v21 }
 0x9e9   : > { %v5170_v43 = vpop.eup %3781 }
 0x9ea   : > { %v2273_v56 = vmul.f32 %v3780_v12, %v2272_v37  ;;  %v2401_v47 = vsel %vm1826_vm3, %v5170_v43, 0.0 }
 0x9eb   : > { %2402 = vadd.xlane.f32.xlu1 %v2401_v47  ;;  %v2416_v47 = vor.u32 1.1754944e-38, %v2415_v38 }
 0x9ec   : > { %v2274_v50 = vadd.f32 %v3780_v12, %v2273_v56 }
 0x9ee   : > { %v2278_v31 = vsel %vm2277_vm0, %v3780_v12, %v2274_v50  ;;  %v2525_v4 = vpop.xlane.xlu1 %2524  ;;  %v2303_v57 = vpop.permute.xlu2 %2302 }
 0x9ef   : > { %v2283_v60 = vsel %vm2280_vm4, %v2282_v53, %v2278_v31  ;;  %v2527_v61 = vsub.f32 %v5152_v62, %v2525_v4  ;;  %2315 = vmatpush.bf16.msrb.mxu2 %v2303_v57 }
 0x9f0   : > { %v5179_v63 = vmul.f32 %v5141_v52, %v2283_v60 }
 0x9f1   : > { %v2530_v0 = vmul.f32 1.442695, %v2527_v61  ;;  %v2182_v1 = vpop.permute.xlu0 %2181 }
 0x9f2   : > { %2194 = vmatpush.bf16.msra.mxu3 %v2182_v1  ;;  %v2300_v3 = vpack.c.bf16 %v5179_v63, %v5179_v63 }
 0x9f3   : > { %3783 = vpow2.f32 %v2530_v0 }
 0x9f4   : > { %3439 = vmatmul.msk.bf16.vlgmr.msrb.gmra.mxu2 %vm1826_vm3, %v2300_v3 }
 0x9f5   : > { %3436 = vmatmul.msk.bf16.vlgmr.msra.gmra.mxu3 %vm1826_vm3, %v2161_v40 }
 0x9f6   : > { %2334 = vmatpush.bf16.msrb.mxu3 %v2322_v51 }
 0x9f9   : > { %v5187_v16 = vpop.eup %3783 }
 0x9fa   : > { %v2535_v52 = vsel %vm1826_vm3, %v5187_v16, 0.0 }
 0x9fb   : > { %2536 = vadd.xlane.f32.xlu2 %v2535_v52 }
 0xa04   : > { %2436 = vrot.lane.b32.xlu1 %v5067_v55, %s4345_s22 }
 0xa0c   : > { %2455 = vrot.lane.b32.xlu1 %v5073_v2, %s4345_s22 }
 0xa14   : > { %2570 = vrot.lane.b32.xlu1 %v5067_v55, %s4346_s16 }
 0xa1c   : > { %2589 = vrot.lane.b32.xlu1 %v5073_v2, %s4346_s16 }
 0xa4e   : > { %v2269_v62 = vpop.xlane.xlu1 %2268 }
 0xa4f   : > { %3785 = vrcp.f32 %v2269_v62  ;;  %v2295_v8 = vand.u32 2147483648, %v2269_v62  ;;  %v2293_v11 = vand.u32 2147483647, %v2269_v62  ;;  %vm2289_vm6 = vweird.f32 %v2269_v62 }
 0xa50   : > { %3787 = vrcp.f32 %v5168_v35 }
 0xa51   : > { %v2296_v15 = vor.u32 1.1754944e-38, %v2295_v8  ;;  %vm2294_vm8 = vcmp.eq.f32.partialorder %v2293_v11, 8.507059e+37 }
 0xa55   : > { %v3786_v6 = vpop.eup %3785 }
 0xa56   : > { %v2285_v7 = vmul.f32 %v3786_v6, %v2269_v62  ;;  %vm2290_vm5 = vweird.f32 %v3786_v6  ;;  %v3788_v13 = vpop.eup %3787  ;;  %v2534_v12 = vpop.xlane.xlu0 %2533 }
 0xa57   : > { %vm2291_vm7 = vmor %vm2289_vm6, %vm2290_vm5  ;;  %v2405_v2 = vmul.f32 %v3788_v13, %v5168_v35  ;;  %vm2410_vm9 = vweird.f32 %v3788_v13  ;;  %vm2543_vm6 = vweird.f32 %v2534_v12  ;;  %v2547_v8 = vand.u32 2147483647, %v2534_v12 }
 0xa58   : > { %v2286_v22 = vsub.f32 1.0, %v2285_v7  ;;  %vm2411_vm12 = vmor %vm2409_vm11, %vm2410_vm9 }
 0xa59   : > { %v2406_v29 = vsub.f32 1.0, %v2405_v2 }
 0xa5a   : > { %v2287_v10 = vmul.f32 %v3786_v6, %v2286_v22  ;;  %v2549_v22 = vand.u32 2147483648, %v2534_v12 }
 0xa5b   : > { %v2407_v20 = vmul.f32 %v3788_v13, %v2406_v29 }
 0xa5c   : > { %v2288_v14 = vadd.f32 %v3786_v6, %v2287_v10 }
 0xa5d   : > { %v2408_v21 = vadd.f32 %v3788_v13, %v2407_v20 }
 0xa5e   : > { %v2292_v55 = vsel %vm2291_vm7, %v3786_v6, %v2288_v14  ;;  %v2403_v23 = vpop.xlane.xlu1 %2402 }
 0xa5f   : > { %v2297_v17 = vsel %vm2294_vm8, %v2296_v15, %v2292_v55  ;;  %3789 = vrcp.f32 %v2403_v23  ;;  %v2412_v45 = vsel %vm2411_vm12, %v3788_v13, %v2408_v21  ;;  %v2429_v31 = vand.u32 2147483648, %v2403_v23 }
 0xa60   : > { %v5202_v27 = vmul.f32 %v5160_v9, %v2297_v17  ;;  %3791 = vrcp.f32 %v2534_v12  ;;  %v2413_v9 = vand.u32 2147483647, %v5168_v35  ;;  %vm2423_vm15 = vweird.f32 %v2403_v23 }
 0xa61   : > { %v2427_v60 = vand.u32 2147483647, %v2403_v23  ;;  %v2430_v40 = vor.u32 1.1754944e-38, %v2429_v31  ;;  %v2550_v55 = vor.u32 1.1754944e-38, %v2549_v22  ;;  %vm2548_vm8 = vcmp.eq.f32.partialorder %v2547_v8, 8.507059e+37 }
 0xa62   : > { %v2301_v28 = vpack.c.bf16 %v5202_v27, %v5202_v27  ;;  %vm2414_vm13 = vcmp.eq.f32.partialorder %v2413_v9, 8.507059e+37 }
 0xa63   : > { %v2417_v48 = vsel %vm2414_vm13, %v2416_v47, %v2412_v45  ;;  %vm2428_vm4 = vcmp.eq.f32.partialorder %v2427_v60, 8.507059e+37 }
 0xa64   : > { %3440 = vmatmul.msk.bf16.vlgmr.msrb.gmra.mxu3 %vm1826_vm3, %v2301_v28  ;;  %v5211_v57 = vmul.f32 %v5147_v18, %v2417_v48 }
 0xa65   : > { %v3790_v30 = vpop.eup %3789 }
 0xa66   : > { %v2419_v51 = vmul.f32 %v3790_v30, %v2403_v23  ;;  %v3792_v37 = vpop.eup %3791  ;;  %vm2424_vm14 = vweird.f32 %v3790_v30  ;;  %v2434_v62 = vpack.c.bf16 %v5211_v57, %v5211_v57 }
 0xa67   : > { %v2539_v56 = vmul.f32 %v3792_v37, %v2534_v12  ;;  %vm2425_vm0 = vmor %vm2423_vm15, %vm2424_vm14  ;;  %vm2544_vm5 = vweird.f32 %v3792_v37 }
 0xa68   : > { %v2420_v36 = vsub.f32 1.0, %v2419_v51  ;;  %vm2545_vm7 = vmor %vm2543_vm6, %vm2544_vm5 }
 0xa69   : > { %v2540_v50 = vsub.f32 1.0, %v2539_v56 }
 0xa6a   : > { %v2421_v46 = vmul.f32 %v3790_v30, %v2420_v36 }
 0xa6b   : > { %v2541_v35 = vmul.f32 %v3792_v37, %v2540_v50 }
 0xa6c   : > { %v2422_v53 = vadd.f32 %v3790_v30, %v2421_v46 }
 0xa6d   : > { %v2542_v7 = vadd.f32 %v3792_v37, %v2541_v35  ;;  %v3512_v35 = vld [vmem:[%s981_s9 + $0x8] sm:$0xff] }
 0xa6e   : > { %v2537_v39 = vpop.xlane.xlu2 %2536  ;;  %v2426_v61 = vsel %vm2425_vm0, %v3790_v30, %v2422_v53  ;;  %2697 = vmatpush.bf16.msrb.mxu0 %v3512_v35 }
 0xa6f   : > { %3793 = vrcp.f32 %v2537_v39  ;;  %v2431_v6 = vsel %vm2428_vm4, %v2430_v40, %v2426_v61  ;;  %v2546_v11 = vsel %vm2545_vm7, %v3792_v37, %v2542_v7  ;;  %v2563_v29 = vand.u32 2147483648, %v2537_v39  ;;  %v3511_v61 = vld [vmem:[%s981_s9] sm:$0xff] }
 0xa70   : > { %v5219_v10 = vmul.f32 %v5170_v43, %v2431_v6  ;;  %v2551_v23 = vsel %vm2548_vm8, %v2550_v55, %v2546_v11  ;;  %vm2557_vm11 = vweird.f32 %v2537_v39  ;;  %v2561_v12 = vand.u32 2147483647, %v2537_v39 }
 0xa71   : > { %v5225_v43 = vmul.f32 %v5164_v24, %v2551_v23  ;;  %v2564_v51 = vor.u32 1.1754944e-38, %v2563_v29  ;;  %vm2639_vm7 = vcmask 523264   ;;  %vm2636_vm8 = vcmask 392192  }
 0xa72   : > { %v2435_v17 = vpack.c.bf16 %v5219_v10, %v5219_v10  ;;  %vm2562_vm13 = vcmp.eq.f32.partialorder %v2561_v12, 8.507059e+37  ;;  %2698 = vmatpush.bf16.msrb.mxu0 %v3511_v61 }
 0xa73   : > { %v2568_v21 = vpack.c.bf16 %v5225_v43, %v5225_v43 }
 0xa75   : > { %v3794_v4 = vpop.eup %3793 }
 0xa76   : > { %v2553_v0 = vmul.f32 %v3794_v4, %v2537_v39  ;;  %v2437_v1 = vpop.permute.xlu1 %2436  ;;  %vm2558_vm9 = vweird.f32 %v3794_v4 }
 0xa77   : > { %v2317_v3 = vpop.f32.mrf.mxu2  ;;  %2449 = vmatpush.bf16.msra.mxu2 %v2437_v1  ;;  %vm2559_vm12 = vmor %vm2557_vm11, %vm2558_vm9 }
 0xa78   : > { %v5213_v52 = vpop.f32.mrf.mxu3  ;;  %v2554_v18 = vsub.f32 1.0, %v2553_v0 }
 0xa7a   : > { %3443 = vmatmul.msk.bf16.vlgmr.msra.gmra.mxu2 %vm1826_vm3, %v2434_v62  ;;  %v2555_v13 = vmul.f32 %v3794_v4, %v2554_v18 }
 0xa7c   : > { %v2556_v28 = vadd.f32 %v3794_v4, %v2555_v13 }
 0xa7e   : > { %v2456_v14 = vpop.permute.xlu1 %2455  ;;  %v2560_v30 = vsel %vm2559_vm12, %v3794_v4, %v2556_v28 }
 0xa7f   : > { %v2319_v15 = vpop.f32.mrf.mxu2  ;;  %2468 = vmatpush.bf16.msra.mxu3 %v2456_v14  ;;  %v2565_v36 = vsel %vm2562_vm13, %v2564_v51, %v2560_v30 }
 0xa80   : > { %v2198_v2 = vpop.f32.mrf.mxu3  ;;  %v5231_v37 = vmul.f32 %v5187_v16, %v2565_v36 }
 0xa82   : > { %3444 = vmatmul.msk.bf16.vlgmr.msra.gmra.mxu3 %vm1826_vm3, %v2435_v17  ;;  %v2569_v24 = vpack.c.bf16 %v5231_v37, %v5231_v37  ;;  %v3718_v17 = vld [vmem:[%s990_s21] ss:$0 sm:$0xff]  ;;  %s5560_s21 = sld [smem:[#allocation56_spill]] }
 0xa86   : > { %v2571_v20 = vpop.permute.xlu1 %2570 }
 0xa87   : > { %2583 = vmatpush.bf16.msrb.mxu2 %v2571_v20 }
 0xa8a   : > { %3447 = vmatmul.msk.bf16.vlgmr.msrb.gmra.mxu2 %vm1826_vm3, %v2568_v21 }
 0xa8e   : > { %v2590_v38 = vpop.permute.xlu1 %2589 }
 0xa8f   : > { %2602 = vmatpush.bf16.msrb.mxu3 %v2590_v38 }
 0xa92   : > { %3448 = vmatmul.msk.bf16.vlgmr.msrb.gmra.mxu3 %vm1826_vm3, %v2569_v24 }
 0xae7   : > { %v2336_v9 = vpop.f32.mrf.mxu3 }
 0xae8   : > { %v3697_v39 = vpack.i.bf16 %v2336_v9, %v2317_v3 }
 0xaea   : > { %3698 = vrot.lane.b32.xlu0 %v3697_v39, %s4352_s12 }
 0xaef   : > { %v2338_v45 = vpop.f32.mrf.mxu3 }
 0xafd   : > { %v2451_v56 = vpop.f32.mrf.mxu2 }
 0xb05   : > { %v2453_v46 = vpop.f32.mrf.mxu2  ;;  %v2470_v47 = vpop.f32.mrf.mxu3 }
 0xb06   : > { %v3702_v48 = vpack.i.bf16 %v2470_v47, %v2451_v56 }
 0xb08   : > { %3703 = vrot.lane.b32.xlu1 %v3702_v48, %s4353_s1 }
 0xb0d   : > { %v2472_v16 = vpop.f32.mrf.mxu3  ;;  %v2585_v50 = vpop.f32.mrf.mxu2 }
 0xb15   : > { %v2587_v53 = vpop.f32.mrf.mxu2  ;;  %v2604_v31 = vpop.f32.mrf.mxu3 }
 0xb16   : > { %v3707_v4 = vpack.i.bf16 %v2604_v31, %v2585_v50 }
 0xb18   : > { %3708 = vrot.lane.b32.xlu2 %v3707_v4, %s4354_s15 }
 0xb1d   : > { %v2606_v60 = vpop.f32.mrf.mxu3 }
 0xb5c   : > { %v3699_v0 = vpop.permute.xlu0 %3698 }
 0xb5d   : > { %v3701_v1 = vunpack.i.h.bf16 %v3699_v0  ;;  %v3700_v3 = vunpack.i.l.bf16 %v3699_v0 }
 0xb5f   : > { %v2667_v18 = vsel %vm1249_vm2, %v5213_v52, %v3701_v1  ;;  %v2666_v22 = vsel %vm1249_vm2, %v5135_v32, %v3700_v3 }
 0xb72   : > { %v3709_v40 = vpop.permute.xlu2 %3708 }
 0xb73   : > { %v3711_v8 = vunpack.i.h.bf16 %v3709_v40  ;;  %v3710_v11 = vunpack.i.l.bf16 %v3709_v40 }
 0xb7a   : > { %v3704_v62 = vpop.permute.xlu1 %3703 }
 0xb7b   : > { %v3706_v6 = vunpack.i.h.bf16 %v3704_v62  ;;  %v3705_v7 = vunpack.i.l.bf16 %v3704_v62 }
 0xb7d   : > { %v2668_v13 = vsel %vm1826_vm3, %v2666_v22, %v3705_v7  ;;  %v2669_v14 = vsel %vm1826_vm3, %v2667_v18, %v3706_v6  ;;  %v3719_v22 = vld [vmem:[%s4819_s0 + $0x1] ss:$0 sm:$0xff] }
 0xb7e   : > { %v2670_v15 = vsel %vm1829_vm10, %v2668_v13, %v3710_v11  ;;  %v2671_v55 = vsel %vm1829_vm10, %v2669_v14, %v3711_v8  ;;  %v3720_v13 = vld [vmem:[%s4824_s10 + $0x1] ss:$0 sm:$0xff] }
 0xb7f   : > { %v2672_v2 = vpack.c.bf16 %v2671_v55, %v2670_v15 }
 0xb81   : > { %3457 = vmatmul.msk.bf16.vlgmr.msrb.gmra.mxu0 %vm1219_vm1, %v2672_v2 }
 0xbfe   : > { %v2700_v23 = vpop.f32.mrf.mxu0 }
 0xbff   : > { %v2701_v52 = vadd.f32 %v3718_v17, %v2700_v23 }
 0xc01   : > { %v2705_v28 = vadd.f32 %v2701_v52, %v5058_v41  ;;  %v3518_v52 = vld [vmem:[%s4809_s20 + $0x18] sm:$0xff] }
 0xc02   : > { %2845 = vmatpush.bf16.msra.mxu2 %v3518_v52 }
 0xc03   : > { %v2707_v32 = vsel %vm1219_vm1, %v2705_v28, 0.0 }
 0xc04   : > { %2708 = vadd.xlane.f32.xlu1 %v2707_v32  ;;  %v3516_v32 = vld [vmem:[%s4809_s20 + $0x8] sm:$0xff] }
 0xc06   : > { %v2702_v29 = vpop.f32.mrf.mxu0 }
 0xc07   : > { %v2703_v12 = vadd.f32 %v3718_v17, %v2702_v29  ;;  %v3515_v29 = vld [vmem:[%s4809_s20] sm:$0xff] }
 0xc09   : > { %v2706_v30 = vadd.f32 %v2703_v12, %v5060_v42 }
 0xc0b   : > { %v2710_v20 = vsel %vm1219_vm1, %v2706_v30, 0.0 }
 0xc0c   : > { %2711 = vadd.xlane.f32.xlu0 %v2710_v20 }
 0xc20   : > { %1804 = vrot.lane.b32.xlu0 %v4982_v54, %s4352_s12 }
 0xc28   : > { %1812 = vrot.lane.b32.xlu0 %v4999_v33, %s4353_s1 }
 0xc30   : > { %2612 = vrot.lane.b32.xlu0 %v5202_v27, %s4353_s1  ;;  %v3514_v27 = vld [vmem:[%s5554_s14 + $0x8] sm:$0xff]  ;;  %s4213_s14 = scalar_lea.hbm %s5560_s21, 32 }
 0xc31   : > { %2791 = vmatpush.bf16.msrb.mxu1 %v3514_v27 }
 0xc77   : > { %v2709_v41 = vpop.xlane.xlu1 %2708 }
 0xc78   : > { %v2713_v51 = vmul.f32 %v2709_v41, %v5042_v58 }
 0xc7a   : > { %v2715_v21 = vsub.f32 %v2705_v28, %v2713_v51  ;;  %v3517_v28 = vld [vmem:[%s4809_s20 + $0x10] sm:$0xff] }
 0xc7b   : > { %2846 = vmatpush.bf16.msra.mxu2 %v3517_v28 }
 0xc7c   : > { %v2717_v36 = vmul.f32 %v2715_v21, %v2715_v21 }
 0xc7e   : > { %v2719_v42 = vsel %vm1219_vm1, %v2717_v36, 0.0 }
 0xc7f   : > { %v2712_v38 = vpop.xlane.xlu0 %2711  ;;  %2720 = vadd.xlane.f32.xlu2 %v2719_v42  ;;  %2847 = vmatpush.bf16.msra.mxu2 %v3516_v32 }
 0xc80   : > { %v2714_v24 = vmul.f32 %v2712_v38, %v5042_v58  ;;  %v3722_v38 = vld [vmem:[%s5558_s29] ss:$0 sm:$0xff] }
 0xc82   : > { %v2716_v54 = vsub.f32 %v2706_v30, %v2714_v24  ;;  %v3721_v30 = vld [vmem:[%s5556_s19] ss:$0 sm:$0xff] }
 0xc83   : > { %2848 = vmatpush.bf16.msra.mxu2 %v3515_v29 }
 0xc84   : > { %v2718_v9 = vmul.f32 %v2716_v54, %v2716_v54 }
 0xc86   : > { %v2722_v33 = vsel %vm1219_vm1, %v2718_v9, 0.0 }
 0xc87   : > { %2723 = vadd.xlane.f32.xlu1 %v2722_v33 }
 0xc92   : > { %v1805_v47 = vpop.permute.xlu0 %1804 }
 0xc93   : > { %v1825_v1 = vsel %vm1249_vm2, %v4976_v44, %v1805_v47 }
 0xc97   : > { %1802 = vrot.lane.b32.xlu2 %v4963_v25, %s4352_s12  ;;  %v3513_v25 = vld [vmem:[%s5555_s17] sm:$0xff] }
 0xc98   : > { %2792 = vmatpush.bf16.msrb.mxu1 %v3513_v25 }
 0xc9a   : > { %v1813_v61 = vpop.permute.xlu0 %1812 }
 0xc9b   : > { %v1828_v3 = vsel %vm1826_vm3, %v1825_v1, %v1813_v61 }
 0xc9f   : > { %2610 = vrot.lane.b32.xlu2 %v5179_v63, %s4353_s1 }
 0xca0   : > { %1810 = vrot.lane.b32.xlu1 %v4991_v19, %s4353_s1 }
 0xca2   : > { %v5315_v25 = vpop.permute.xlu0 %2612 }
 0xca7   : > { %1820 = vrot.lane.b32.xlu2 %v5017_v59, %s4354_s15 }
 0xcaf   : > { %2626 = vrot.lane.b32.xlu2 %v5225_v43, %s4351_s13 }
 0xcf2   : > { %v2721_v39 = vpop.xlane.xlu2 %2720 }
 0xcf3   : > { %v2725_v45 = vmul.f32 %v2721_v39, %v5042_v58 }
 0xcf5   : > { %v2727_v56 = vadd.f32 1e-06, %v2725_v45 }
 0xcf7   : > { %3795 = vrsqrt.f32 %v2727_v56  ;;  %vm2735_vm15 = vweird.f32 %v2727_v56 }
 0xcfa   : > { %v5283_v63 = vpop.permute.xlu2 %1802  ;;  %v2724_v19 = vpop.xlane.xlu1 %2723 }
 0xcfb   : > { %v2726_v46 = vmul.f32 %v2724_v19, %v5042_v58  ;;  %v1824_v1 = vsel %vm1249_vm2, %v4966_v26, %v5283_v63 }
 0xcfd   : > { %v3796_v59 = vpop.eup %3795  ;;  %v2728_v48 = vadd.f32 1e-06, %v2726_v46 }
 0xcfe   : > { %v2730_v43 = vmul.f32 %v3796_v59, %v2727_v56  ;;  %vm2736_vm14 = vweird.f32 %v3796_v59 }
 0xcff   : > { %3797 = vrsqrt.f32 %v2728_v48  ;;  %vm2737_vm0 = vmor %vm2735_vm15, %vm2736_vm14  ;;  %vm2745_vm5 = vweird.f32 %v2728_v48 }
 0xd00   : > { %v2731_v16 = vmul.f32 %v3796_v59, %v2730_v43 }
 0xd02   : > { %v2732_v50 = vmul.f32 0.5, %v2731_v16  ;;  %v5286_v53 = vpop.permute.xlu2 %2610 }
 0xd04   : > { %v2733_v31 = vsub.f32 1.5, %v2732_v50 }
 0xd05   : > { %v3798_v4 = vpop.eup %3797 }
 0xd06   : > { %v2734_v60 = vmul.f32 %v3796_v59, %v2733_v31  ;;  %v2740_v35 = vmul.f32 %v3798_v4, %v2728_v48  ;;  %vm2746_vm4 = vweird.f32 %v3798_v4 }
 0xd07   : > { %vm2747_vm6 = vmor %vm2745_vm5, %vm2746_vm4 }
 0xd08   : > { %v2741_v0 = vmul.f32 %v3798_v4, %v2740_v35  ;;  %v2738_v40 = vsel %vm2737_vm0, %v3796_v59, %v2734_v60 }
 0xd09   : > { %v2749_v8 = vmul.f32 %v2738_v40, %v2715_v21 }
 0xd0a   : > { %v2742_v62 = vmul.f32 0.5, %v2741_v0  ;;  %v1821_v6 = vpop.permute.xlu2 %1820 }
 0xd0b   : > { %v1831_v7 = vsel %vm1829_vm10, %v1828_v3, %v1821_v6  ;;  %v2754_v14 = vmul.f32 %v3719_v22, %v2749_v8 }
 0xd0c   : > { %v2743_v18 = vsub.f32 1.5, %v2742_v62  ;;  %1833 = vst.msk [vmem:[%s4835_s18 + $0x8] sm:$0xff] %vm1219_vm1, %v1831_v7 }
 0xd0d   : > { %v2759_v2 = vadd.f32 %v3720_v13, %v2754_v14 }
 0xd0e   : > { %v2744_v11 = vmul.f32 %v3798_v4, %v2743_v18 }
 0xd10   : > { %v2748_v44 = vsel %vm2747_vm6, %v3798_v4, %v2744_v11  ;;  %v2632_v4 = vsel %vm1826_vm3, %v5113_v34, %v5286_v53 }
 0xd11   : > { %v2750_v15 = vmul.f32 %v2748_v44, %v2716_v54 }
 0xd12   : > { %v1811_v19 = vpop.permute.xlu1 %1810  ;;  %v2627_v35 = vpop.permute.xlu2 %2626 }
 0xd13   : > { %v2755_v55 = vmul.f32 %v3719_v22, %v2750_v15  ;;  %v1827_v34 = vsel %vm1826_vm3, %v1824_v1, %v1811_v19 }
 0xd15   : > { %v2760_v17 = vadd.f32 %v3720_v13, %v2755_v55 }
 0xd17   : > { %v2761_v23 = vpack.c.bf16 %v2760_v17, %v2759_v2 }
 0xd19   : > { %3466 = vmatmul.msk.bf16.vlgmr.msrb.gmra.mxu1 %vm1219_vm1, %v2761_v23 }
 0xd96   : > { %v2794_v12 = vpop.f32.mrf.mxu1 }
 0xd97   : > { %v2795_v20 = vadd.f32 %v3721_v30, %v2794_v12 }
 0xd99   : > { %v2799_v21 = vmax.f32 %v2795_v20, 0.0 }
 0xd9e   : > { %v2796_v41 = vpop.f32.mrf.mxu1 }
 0xd9f   : > { %v2797_v51 = vadd.f32 %v3721_v30, %v2796_v41 }
 0xda1   : > { %v2800_v36 = vmax.f32 %v2797_v51, 0.0 }
 0xda3   : > { %v2801_v42 = vpack.c.bf16 %v2800_v36, %v2799_v21 }
 0xda5   : > { %3483 = vmatmul.msk.bf16.vlgmr.msra.gmra.mxu2 %vm2639_vm7, %v2801_v42 }
 0xe28   : > { %v2850_v24 = vpop.f32.mrf.mxu2 }
 0xe29   : > { %v2851_v54 = vadd.f32 %v3722_v38, %v2850_v24 }
 0xe2b   : > { %v2855_v9 = vadd.f32 %v2851_v54, %v2759_v2 }
 0xe2d   : > { %v2857_v33 = vsel %vm1219_vm1, %v2855_v9, 0.0 }
 0xe2e   : > { %2858 = vadd.xlane.f32.xlu0 %v2857_v33 }
 0xe30   : > { %v2852_v27 = vpop.f32.mrf.mxu2 }
 0xe31   : > { %v2853_v39 = vadd.f32 %v3722_v38, %v2852_v27 }
 0xe33   : > { %v2856_v45 = vadd.f32 %v2853_v39, %v2760_v17 }
 0xe35   : > { %v2860_v56 = vsel %vm1219_vm1, %v2856_v45, 0.0 }
 0xe36   : > { %2861 = vadd.xlane.f32.xlu1 %v2860_v56 }
 0xe42   : > { %2618 = vrot.lane.b32.xlu0 %v5211_v57, %s4356_s3 }
 0xe4f   : > { %1818 = vrot.lane.b32.xlu1 %v5010_v49, %s4354_s15  ;;  %s3519_s15 = sshll.u32 %s4493_s4, 4 }
 0xe50   : > { %s2944_s1 = scalar_lea.hbm %s5560_s21, %s3519_s15 }
 0xe51   : > { %s2947_s24 = sshll.u32 %s2944_s1, 4  ;;  %s2948_s24 = int_to_ptr.hbm [resolvable:$true] %s2947_s24 }
 0xe52   : > { %s4207_s22 = sshra.s32 %s2948_s24, 4  ;;  %s4208_s22 = int_to_ptr.hbm [resolvable:$true] %s4207_s22 }
 0xe53   : > { %s4209_s16 = scalar_lea.hbm %s4208_s22, 16  ;;  %p4214_p0 = scmp.lt.s32.totalorder %s4208_s22, %s5560_s21 }
 0xe54   : > { %p4210_p2 = scmp.ne.s32.totalorder %s4208_s22, %s4209_s16  ;;  %p4215_p10 = scmp.lt.s32.totalorder %s4213_s14, %s4209_s16 }
 0xe56   : > { %p4211_p3 = pnand %p4210_p2, %p4527_p11  ;;  %p4216_p8 = por %p4215_p10, %p4214_p0 }
 0xe58   : > { %p4212_p5 = pneg %p4211_p3 }
 0xe5a   : > { %p4217_p4 = pnand %p4216_p8, %p4212_p5 }
 0xea1   : > { %v2859_v46 = vpop.xlane.xlu0 %2858 }
 0xea2   : > { %v2863_v59 = vmul.f32 %v2859_v46, %v5042_v58 }
 0xea4   : > { %v5318_v47 = vsub.f32 %v2855_v9, %v2863_v59 }
 0xea6   : > { %v2867_v48 = vmul.f32 %v5318_v47, %v5318_v47 }
 0xea8   : > { %v2869_v43 = vsel %vm1219_vm1, %v2867_v48, 0.0 }
 0xea9   : > { %2870 = vadd.xlane.f32.xlu0 %v2869_v43  ;;  %v2862_v57 = vpop.xlane.xlu1 %2861 }
 0xeaa   : > { %v2864_v49 = vmul.f32 %v2862_v57, %v5042_v58 }
 0xeac   : > { %v5324_v16 = vsub.f32 %v2856_v45, %v2864_v49 }
 0xeae   : > { %v2868_v50 = vmul.f32 %v5324_v16, %v5324_v16 }
 0xeb0   : > { %v2872_v31 = vsel %vm1219_vm1, %v2868_v50, 0.0 }
 0xeb1   : > { %2873 = vadd.xlane.f32.xlu1 %v2872_v31 }
 0xeb4   : > { %v2619_v60 = vpop.permute.xlu0 %2618 }
 0xeb5   : > { %v2634_v61 = vsel %vm1219_vm1, %v2632_v4, %v2619_v60 }
 0xeb6   : > { %v2637_v0 = vsel %vm2636_vm8, %v2634_v61, %v2627_v35 }
 0xeb7   : > { %2640 = vst.msk [vmem:[%s4838_s23] sm:$0xff] %vm2639_vm7, %v2637_v0 }
 0xebd   : > { %2628 = vrot.lane.b32.xlu0 %v5231_v37, %s4351_s13 }
 0xec1   : > { %v1819_v53 = vpop.permute.xlu1 %1818 }
 0xec2   : > { %v1830_v3 = vsel %vm1829_vm10, %v1827_v34, %v1819_v53 }
 0xec3   : > { %1832 = vst.msk [vmem:[%s4835_s18] sm:$0xff] %vm1219_vm1, %v1830_v3 }
 0xec4   : > { %4220 = shalt.err (!%p4217_p4)
}
 0xec5   : > { %s4357_s18 = smov 128   ;;  %v3723_v14 = vld [vmem:[%s4819_s0 + $0x2] ss:$0 sm:$0xff]  ;;  %s5562_s2 = sld [smem:[#allocation57_spill]]  ;;  %v2633_v30 = vsel %vm1826_vm3, %v5175_v5, %v5315_v25 }
 0xec6   : > { %3558 = dma.vmem_to_hbm [thread:$0]  (%p4527_p11), %s2946_s27, 256, %s2948_s24, %s5354_s7, %s4357_s18, %s4357_s18, %s4352_s12  }
 0xec7   : > { %v3724_v2 = vld [vmem:[%s4824_s10 + $0x2] ss:$0 sm:$0xff]  ;;  %s4358_s10 = smov [#allocation19]   ;;  %s5563_s1 = sld [smem:[#allocation55_spill]] }
 0xec8   : > { %s5388_s20 = sshll.u32 %s4358_s10, 4  ;;  %s2929_s20 = int_to_ptr.vmem [resolvable:$true] %s5388_s20 }
 0xeca   : > { %2620 = vrot.lane.b32.xlu1 %v5219_v10, %s4356_s3  ;;  %s2962_s3 = sshll.u32 %s4838_s23, 4  ;;  %s2963_s3 = int_to_ptr.vmem [resolvable:$true] %s2962_s3 }
 0xecb   : > { %s2961_s29 = scalar_lea.hbm %s5562_s2, %s3519_s15  ;;  %s4241_s8 = scalar_lea.hbm %s5562_s2, 32 }
 0xecc   : > { %s2964_s0 = sshll.u32 %s2961_s29, 4  ;;  %s2965_s0 = int_to_ptr.hbm [resolvable:$true] %s2964_s0 }
 0xecd   : > { %s2930_s27 = sshll.u32 %s5563_s1, 4  ;;  %s4235_s24 = sshra.s32 %s2965_s0, 4  ;;  %s2931_s27 = int_to_ptr.hbm [resolvable:$true] %s2930_s27  ;;  %s4236_s24 = int_to_ptr.hbm [resolvable:$true] %s4235_s24 }
 0xece   : > { %s4237_s5 = scalar_lea.hbm %s4236_s24, 16  ;;  %p4242_p13 = scmp.lt.s32.totalorder %s4236_s24, %s5562_s2 }
 0xecf   : > { %p4238_p7 = scmp.ne.s32.totalorder %s4236_s24, %s4237_s5  ;;  %p4243_p6 = scmp.lt.s32.totalorder %s4241_s8, %s4237_s5 }
 0xed1   : > { %p4239_p1 = pnand %p4238_p7, %p4527_p11  ;;  %p4244_p2 = por %p4243_p6, %p4242_p13 }
 0xed3   : > { %p4240_p9 = pneg %p4239_p1 }
 0xed5   : > { %p4245_p3 = pnand %p4244_p2, %p4240_p9 }
 0xf1c   : > { %v2871_v26 = vpop.xlane.xlu0 %2870 }
 0xf1d   : > { %v2875_v37 = vmul.f32 %v2871_v26, %v5042_v58 }
 0xf1f   : > { %v2877_v63 = vadd.f32 1e-06, %v2875_v37 }
 0xf21   : > { %3799 = vrsqrt.f32 %v2877_v63  ;;  %vm2885_vm10 = vweird.f32 %v2877_v63 }
 0xf24   : > { %v2874_v40 = vpop.xlane.xlu1 %2873 }
 0xf25   : > { %v2876_v62 = vmul.f32 %v2874_v40, %v5042_v58 }
 0xf27   : > { %v3800_v6 = vpop.eup %3799  ;;  %v2878_v7 = vadd.f32 1e-06, %v2876_v62 }
 0xf28   : > { %v2880_v18 = vmul.f32 %v3800_v6, %v2877_v63  ;;  %vm2886_vm2 = vweird.f32 %v3800_v6 }
 0xf29   : > { %3801 = vrsqrt.f32 %v2878_v7  ;;  %vm2887_vm9 = vmor %vm2885_vm10, %vm2886_vm2  ;;  %vm2895_vm12 = vweird.f32 %v2878_v7 }
 0xf2a   : > { %v2881_v22 = vmul.f32 %v3800_v6, %v2880_v18 }
 0xf2c   : > { %v2882_v8 = vmul.f32 0.5, %v2881_v22 }
 0xf2e   : > { %v2883_v11 = vsub.f32 1.5, %v2882_v8 }
 0xf2f   : > { %v3802_v10 = vpop.eup %3801  ;;  %v2629_v51 = vpop.permute.xlu0 %2628 }
 0xf30   : > { %v2884_v44 = vmul.f32 %v3800_v6, %v2883_v11  ;;  %v2890_v13 = vmul.f32 %v3802_v10, %v2878_v7  ;;  %vm2896_vm11 = vweird.f32 %v3802_v10 }
 0xf31   : > { %vm2897_vm13 = vmor %vm2895_vm12, %vm2896_vm11 }
 0xf32   : > { %v2888_v15 = vsel %vm2887_vm9, %v3800_v6, %v2884_v44  ;;  %v2891_v55 = vmul.f32 %v3802_v10, %v2890_v13 }
 0xf33   : > { %v2899_v58 = vmul.f32 %v2888_v15, %v5318_v47 }
 0xf34   : > { %v2892_v17 = vmul.f32 0.5, %v2891_v55 }
 0xf35   : > { %v2904_v23 = vmul.f32 %v3723_v14, %v2899_v58 }
 0xf36   : > { %v2893_v52 = vsub.f32 1.5, %v2892_v17 }
 0xf37   : > { %v2909_v28 = vadd.f32 %v3724_v2, %v2904_v23 }
 0xf38   : > { %v2894_v32 = vmul.f32 %v3802_v10, %v2893_v52 }
 0xf39   : > { %2911 = vst.msk [vmem:[#allocation19] sm:$0xff] %vm1219_vm1, %v2909_v28 }
 0xf3a   : > { %v2898_v29 = vsel %vm2897_vm13, %v3802_v10, %v2894_v32 }
 0xf3b   : > { %v2900_v12 = vmul.f32 %v2898_v29, %v5324_v16 }
 0xf3c   : > { %v2621_v20 = vpop.permute.xlu1 %2620 }
 0xf3d   : > { %v2905_v41 = vmul.f32 %v3723_v14, %v2900_v12  ;;  %v2635_v21 = vsel %vm1219_vm1, %v2633_v30, %v2621_v20 }
 0xf3e   : > { %v2638_v36 = vsel %vm2636_vm8, %v2635_v21, %v2629_v51 }
 0xf3f   : > { %2641 = vst.msk [vmem:[%s4838_s23 + $0x8] sm:$0xff] %vm2639_vm7, %v2638_v36  ;;  %v2910_v5 = vadd.f32 %v3724_v2, %v2905_v41 }
 0xf40   : > { %4248 = shalt.err (!%p4245_p3)
}
 0xf41   : > { %3559 = dma.vmem_to_hbm [thread:$0]  (%p4527_p11), %s2963_s3, 256, %s2965_s0, %s5354_s7, %s4357_s18, %s4357_s18, %s4352_s12   ;;  %2912 = vst.msk [vmem:[#allocation19 + $0x8] sm:$0xff] %vm1219_vm1, %v2910_v5 }
 0xf42   : > { %p5564_p5 = scmp.eq.s32.totalorder %s4493_s4, 1 }
 0xf44   : > { %3557 = dma.vmem_to_hbm [thread:$0]  (%p5564_p5), %s2929_s20, 256, %s2931_s27, [#allocation4], %s4357_s18, %s4357_s18, %s4352_s12  }
 0xf45   : > { %p5565_p0 = pmov %p5564_p5 }
 0xf47   : > { %4310 = dma.done.wait (%p5565_p0), [#allocation4], 256   ;;  %p5566_p10 = pmov %p5565_p0 }
 0xf49   : > { %4312 = vsyncadd (%p5566_p10), [#allocation4], 4294967040 }
 0xf4a PF: > { %s5567_s23 = sadd.s32 4294967294, %s4331_s30   ;;  %p5569_p11 = scmp.ge.s32.totalorder %s4331_s30, 2 }
 0xf4b   : > { %s2984_s17 = sand.u32 1, %s5567_s23  }
 0xf4c   : > { %p3606_p8 = pnand %p5569_p11, %p4531_p12  ;;  %s2985_s7 = scalar_lea.sflag [#allocation21], %s2984_s17 }
 0xf4e   : > { %p3607_p4 = pneg %p3606_p8 }
 0xf50   : > { %4314 = dma.done.wait (%p3607_p4), %s2985_s7, 512  }
 0xf51   : > { %4316 = vsyncadd (%p3607_p4), %s2985_s7, 4294966784  ;;  %s5570_s30 = sld [smem:[#allocation30_spill]]  ;;  %s5573_s3 = smov %s4323_s28 }
 0xf52   : > { %s5571_s12 = sld [smem:[#allocation29_spill]] }
 0xf53   : > { %s5572_s29 = sld [smem:[#allocation31_spill]] }
 0xf57   : > { %p37_p7 = scmp.ge.s32.totalorder %s5570_s30, 4  }
 0xf58   : > { %s5574_s28 = smov %s5571_s12 }
 0xf59   :  { %39 = sbr.rel (!%p37_p7) target bundleno = 31 (0x1f), region = 297 }
 0xf5e   :  { %3001 = vsyncpa [#allocation3], 1 }
 0xf5f   :  { %3003 = vsyncpa [#allocation3 + $0x1], 1 }
 0xf60   :  { %3004 = vsyncpa [#allocation6], 1 }
 0xf61   :  { %3005 = vsyncpa [#allocation9], 1 }
 0xf62   :  { %3006 = vsyncpa [#allocation4], 1 }
 0xf63   :  { %3008 = vsyncpa [#allocation4 + $0x1], 1 }
 0xf64   :  { %3009 = vsyncpa [#allocation21], 1 }
 0xf65   :  { %3011 = vsyncpa [#allocation21 + $0x1], 1 }

</bundles_post_ra>
